<compile_context>
chip_gen: v5e
topology: v5e:2x2
jax: 0.10.0
libtpu: 0.0.40
codegen_flags: <defaults>
</compile_context>

<pallas_src>
import functools
import math
import numpy as np

import jax
import jax.numpy as jnp
from jax import lax
from jax.experimental import pallas as pl
from jax.experimental.pallas import tpu as pltpu


# ----------------------------------------------------------------------------
# Kernel 1: per-(direction, batch) fused projection + selective scan.
#   x_ref    : (L, D)    time-major input sequence (row-major or col-major order)
#   wdtc_ref : (D, D)    folded dt projection  (dt_projs_weight @ x_proj_dt)
#   wbc_ref  : (2N, D)   x_proj rows for B (first N) and C (last N)
#   dtb_ref  : (1, D)    dt projection bias
#   a_ref    : (N, D)    A^T = (-exp(A_log))^T
#   dpar_ref : (1, D)    D (skip) parameter
#   o_ref    : (L, D)    scan output (time-major, same ordering as the input)
#   delta_ref: (L, D)    VMEM scratch for softplus(dt)
# `reverse=True` runs the recurrence backwards in time (equivalent to scanning the
# flipped sequence and un-flipping the result), baked in at compile time.
# ----------------------------------------------------------------------------
def ss2d_scan_kernel(x_ref, wdtc_ref, wbc_ref, dtb_ref, a_ref, dpar_ref, o_ref,
                     delta_ref, *, N, T, nchunks, reverse):
    # Full-sequence dt projection + softplus: one big MXU matmul, off the scan path.
    z = jnp.einsum("lc,dc->ld", x_ref[...], wdtc_ref[...],
                   preferred_element_type=jnp.float32) + dtb_ref[...]
    delta_ref[...] = jnp.where(z > 20.0, z, jnp.log1p(jnp.exp(z)))     # softplus

    A = a_ref[...]            # (N, D)
    wbc = wbc_ref[...]        # (2N, D)
    dpar = dpar_ref[...]      # (1, D)
    Dd = x_ref.shape[1]

    def chunk_body(ci, h):
        c = (nchunks - 1 - ci) if reverse else ci
        base = pl.multiple_of(c * T, T)
        x_c = x_ref[pl.ds(base, T), :]          # (T, D)  sublane-dynamic slice
        dt_c = delta_ref[pl.ds(base, T), :]     # (T, D)
        du_c = dt_c * x_c                       # (T, D)
        # B/C projection for this chunk, directly in (2N, T) orientation so the
        # per-step column reads below are *static* lane slices (no dynamic lane idx).
        bc_c = jnp.einsum("nd,td->nt", wbc, x_c,
                          preferred_element_type=jnp.float32)          # (2N, T)

        rows = [None] * T
        order = range(T - 1, -1, -1) if reverse else range(T)
        for t in order:                          # static unroll over the chunk
            drow = dt_c[t:t + 1, :]              # (1, D)
            durow = du_c[t:t + 1, :]             # (1, D)
            bcol = bc_c[:N, t:t + 1]             # (N, 1)
            ccol = bc_c[N:, t:t + 1]             # (N, 1)
            dA = jnp.exp(drow * A)               # (N, D)   (off the serial chain)
            h = dA * h + bcol * durow            # (N, D)   serial critical path
            rows[t] = jnp.sum(h * ccol, axis=0, keepdims=True)         # (1, D)

        y_c = jnp.concatenate(rows, axis=0) if T > 1 else rows[0]      # (T, D)
        o_ref[pl.ds(base, T), :] = y_c + x_c * dpar                    # skip + store
        return h

    h0 = jnp.zeros((N, Dd), jnp.float32)
    lax.fori_loop(0, nchunks, chunk_body, h0)


# ----------------------------------------------------------------------------
# Kernel 2: "mergeconv" = 1x1 Conv2d over the 4 direction channels.
#   w_ref (1, 4) SMEM, b_ref (1, 1) SMEM, ys_ref (4, tL, D) VMEM -> o_ref (tL, D)
# ----------------------------------------------------------------------------
def merge_kernel(w_ref, b_ref, ys_ref, o_ref):
    o_ref[...] = (w_ref[0, 0] * ys_ref[0]
                  + w_ref[0, 1] * ys_ref[1]
                  + w_ref[0, 2] * ys_ref[2]
                  + w_ref[0, 3] * ys_ref[3]) + b_ref[0, 0]


def _pick_l_tile(L, max_tile=1024):
    """Largest multiple-of-8 divisor of L that is <= max_tile (else the full L)."""
    if L <= max_tile:
        return L
    t = max_tile - (max_tile % 8)
    while t >= 8:
        if L % t == 0:
            return t
        t -= 8
    return L


def _pick_chunk(L, max_t=16):
    """Largest divisor of L that is <= max_t (static unroll length of the scan chunk)."""
    return max(t for t in range(1, min(L, max_t) + 1) if L % t == 0)


def _scan_pair(x2, wdtc, wbc, dtb, a_nd, dpar, *, L, Dd, N, T, reverse):
    """Run the scan kernel for 2 directions (row-major / col-major ordering), with the
    time direction (forward/backward) baked in at compile time."""
    Bb = x2.shape[0]
    nchunks = L // T
    kernel = functools.partial(ss2d_scan_kernel, N=N, T=T, nchunks=nchunks,
                               reverse=reverse)
    return pl.pallas_call(
        kernel,
        out_shape=jax.ShapeDtypeStruct((Bb, 2, L, Dd), jnp.float32),
        grid=(2, Bb),                 # direction outer -> weights stay VMEM-resident
        in_specs=[
            pl.BlockSpec((None, None, L, Dd), lambda k, b: (b, k, 0, 0)),   # x
            pl.BlockSpec((None, Dd, Dd), lambda k, b: (k, 0, 0)),           # W_dt_comb
            pl.BlockSpec((None, 2 * N, Dd), lambda k, b: (k, 0, 0)),        # W_[B;C]
            pl.BlockSpec((None, 1, Dd), lambda k, b: (k, 0, 0)),            # dt bias
            pl.BlockSpec((None, N, Dd), lambda k, b: (k, 0, 0)),            # A^T
            pl.BlockSpec((None, 1, Dd), lambda k, b: (k, 0, 0)),            # D skip
        ],
        out_specs=pl.BlockSpec((None, None, L, Dd), lambda k, b: (b, k, 0, 0)),
        scratch_shapes=[pltpu.VMEM((L, Dd), jnp.float32)],                  # delta
        compiler_params=pltpu.CompilerParams(
            dimension_semantics=("parallel", "parallel")),
    )(x2, wdtc, wbc, dtb, a_nd, dpar)


# ----------------------------------------------------------------------------
# Glue: build the 2 scan orderings, call the kernels, recombine directions.
# ----------------------------------------------------------------------------
def ss2d_forward(x, p):
    B, H, W, Dd = x.shape
    L = H * W
    K = 4
    N = p["A_logs"].shape[-1]
    R = p["dt_projs_weight"].shape[-1]

    x = x.astype(jnp.float32)

    # Only two input orderings are needed (flips are folded into the reversed scan):
    # row-major (h*W + w) and col-major (w*H + h), both time-major (L, D).
    x_rm = x.reshape(B, L, Dd)
    x_cm = jnp.transpose(x, (0, 2, 1, 3)).reshape(B, L, Dd)
    x2 = jnp.stack([x_rm, x_cm], axis=1)                                  # (B, 2, L, D)

    xw = p["x_proj_weight"].astype(jnp.float32)                           # (K, R+2N, D)
    w_dt = xw[:, :R, :]                                                   # (K, R, D)
    w_bc = xw[:, R:, :]                                                   # (K, 2N, D)
    # Fold the dt-rank bottleneck into a single (D, D) projection per direction.
    wdtc = jnp.einsum("kdr,krc->kdc",
                      p["dt_projs_weight"].astype(jnp.float32), w_dt)     # (K, D, D)
    a_nd = -jnp.exp(jnp.transpose(p["A_logs"].astype(jnp.float32), (0, 2, 1)))  # (K,N,D)
    dtb = p["dt_projs_bias"].astype(jnp.float32)[:, None, :]              # (K, 1, D)
    dpar = p["Ds"].astype(jnp.float32)[:, None, :]                        # (K, 1, D)

    T = _pick_chunk(L)

    # Directions 0,1: forward scan; directions 2,3: backward scan (compile-time split).
    out_f = _scan_pair(x2, wdtc[:2], w_bc[:2], dtb[:2], a_nd[:2], dpar[:2],
                       L=L, Dd=Dd, N=N, T=T, reverse=False)               # (B,2,L,D)
    out_b = _scan_pair(x2, wdtc[2:], w_bc[2:], dtb[2:], a_nd[2:], dpar[2:],
                       L=L, Dd=Dd, N=N, T=T, reverse=True)                # (B,2,L,D)

    # Direction recombination. Flips are already folded into the kernel; only the
    # col-major -> row-major reorder of directions 1 and 3 remains (genuine data
    # movement, done once in XLA).
    def cm_to_rm(ycm):
        return jnp.transpose(ycm.reshape(B, W, H, Dd), (0, 2, 1, 3)).reshape(B, L, Dd)

    ys = jnp.stack([out_f[:, 0],            # y1: row-major forward
                    out_b[:, 0],            # y2: row-major backward (flip folded)
                    cm_to_rm(out_f[:, 1]),  # y3: col-major forward, reordered
                    cm_to_rm(out_b[:, 1])], # y4: col-major backward, reordered
                   axis=1)                                                # (B, 4, L, D)

    w2d = p["merge_w"].reshape(1, K).astype(jnp.float32)
    b2d = p["merge_b"].reshape(1, 1).astype(jnp.float32)

    tL = _pick_l_tile(L)
    y = pl.pallas_call(
        merge_kernel,
        out_shape=jax.ShapeDtypeStruct((B, L, Dd), jnp.float32),
        grid=(B, L // tL),
        in_specs=[
            pl.BlockSpec(memory_space=pltpu.MemorySpace.SMEM),
            pl.BlockSpec(memory_space=pltpu.MemorySpace.SMEM),
            pl.BlockSpec((None, K, tL, Dd), lambda b, i: (b, 0, i, 0)),
        ],
        out_specs=pl.BlockSpec((None, tL, Dd), lambda b, i: (b, i, 0)),
        compiler_params=pltpu.CompilerParams(
            dimension_semantics=("parallel", "parallel")),
    )(w2d, b2d, ys)

    # (B, L, D) time-major == (B, H, W, D)
    return y.reshape(B, H, W, Dd)


# ----------------------------------------------------------------------------
# Pure-JAX reference of the PyTorch forward (for verification).
# ----------------------------------------------------------------------------
def _build_directions(x):
    """x: (B, H, W, D) -> xs: (B, 4, D, L) matching the PyTorch direction order."""
    B, H, W, Dd = x.shape
    L = H * W
    x_nchw = jnp.transpose(x, (0, 3, 1, 2))                       # (B, D, H, W)
    x_flat = x_nchw.reshape(B, Dd, L)                             # row-major (h*W + w)
    x_t = jnp.transpose(x_nchw, (0, 1, 3, 2)).reshape(B, Dd, L)   # col-major (w*H + h)
    x_hwwh = jnp.stack([x_flat, x_t], axis=1)                     # (B, 2, D, L)
    xs = jnp.concatenate([x_hwwh, jnp.flip(x_hwwh, axis=-1)], axis=1)  # (B, 4, D, L)
    return xs


def _softplus(x):
    return jnp.where(x > 20.0, x, jnp.log1p(jnp.exp(x)))


def reference_forward(x, p):
    B, H, W, Dd = x.shape
    L = H * W
    K = 4
    N = p["A_logs"].shape[-1]
    R = p["dt_projs_weight"].shape[-1]

    xs = _build_directions(x)                                     # (B, K, D, L)
    x_dbl = jnp.einsum("bkdl,kcd->bkcl", xs, p["x_proj_weight"])
    dts_low = x_dbl[:, :, :R]
    Bs = x_dbl[:, :, R:R + N]
    Cs = x_dbl[:, :, R + N:]
    dts = jnp.einsum("bkrl,kdr->bkdl", dts_low, p["dt_projs_weight"])
    delta = _softplus(dts + p["dt_projs_bias"][None, :, :, None])
    A = -jnp.exp(p["A_logs"])                                     # (K, D, N)
    Ds = p["Ds"]                                                  # (K, D)

    def step(h, inp):
        u_t, dt_t, B_t, C_t = inp
        dA = jnp.exp(dt_t[..., None] * A[None])
        h = dA * h + (dt_t * u_t)[..., None] * B_t[:, :, None, :]
        y = jnp.sum(h * C_t[:, :, None, :], axis=-1) + Ds[None] * u_t
        return h, y

    u_T = jnp.moveaxis(xs, -1, 0)
    dt_T = jnp.moveaxis(delta, -1, 0)
    Bs_T = jnp.moveaxis(Bs, -1, 0)
    Cs_T = jnp.moveaxis(Cs, -1, 0)
    h0 = jnp.zeros((B, K, Dd, N), jnp.float32)
    _, ys = lax.scan(step, h0, (u_T, dt_T, Bs_T, Cs_T))
    out_y = jnp.moveaxis(ys, 0, -1)                               # (B, K, D, L)

    y1 = out_y[:, 0]
    y2 = jnp.flip(out_y[:, 2], axis=-1)
    y3 = jnp.transpose(out_y[:, 1].reshape(B, Dd, W, H), (0, 1, 3, 2)).reshape(B, Dd, L)
    y4 = jnp.transpose(jnp.flip(out_y[:, 3], axis=-1).reshape(B, Dd, W, H),
                       (0, 1, 3, 2)).reshape(B, Dd, L)
    w = p["merge_w"]
    b = p["merge_b"]
    y = w[0] * y1 + w[1] * y2 + w[2] * y3 + w[3] * y4 + b[0]
    return jnp.transpose(y.reshape(B, Dd, H, W), (0, 2, 3, 1))


# ----------------------------------------------------------------------------
# Deterministic parameter init (mirrors shapes from SS2D_block.__init__)
# ----------------------------------------------------------------------------
def init_params(key, d_inner, d_state, dt_rank, K=4,
                dt_min=0.001, dt_max=0.1, dt_init_floor=1e-4):
    ks = jax.random.split(key, 6)
    c_out = dt_rank + 2 * d_state
    bound = 1.0 / math.sqrt(d_inner)
    x_proj_weight = jax.random.uniform(ks[0], (K, c_out, d_inner),
                                       minval=-bound, maxval=bound, dtype=jnp.float32)
    dt_init_std = dt_rank ** -0.5
    dt_projs_weight = jax.random.uniform(ks[1], (K, d_inner, dt_rank),
                                         minval=-dt_init_std, maxval=dt_init_std,
                                         dtype=jnp.float32)
    dt = jnp.exp(jax.random.uniform(ks[2], (K, d_inner), dtype=jnp.float32)
                 * (math.log(dt_max) - math.log(dt_min)) + math.log(dt_min))
    dt = jnp.maximum(dt, dt_init_floor)
    dt_projs_bias = dt + jnp.log(-jnp.expm1(-dt))                 # inverse softplus
    A_logs = jnp.broadcast_to(jnp.log(jnp.arange(1, d_state + 1, dtype=jnp.float32)),
                              (K, d_inner, d_state))
    Ds = jnp.ones((K, d_inner), jnp.float32)
    conv_bound = 1.0 / math.sqrt(K)                               # Conv2d(4,1,1) fan_in=4
    merge_w = jax.random.uniform(ks[3], (4,), minval=-conv_bound, maxval=conv_bound,
                                 dtype=jnp.float32)
    merge_b = jax.random.uniform(ks[4], (1,), minval=-conv_bound, maxval=conv_bound,
                                 dtype=jnp.float32)
    return {
        "x_proj_weight": x_proj_weight,
        "dt_projs_weight": dt_projs_weight,
        "dt_projs_bias": dt_projs_bias,
        "A_logs": A_logs,
        "Ds": Ds,
        "merge_w": merge_w,
        "merge_b": merge_b,
    }


if __name__ == "__main__":
    # Small shapes consistent with the module's forward: x (B, H, W, D), D == d_inner.
    B, H, W = 2, 8, 8
    d_inner, d_state, dt_rank = 32, 8, 4

    key = jax.random.PRNGKey(0)
    k_param, k_x = jax.random.split(key)
    params = init_params(k_param, d_inner, d_state, dt_rank)
    x = jax.random.normal(k_x, (B, H, W, d_inner), dtype=jnp.float32)

    fwd = jax.jit(ss2d_forward)
    out = jax.block_until_ready(fwd(x, params))

    ref = jax.block_until_ready(reference_forward(x, params))

    assert out.shape == (B, H, W, d_inner)
    np.testing.assert_allclose(np.asarray(out), np.asarray(ref), rtol=2e-3, atol=2e-3)
    print("KERNEL_OK")
</pallas_src>

<mosaic_0001>
module attributes {stable_mosaic.version = 11 : i64} {
  func.func @merge_kernel(%arg0: i32, %arg1: i32, %arg2: memref<1x4xf32, #tpu.memory_space<smem>>, %arg3: memref<1x1xf32, #tpu.memory_space<smem>>, %arg4: memref<1x4x64x32xf32, #tpu.memory_space<vmem>>, %arg5: memref<1x64x32xf32, #tpu.memory_space<vmem>>) attributes {dimension_semantics = [#tpu.dimension_semantics<parallel>, #tpu.dimension_semantics<parallel>], iteration_bounds = array<i64: 2, 1>, scalar_prefetch = 0 : i64, scratch_operands = 0 : i64, tpu.core_type = #tpu.core_type<tc>, window_params = [{transform_indices = @transform_0, window_bounds = array<i64: 1, 4>}, {transform_indices = @transform_1, window_bounds = array<i64: 1, 1>}, {transform_indices = @transform_2, window_bounds = array<i64: 1, 4, 64, 32>}, {transform_indices = @transform_3, window_bounds = array<i64: 1, 64, 32>}]} {
    %c0 = arith.constant 0 : index
    %c0_0 = arith.constant 0 : index
    %0 = memref.load %arg2[%c0, %c0_0] : memref<1x4xf32, #tpu.memory_space<smem>>
    %c0_1 = arith.constant 0 : index
    %c0_2 = arith.constant 0 : index
    %c0_3 = arith.constant 0 : index
    %c0_4 = arith.constant 0 : index
    %1 = vector.load %arg4[%c0_1, %c0_2, %c0_3, %c0_4] : memref<1x4x64x32xf32, #tpu.memory_space<vmem>>, vector<1x1x64x32xf32>
    %2 = vector.shape_cast %1 : vector<1x1x64x32xf32> to vector<64x32xf32>
    %3 = vector.broadcast %0 : f32 to vector<64x32xf32>
    %4 = arith.mulf %3, %2 : vector<64x32xf32>
    %c0_5 = arith.constant 0 : index
    %c1 = arith.constant 1 : index
    %5 = memref.load %arg2[%c0_5, %c1] : memref<1x4xf32, #tpu.memory_space<smem>>
    %c0_6 = arith.constant 0 : index
    %c1_7 = arith.constant 1 : index
    %c0_8 = arith.constant 0 : index
    %c0_9 = arith.constant 0 : index
    %6 = vector.load %arg4[%c0_6, %c1_7, %c0_8, %c0_9] : memref<1x4x64x32xf32, #tpu.memory_space<vmem>>, vector<1x1x64x32xf32>
    %7 = vector.shape_cast %6 : vector<1x1x64x32xf32> to vector<64x32xf32>
    %8 = vector.broadcast %5 : f32 to vector<64x32xf32>
    %9 = arith.mulf %8, %7 : vector<64x32xf32>
    %10 = arith.addf %4, %9 : vector<64x32xf32>
    %c0_10 = arith.constant 0 : index
    %c2 = arith.constant 2 : index
    %11 = memref.load %arg2[%c0_10, %c2] : memref<1x4xf32, #tpu.memory_space<smem>>
    %c0_11 = arith.constant 0 : index
    %c2_12 = arith.constant 2 : index
    %c0_13 = arith.constant 0 : index
    %c0_14 = arith.constant 0 : index
    %12 = vector.load %arg4[%c0_11, %c2_12, %c0_13, %c0_14] : memref<1x4x64x32xf32, #tpu.memory_space<vmem>>, vector<1x1x64x32xf32>
    %13 = vector.shape_cast %12 : vector<1x1x64x32xf32> to vector<64x32xf32>
    %14 = vector.broadcast %11 : f32 to vector<64x32xf32>
    %15 = arith.mulf %14, %13 : vector<64x32xf32>
    %16 = arith.addf %10, %15 : vector<64x32xf32>
    %c0_15 = arith.constant 0 : index
    %c3 = arith.constant 3 : index
    %17 = memref.load %arg2[%c0_15, %c3] : memref<1x4xf32, #tpu.memory_space<smem>>
    %c0_16 = arith.constant 0 : index
    %c3_17 = arith.constant 3 : index
    %c0_18 = arith.constant 0 : index
    %c0_19 = arith.constant 0 : index
    %18 = vector.load %arg4[%c0_16, %c3_17, %c0_18, %c0_19] : memref<1x4x64x32xf32, #tpu.memory_space<vmem>>, vector<1x1x64x32xf32>
    %19 = vector.shape_cast %18 : vector<1x1x64x32xf32> to vector<64x32xf32>
    %20 = vector.broadcast %17 : f32 to vector<64x32xf32>
    %21 = arith.mulf %20, %19 : vector<64x32xf32>
    %22 = arith.addf %16, %21 : vector<64x32xf32>
    %c0_20 = arith.constant 0 : index
    %c0_21 = arith.constant 0 : index
    %23 = memref.load %arg3[%c0_20, %c0_21] : memref<1x1xf32, #tpu.memory_space<smem>>
    %24 = vector.broadcast %23 : f32 to vector<64x32xf32>
    %25 = arith.addf %22, %24 : vector<64x32xf32>
    %c0_22 = arith.constant 0 : index
    %c0_23 = arith.constant 0 : index
    %c0_24 = arith.constant 0 : index
    %26 = vector.load %arg5[%c0_22, %c0_23, %c0_24] : memref<1x64x32xf32, #tpu.memory_space<vmem>>, vector<1x64x32xf32>
    %27 = vector.shape_cast %26 : vector<1x64x32xf32> to vector<64x32xf32>
    %28 = vector.shape_cast %25 : vector<64x32xf32> to vector<1x64x32xf32>
    tpu.vector_store %arg5[%c0_22, %c0_23, %c0_24], %28 {strides = array<i32>} : memref<1x64x32xf32, #tpu.memory_space<vmem>>, vector<1x64x32xf32>,
    return
  }
  func.func @transform_0(%arg0: i32, %arg1: i32) -> (i32, i32) {
    %c0_i32 = arith.constant 0 : i32
    %c0_i32_0 = arith.constant 0 : i32
    %c0_i32_1 = arith.constant 0 : i32
    return %c0_i32, %c0_i32_0 : i32, i32
  }
  func.func @transform_1(%arg0: i32, %arg1: i32) -> (i32, i32) {
    %c0_i32 = arith.constant 0 : i32
    %c0_i32_0 = arith.constant 0 : i32
    %c0_i32_1 = arith.constant 0 : i32
    return %c0_i32, %c0_i32_0 : i32, i32
  }
  func.func @transform_2(%arg0: i32, %arg1: i32) -> (i32, i32, i32, i32) {
    %c0_i32 = arith.constant 0 : i32
    %c0_i32_0 = arith.constant 0 : i32
    %c0_i32_1 = arith.constant 0 : i32
    return %arg0, %c0_i32, %arg1, %c0_i32_0 : i32, i32, i32, i32
  }
  func.func @transform_3(%arg0: i32, %arg1: i32) -> (i32, i32, i32) {
    %c0_i32 = arith.constant 0 : i32
    %c0_i32_0 = arith.constant 0 : i32
    return %arg0, %arg1, %c0_i32 : i32, i32, i32
  }
}

module attributes {stable_mosaic.version = 11 : i64} {
  func.func @ss2d_scan_kernel(%arg0: i32, %arg1: i32, %arg2: memref<1x1x64x32xf32, #tpu.memory_space<vmem>>, %arg3: memref<1x32x32xf32, #tpu.memory_space<vmem>>, %arg4: memref<1x16x32xf32, #tpu.memory_space<vmem>>, %arg5: memref<1x1x32xf32, #tpu.memory_space<vmem>>, %arg6: memref<1x8x32xf32, #tpu.memory_space<vmem>>, %arg7: memref<1x1x32xf32, #tpu.memory_space<vmem>>, %arg8: memref<1x1x64x32xf32, #tpu.memory_space<vmem>>, %arg9: memref<64x32xf32, #tpu.memory_space<vmem>>) attributes {dimension_semantics = [#tpu.dimension_semantics<parallel>, #tpu.dimension_semantics<parallel>], iteration_bounds = array<i64: 2, 2>, scalar_prefetch = 0 : i64, scratch_operands = 1 : i64, tpu.core_type = #tpu.core_type<tc>, window_params = [{transform_indices = @transform_0, window_bounds = array<i64: 1, 1, 64, 32>}, {transform_indices = @transform_1, window_bounds = array<i64: 1, 32, 32>}, {transform_indices = @transform_2, window_bounds = array<i64: 1, 16, 32>}, {transform_indices = @transform_3, window_bounds = array<i64: 1, 1, 32>}, {transform_indices = @transform_4, window_bounds = array<i64: 1, 8, 32>}, {transform_indices = @transform_5, window_bounds = array<i64: 1, 1, 32>}, {transform_indices = @transform_6, window_bounds = array<i64: 1, 1, 64, 32>}]} {
    %c0 = arith.constant 0 : index
    %c0_0 = arith.constant 0 : index
    %c0_1 = arith.constant 0 : index
    %c0_2 = arith.constant 0 : index
    %0 = vector.load %arg2[%c0, %c0_0, %c0_1, %c0_2] : memref<1x1x64x32xf32, #tpu.memory_space<vmem>>, vector<1x1x64x32xf32>
    %1 = vector.shape_cast %0 : vector<1x1x64x32xf32> to vector<64x32xf32>
    %c0_3 = arith.constant 0 : index
    %c0_4 = arith.constant 0 : index
    %c0_5 = arith.constant 0 : index
    %2 = vector.load %arg3[%c0_3, %c0_4, %c0_5] : memref<1x32x32xf32, #tpu.memory_space<vmem>>, vector<1x32x32xf32>
    %3 = vector.shape_cast %2 : vector<1x32x32xf32> to vector<32x32xf32>
    "tpu.trace_start"() <{level = 10 : i32, message = "lc,dc->ld"}> : () -> ()
    %cst = arith.constant dense<0.000000e+00> : vector<64x32xf32>
    %4 = tpu.matmul %1, %3, %cst {dimension_numbers = #tpu.dot_dimension_numbers<[1], [1], [0], [0], [0, 0, 1, 0], [], []>} : vector<64x32xf32>, vector<32x32xf32>, vector<64x32xf32> -> vector<64x32xf32>
    "tpu.trace_stop"() : () -> ()
    %c0_6 = arith.constant 0 : index
    %c0_7 = arith.constant 0 : index
    %c0_8 = arith.constant 0 : index
    %5 = vector.load %arg5[%c0_6, %c0_7, %c0_8] : memref<1x1x32xf32, #tpu.memory_space<vmem>>, vector<1x1x32xf32>
    %6 = vector.shape_cast %5 : vector<1x1x32xf32> to vector<1x32xf32>
    %7 = vector.broadcast %6 : vector<1x32xf32> to vector<64x32xf32>
    %8 = arith.addf %4, %7 : vector<64x32xf32>
    %cst_9 = arith.constant 2.000000e+01 : f32
    %9 = vector.broadcast %cst_9 : f32 to vector<64x32xf32>
    %10 = arith.cmpf ogt, %8, %9 : vector<64x32xf32>
    %11 = math.exp %8 : vector<64x32xf32>
    %12 = math.log1p %11 : vector<64x32xf32>
    %13 = arith.select %10, %8, %12 : vector<64x32xi1>, vector<64x32xf32>
    %c0_10 = arith.constant 0 : index
    %c0_11 = arith.constant 0 : index
    %14 = vector.load %arg9[%c0_10, %c0_11] : memref<64x32xf32, #tpu.memory_space<vmem>>, vector<64x32xf32>
    tpu.vector_store %arg9[%c0_10, %c0_11], %13 {strides = array<i32>} : memref<64x32xf32, #tpu.memory_space<vmem>>, vector<64x32xf32>,
    %c0_12 = arith.constant 0 : index
    %c0_13 = arith.constant 0 : index
    %c0_14 = arith.constant 0 : index
    %15 = vector.load %arg6[%c0_12, %c0_13, %c0_14] : memref<1x8x32xf32, #tpu.memory_space<vmem>>, vector<1x8x32xf32>
    %16 = vector.shape_cast %15 : vector<1x8x32xf32> to vector<8x32xf32>
    %c0_15 = arith.constant 0 : index
    %c0_16 = arith.constant 0 : index
    %c0_17 = arith.constant 0 : index
    %17 = vector.load %arg4[%c0_15, %c0_16, %c0_17] : memref<1x16x32xf32, #tpu.memory_space<vmem>>, vector<1x16x32xf32>
    %18 = vector.shape_cast %17 : vector<1x16x32xf32> to vector<16x32xf32>
    %c0_18 = arith.constant 0 : index
    %c0_19 = arith.constant 0 : index
    %c0_20 = arith.constant 0 : index
    %19 = vector.load %arg7[%c0_18, %c0_19, %c0_20] : memref<1x1x32xf32, #tpu.memory_space<vmem>>, vector<1x1x32xf32>
    %20 = vector.shape_cast %19 : vector<1x1x32xf32> to vector<1x32xf32>
    %cst_21 = arith.constant 0.000000e+00 : f32
    %21 = vector.broadcast %cst_21 : f32 to vector<8x32xf32>
    %c0_i32 = arith.constant 0 : i32
    %c4_i32 = arith.constant 4 : i32
    %22 = arith.addi %c0_i32, %c4_i32 : i32
    %c1_i32 = arith.constant 1 : i32
    %23 = scf.for %arg10 = %c0_i32 to %22 step %c1_i32 iter_args(%arg11 = %21) -> (vector<8x32xf32>)  : i32 {
      %c16_i32 = arith.constant 16 : i32
      %24 = arith.muli %arg10, %c16_i32 : i32
      %25 = tpu.assume_multiple %24, 16 : i32
      %c0_23 = arith.constant 0 : index
      %c0_24 = arith.constant 0 : index
      %26 = arith.index_cast %25 : i32 to index
      %c0_25 = arith.constant 0 : index
      %27 = vector.load %arg2[%c0_23, %c0_24, %26, %c0_25] : memref<1x1x64x32xf32, #tpu.memory_space<vmem>>, vector<1x1x16x32xf32>
      %28 = vector.shape_cast %27 : vector<1x1x16x32xf32> to vector<16x32xf32>
      %29 = arith.index_cast %25 : i32 to index
      %c0_26 = arith.constant 0 : index
      %30 = vector.load %arg9[%29, %c0_26] : memref<64x32xf32, #tpu.memory_space<vmem>>, vector<16x32xf32>
      %31 = arith.mulf %30, %28 : vector<16x32xf32>
      "tpu.trace_start"() <{level = 10 : i32, message = "nd,td->nt"}> : () -> ()
      %cst_27 = arith.constant dense<0.000000e+00> : vector<16x16xf32>
      %32 = tpu.matmul %18, %28, %cst_27 {dimension_numbers = #tpu.dot_dimension_numbers<[1], [1], [0], [0], [0, 0, 1, 0], [], []>} : vector<16x32xf32>, vector<16x32xf32>, vector<16x16xf32> -> vector<16x16xf32>
      "tpu.trace_stop"() : () -> ()
      %33 = vector.extract_strided_slice %30 {offsets = [0, 0], sizes = [1, 32], strides = [1, 1]} : vector<16x32xf32> to vector<1x32xf32>
      %34 = vector.extract_strided_slice %31 {offsets = [0, 0], sizes = [1, 32], strides = [1, 1]} : vector<16x32xf32> to vector<1x32xf32>
      %35 = vector.extract_strided_slice %32 {offsets = [0, 0], sizes = [8, 1], strides = [1, 1]} : vector<16x16xf32> to vector<8x1xf32>
      %36 = vector.extract_strided_slice %32 {offsets = [8, 0], sizes = [8, 1], strides = [1, 1]} : vector<16x16xf32> to vector<8x1xf32>
      %37 = vector.broadcast %33 : vector<1x32xf32> to vector<8x32xf32>
      %38 = arith.mulf %37, %16 : vector<8x32xf32>
      %39 = math.exp %38 : vector<8x32xf32>
      %40 = arith.mulf %39, %arg11 : vector<8x32xf32>
      %41 = vector.broadcast %35 : vector<8x1xf32> to vector<8x32xf32>
      %42 = vector.broadcast %34 : vector<1x32xf32> to vector<8x32xf32>
      %43 = arith.mulf %41, %42 : vector<8x32xf32>
      %44 = arith.addf %40, %43 : vector<8x32xf32>
      %45 = vector.broadcast %36 : vector<8x1xf32> to vector<8x32xf32>
      %46 = arith.mulf %44, %45 : vector<8x32xf32>
      %cst_28 = arith.constant dense<0.000000e+00> : vector<32xf32>
      %47 = vector.multi_reduction <add>, %46, %cst_28 [0] : vector<8x32xf32> to vector<32xf32>
      %48 = vector.shape_cast %47 : vector<32xf32> to vector<1x32xf32>
      %49 = vector.extract_strided_slice %30 {offsets = [1, 0], sizes = [1, 32], strides = [1, 1]} : vector<16x32xf32> to vector<1x32xf32>
      %50 = vector.extract_strided_slice %31 {offsets = [1, 0], sizes = [1, 32], strides = [1, 1]} : vector<16x32xf32> to vector<1x32xf32>
      %51 = vector.extract_strided_slice %32 {offsets = [0, 1], sizes = [8, 1], strides = [1, 1]} : vector<16x16xf32> to vector<8x1xf32>
      %52 = vector.extract_strided_slice %32 {offsets = [8, 1], sizes = [8, 1], strides = [1, 1]} : vector<16x16xf32> to vector<8x1xf32>
      %53 = vector.broadcast %49 : vector<1x32xf32> to vector<8x32xf32>
      %54 = arith.mulf %53, %16 : vector<8x32xf32>
      %55 = math.exp %54 : vector<8x32xf32>
      %56 = arith.mulf %55, %44 : vector<8x32xf32>
      %57 = vector.broadcast %51 : vector<8x1xf32> to vector<8x32xf32>
      %58 = vector.broadcast %50 : vector<1x32xf32> to vector<8x32xf32>
      %59 = arith.mulf %57, %58 : vector<8x32xf32>
      %60 = arith.addf %56, %59 : vector<8x32xf32>
      %61 = vector.broadcast %52 : vector<8x1xf32> to vector<8x32xf32>
      %62 = arith.mulf %60, %61 : vector<8x32xf32>
      %cst_29 = arith.constant dense<0.000000e+00> : vector<32xf32>
      %63 = vector.multi_reduction <add>, %62, %cst_29 [0] : vector<8x32xf32> to vector<32xf32>
      %64 = vector.shape_cast %63 : vector<32xf32> to vector<1x32xf32>
      %65 = vector.extract_strided_slice %30 {offsets = [2, 0], sizes = [1, 32], strides = [1, 1]} : vector<16x32xf32> to vector<1x32xf32>
      %66 = vector.extract_strided_slice %31 {offsets = [2, 0], sizes = [1, 32], strides = [1, 1]} : vector<16x32xf32> to vector<1x32xf32>
      %67 = vector.extract_strided_slice %32 {offsets = [0, 2], sizes = [8, 1], strides = [1, 1]} : vector<16x16xf32> to vector<8x1xf32>
      %68 = vector.extract_strided_slice %32 {offsets = [8, 2], sizes = [8, 1], strides = [1, 1]} : vector<16x16xf32> to vector<8x1xf32>
      %69 = vector.broadcast %65 : vector<1x32xf32> to vector<8x32xf32>
      %70 = arith.mulf %69, %16 : vector<8x32xf32>
      %71 = math.exp %70 : vector<8x32xf32>
      %72 = arith.mulf %71, %60 : vector<8x32xf32>
      %73 = vector.broadcast %67 : vector<8x1xf32> to vector<8x32xf32>
      %74 = vector.broadcast %66 : vector<1x32xf32> to vector<8x32xf32>
      %75 = arith.mulf %73, %74 : vector<8x32xf32>
      %76 = arith.addf %72, %75 : vector<8x32xf32>
      %77 = vector.broadcast %68 : vector<8x1xf32> to vector<8x32xf32>
      %78 = arith.mulf %76, %77 : vector<8x32xf32>
      %cst_30 = arith.constant dense<0.000000e+00> : vector<32xf32>
      %79 = vector.multi_reduction <add>, %78, %cst_30 [0] : vector<8x32xf32> to vector<32xf32>
      %80 = vector.shape_cast %79 : vector<32xf32> to vector<1x32xf32>
      %81 = vector.extract_strided_slice %30 {offsets = [3, 0], sizes = [1, 32], strides = [1, 1]} : vector<16x32xf32> to vector<1x32xf32>
      %82 = vector.extract_strided_slice %31 {offsets = [3, 0], sizes = [1, 32], strides = [1, 1]} : vector<16x32xf32> to vector<1x32xf32>
      %83 = vector.extract_strided_slice %32 {offsets = [0, 3], sizes = [8, 1], strides = [1, 1]} : vector<16x16xf32> to vector<8x1xf32>
      %84 = vector.extract_strided_slice %32 {offsets = [8, 3], sizes = [8, 1], strides = [1, 1]} : vector<16x16xf32> to vector<8x1xf32>
      %85 = vector.broadcast %81 : vector<1x32xf32> to vector<8x32xf32>
      %86 = arith.mulf %85, %16 : vector<8x32xf32>
      %87 = math.exp %86 : vector<8x32xf32>
      %88 = arith.mulf %87, %76 : vector<8x32xf32>
      %89 = vector.broadcast %83 : vector<8x1xf32> to vector<8x32xf32>
      %90 = vector.broadcast %82 : vector<1x32xf32> to vector<8x32xf32>
      %91 = arith.mulf %89, %90 : vector<8x32xf32>
      %92 = arith.addf %88, %91 : vector<8x32xf32>
      %93 = vector.broadcast %84 : vector<8x1xf32> to vector<8x32xf32>
      %94 = arith.mulf %92, %93 : vector<8x32xf32>
      %cst_31 = arith.constant dense<0.000000e+00> : vector<32xf32>
      %95 = vector.multi_reduction <add>, %94, %cst_31 [0] : vector<8x32xf32> to vector<32xf32>
      %96 = vector.shape_cast %95 : vector<32xf32> to vector<1x32xf32>
      %97 = vector.extract_strided_slice %30 {offsets = [4, 0], sizes = [1, 32], strides = [1, 1]} : vector<16x32xf32> to vector<1x32xf32>
      %98 = vector.extract_strided_slice %31 {offsets = [4, 0], sizes = [1, 32], strides = [1, 1]} : vector<16x32xf32> to vector<1x32xf32>
      %99 = vector.extract_strided_slice %32 {offsets = [0, 4], sizes = [8, 1], strides = [1, 1]} : vector<16x16xf32> to vector<8x1xf32>
      %100 = vector.extract_strided_slice %32 {offsets = [8, 4], sizes = [8, 1], strides = [1, 1]} : vector<16x16xf32> to vector<8x1xf32>
      %101 = vector.broadcast %97 : vector<1x32xf32> to vector<8x32xf32>
      %102 = arith.mulf %101, %16 : vector<8x32xf32>
      %103 = math.exp %102 : vector<8x32xf32>
      %104 = arith.mulf %103, %92 : vector<8x32xf32>
      %105 = vector.broadcast %99 : vector<8x1xf32> to vector<8x32xf32>
      %106 = vector.broadcast %98 : vector<1x32xf32> to vector<8x32xf32>
      %107 = arith.mulf %105, %106 : vector<8x32xf32>
      %108 = arith.addf %104, %107 : vector<8x32xf32>
      %109 = vector.broadcast %100 : vector<8x1xf32> to vector<8x32xf32>
      %110 = arith.mulf %108, %109 : vector<8x32xf32>
      %cst_32 = arith.constant dense<0.000000e+00> : vector<32xf32>
      %111 = vector.multi_reduction <add>, %110, %cst_32 [0] : vector<8x32xf32> to vector<32xf32>
      %112 = vector.shape_cast %111 : vector<32xf32> to vector<1x32xf32>
      %113 = vector.extract_strided_slice %30 {offsets = [5, 0], sizes = [1, 32], strides = [1, 1]} : vector<16x32xf32> to vector<1x32xf32>
      %114 = vector.extract_strided_slice %31 {offsets = [5, 0], sizes = [1, 32], strides = [1, 1]} : vector<16x32xf32> to vector<1x32xf32>
      %115 = vector.extract_strided_slice %32 {offsets = [0, 5], sizes = [8, 1], strides = [1, 1]} : vector<16x16xf32> to vector<8x1xf32>
      %116 = vector.extract_strided_slice %32 {offsets = [8, 5], sizes = [8, 1], strides = [1, 1]} : vector<16x16xf32> to vector<8x1xf32>
      %117 = vector.broadcast %113 : vector<1x32xf32> to vector<8x32xf32>
      %118 = arith.mulf %117, %16 : vector<8x32xf32>
      %119 = math.exp %118 : vector<8x32xf32>
      %120 = arith.mulf %119, %108 : vector<8x32xf32>
      %121 = vector.broadcast %115 : vector<8x1xf32> to vector<8x32xf32>
      %122 = vector.broadcast %114 : vector<1x32xf32> to vector<8x32xf32>
      %123 = arith.mulf %121, %122 : vector<8x32xf32>
      %124 = arith.addf %120, %123 : vector<8x32xf32>
      %125 = vector.broadcast %116 : vector<8x1xf32> to vector<8x32xf32>
      %126 = arith.mulf %124, %125 : vector<8x32xf32>
      %cst_33 = arith.constant dense<0.000000e+00> : vector<32xf32>
      %127 = vector.multi_reduction <add>, %126, %cst_33 [0] : vector<8x32xf32> to vector<32xf32>
      %128 = vector.shape_cast %127 : vector<32xf32> to vector<1x32xf32>
      %129 = vector.extract_strided_slice %30 {offsets = [6, 0], sizes = [1, 32], strides = [1, 1]} : vector<16x32xf32> to vector<1x32xf32>
      %130 = vector.extract_strided_slice %31 {offsets = [6, 0], sizes = [1, 32], strides = [1, 1]} : vector<16x32xf32> to vector<1x32xf32>
      %131 = vector.extract_strided_slice %32 {offsets = [0, 6], sizes = [8, 1], strides = [1, 1]} : vector<16x16xf32> to vector<8x1xf32>
      %132 = vector.extract_strided_slice %32 {offsets = [8, 6], sizes = [8, 1], strides = [1, 1]} : vector<16x16xf32> to vector<8x1xf32>
      %133 = vector.broadcast %129 : vector<1x32xf32> to vector<8x32xf32>
      %134 = arith.mulf %133, %16 : vector<8x32xf32>
      %135 = math.exp %134 : vector<8x32xf32>
      %136 = arith.mulf %135, %124 : vector<8x32xf32>
      %137 = vector.broadcast %131 : vector<8x1xf32> to vector<8x32xf32>
      %138 = vector.broadcast %130 : vector<1x32xf32> to vector<8x32xf32>
      %139 = arith.mulf %137, %138 : vector<8x32xf32>
      %140 = arith.addf %136, %139 : vector<8x32xf32>
      %141 = vector.broadcast %132 : vector<8x1xf32> to vector<8x32xf32>
      %142 = arith.mulf %140, %141 : vector<8x32xf32>
      %cst_34 = arith.constant dense<0.000000e+00> : vector<32xf32>
      %143 = vector.multi_reduction <add>, %142, %cst_34 [0] : vector<8x32xf32> to vector<32xf32>
      %144 = vector.shape_cast %143 : vector<32xf32> to vector<1x32xf32>
      %145 = vector.extract_strided_slice %30 {offsets = [7, 0], sizes = [1, 32], strides = [1, 1]} : vector<16x32xf32> to vector<1x32xf32>
      %146 = vector.extract_strided_slice %31 {offsets = [7, 0], sizes = [1, 32], strides = [1, 1]} : vector<16x32xf32> to vector<1x32xf32>
      %147 = vector.extract_strided_slice %32 {offsets = [0, 7], sizes = [8, 1], strides = [1, 1]} : vector<16x16xf32> to vector<8x1xf32>
      %148 = vector.extract_strided_slice %32 {offsets = [8, 7], sizes = [8, 1], strides = [1, 1]} : vector<16x16xf32> to vector<8x1xf32>
      %149 = vector.broadcast %145 : vector<1x32xf32> to vector<8x32xf32>
      %150 = arith.mulf %149, %16 : vector<8x32xf32>
      %151 = math.exp %150 : vector<8x32xf32>
      %152 = arith.mulf %151, %140 : vector<8x32xf32>
      %153 = vector.broadcast %147 : vector<8x1xf32> to vector<8x32xf32>
      %154 = vector.broadcast %146 : vector<1x32xf32> to vector<8x32xf32>
      %155 = arith.mulf %153, %154 : vector<8x32xf32>
      %156 = arith.addf %152, %155 : vector<8x32xf32>
      %157 = vector.broadcast %148 : vector<8x1xf32> to vector<8x32xf32>
      %158 = arith.mulf %156, %157 : vector<8x32xf32>
      %cst_35 = arith.constant dense<0.000000e+00> : vector<32xf32>
      %159 = vector.multi_reduction <add>, %158, %cst_35 [0] : vector<8x32xf32> to vector<32xf32>
      %160 = vector.shape_cast %159 : vector<32xf32> to vector<1x32xf32>
      %161 = vector.extract_strided_slice %30 {offsets = [8, 0], sizes = [1, 32], strides = [1, 1]} : vector<16x32xf32> to vector<1x32xf32>
      %162 = vector.extract_strided_slice %31 {offsets = [8, 0], sizes = [1, 32], strides = [1, 1]} : vector<16x32xf32> to vector<1x32xf32>
      %163 = vector.extract_strided_slice %32 {offsets = [0, 8], sizes = [8, 1], strides = [1, 1]} : vector<16x16xf32> to vector<8x1xf32>
      %164 = vector.extract_strided_slice %32 {offsets = [8, 8], sizes = [8, 1], strides = [1, 1]} : vector<16x16xf32> to vector<8x1xf32>
      %165 = vector.broadcast %161 : vector<1x32xf32> to vector<8x32xf32>
      %166 = arith.mulf %165, %16 : vector<8x32xf32>
      %167 = math.exp %166 : vector<8x32xf32>
      %168 = arith.mulf %167, %156 : vector<8x32xf32>
      %169 = vector.broadcast %163 : vector<8x1xf32> to vector<8x32xf32>
      %170 = vector.broadcast %162 : vector<1x32xf32> to vector<8x32xf32>
      %171 = arith.mulf %169, %170 : vector<8x32xf32>
      %172 = arith.addf %168, %171 : vector<8x32xf32>
      %173 = vector.broadcast %164 : vector<8x1xf32> to vector<8x32xf32>
      %174 = arith.mulf %172, %173 : vector<8x32xf32>
      %cst_36 = arith.constant dense<0.000000e+00> : vector<32xf32>
      %175 = vector.multi_reduction <add>, %174, %cst_36 [0] : vector<8x32xf32> to vector<32xf32>
      %176 = vector.shape_cast %175 : vector<32xf32> to vector<1x32xf32>
      %177 = vector.extract_strided_slice %30 {offsets = [9, 0], sizes = [1, 32], strides = [1, 1]} : vector<16x32xf32> to vector<1x32xf32>
      %178 = vector.extract_strided_slice %31 {offsets = [9, 0], sizes = [1, 32], strides = [1, 1]} : vector<16x32xf32> to vector<1x32xf32>
      %179 = vector.extract_strided_slice %32 {offsets = [0, 9], sizes = [8, 1], strides = [1, 1]} : vector<16x16xf32> to vector<8x1xf32>
      %180 = vector.extract_strided_slice %32 {offsets = [8, 9], sizes = [8, 1], strides = [1, 1]} : vector<16x16xf32> to vector<8x1xf32>
      %181 = vector.broadcast %177 : vector<1x32xf32> to vector<8x32xf32>
      %182 = arith.mulf %181, %16 : vector<8x32xf32>
      %183 = math.exp %182 : vector<8x32xf32>
      %184 = arith.mulf %183, %172 : vector<8x32xf32>
      %185 = vector.broadcast %179 : vector<8x1xf32> to vector<8x32xf32>
      %186 = vector.broadcast %178 : vector<1x32xf32> to vector<8x32xf32>
      %187 = arith.mulf %185, %186 : vector<8x32xf32>
      %188 = arith.addf %184, %187 : vector<8x32xf32>
      %189 = vector.broadcast %180 : vector<8x1xf32> to vector<8x32xf32>
      %190 = arith.mulf %188, %189 : vector<8x32xf32>
      %cst_37 = arith.constant dense<0.000000e+00> : vector<32xf32>
      %191 = vector.multi_reduction <add>, %190, %cst_37 [0] : vector<8x32xf32> to vector<32xf32>
      %192 = vector.shape_cast %191 : vector<32xf32> to vector<1x32xf32>
      %193 = vector.extract_strided_slice %30 {offsets = [10, 0], sizes = [1, 32], strides = [1, 1]} : vector<16x32xf32> to vector<1x32xf32>
      %194 = vector.extract_strided_slice %31 {offsets = [10, 0], sizes = [1, 32], strides = [1, 1]} : vector<16x32xf32> to vector<1x32xf32>
      %195 = vector.extract_strided_slice %32 {offsets = [0, 10], sizes = [8, 1], strides = [1, 1]} : vector<16x16xf32> to vector<8x1xf32>
      %196 = vector.extract_strided_slice %32 {offsets = [8, 10], sizes = [8, 1], strides = [1, 1]} : vector<16x16xf32> to vector<8x1xf32>
      %197 = vector.broadcast %193 : vector<1x32xf32> to vector<8x32xf32>
      %198 = arith.mulf %197, %16 : vector<8x32xf32>
      %199 = math.exp %198 : vector<8x32xf32>
      %200 = arith.mulf %199, %188 : vector<8x32xf32>
      %201 = vector.broadcast %195 : vector<8x1xf32> to vector<8x32xf32>
      %202 = vector.broadcast %194 : vector<1x32xf32> to vector<8x32xf32>
      %203 = arith.mulf %201, %202 : vector<8x32xf32>
      %204 = arith.addf %200, %203 : vector<8x32xf32>
      %205 = vector.broadcast %196 : vector<8x1xf32> to vector<8x32xf32>
      %206 = arith.mulf %204, %205 : vector<8x32xf32>
      %cst_38 = arith.constant dense<0.000000e+00> : vector<32xf32>
      %207 = vector.multi_reduction <add>, %206, %cst_38 [0] : vector<8x32xf32> to vector<32xf32>
      %208 = vector.shape_cast %207 : vector<32xf32> to vector<1x32xf32>
      %209 = vector.extract_strided_slice %30 {offsets = [11, 0], sizes = [1, 32], strides = [1, 1]} : vector<16x32xf32> to vector<1x32xf32>
      %210 = vector.extract_strided_slice %31 {offsets = [11, 0], sizes = [1, 32], strides = [1, 1]} : vector<16x32xf32> to vector<1x32xf32>
      %211 = vector.extract_strided_slice %32 {offsets = [0, 11], sizes = [8, 1], strides = [1, 1]} : vector<16x16xf32> to vector<8x1xf32>
      %212 = vector.extract_strided_slice %32 {offsets = [8, 11], sizes = [8, 1], strides = [1, 1]} : vector<16x16xf32> to vector<8x1xf32>
      %213 = vector.broadcast %209 : vector<1x32xf32> to vector<8x32xf32>
      %214 = arith.mulf %213, %16 : vector<8x32xf32>
      %215 = math.exp %214 : vector<8x32xf32>
      %216 = arith.mulf %215, %204 : vector<8x32xf32>
      %217 = vector.broadcast %211 : vector<8x1xf32> to vector<8x32xf32>
      %218 = vector.broadcast %210 : vector<1x32xf32> to vector<8x32xf32>
      %219 = arith.mulf %217, %218 : vector<8x32xf32>
      %220 = arith.addf %216, %219 : vector<8x32xf32>
      %221 = vector.broadcast %212 : vector<8x1xf32> to vector<8x32xf32>
      %222 = arith.mulf %220, %221 : vector<8x32xf32>
      %cst_39 = arith.constant dense<0.000000e+00> : vector<32xf32>
      %223 = vector.multi_reduction <add>, %222, %cst_39 [0] : vector<8x32xf32> to vector<32xf32>
      %224 = vector.shape_cast %223 : vector<32xf32> to vector<1x32xf32>
      %225 = vector.extract_strided_slice %30 {offsets = [12, 0], sizes = [1, 32], strides = [1, 1]} : vector<16x32xf32> to vector<1x32xf32>
      %226 = vector.extract_strided_slice %31 {offsets = [12, 0], sizes = [1, 32], strides = [1, 1]} : vector<16x32xf32> to vector<1x32xf32>
      %227 = vector.extract_strided_slice %32 {offsets = [0, 12], sizes = [8, 1], strides = [1, 1]} : vector<16x16xf32> to vector<8x1xf32>
      %228 = vector.extract_strided_slice %32 {offsets = [8, 12], sizes = [8, 1], strides = [1, 1]} : vector<16x16xf32> to vector<8x1xf32>
      %229 = vector.broadcast %225 : vector<1x32xf32> to vector<8x32xf32>
      %230 = arith.mulf %229, %16 : vector<8x32xf32>
      %231 = math.exp %230 : vector<8x32xf32>
      %232 = arith.mulf %231, %220 : vector<8x32xf32>
      %233 = vector.broadcast %227 : vector<8x1xf32> to vector<8x32xf32>
      %234 = vector.broadcast %226 : vector<1x32xf32> to vector<8x32xf32>
      %235 = arith.mulf %233, %234 : vector<8x32xf32>
      %236 = arith.addf %232, %235 : vector<8x32xf32>
      %237 = vector.broadcast %228 : vector<8x1xf32> to vector<8x32xf32>
      %238 = arith.mulf %236, %237 : vector<8x32xf32>
      %cst_40 = arith.constant dense<0.000000e+00> : vector<32xf32>
      %239 = vector.multi_reduction <add>, %238, %cst_40 [0] : vector<8x32xf32> to vector<32xf32>
      %240 = vector.shape_cast %239 : vector<32xf32> to vector<1x32xf32>
      %241 = vector.extract_strided_slice %30 {offsets = [13, 0], sizes = [1, 32], strides = [1, 1]} : vector<16x32xf32> to vector<1x32xf32>
      %242 = vector.extract_strided_slice %31 {offsets = [13, 0], sizes = [1, 32], strides = [1, 1]} : vector<16x32xf32> to vector<1x32xf32>
      %243 = vector.extract_strided_slice %32 {offsets = [0, 13], sizes = [8, 1], strides = [1, 1]} : vector<16x16xf32> to vector<8x1xf32>
      %244 = vector.extract_strided_slice %32 {offsets = [8, 13], sizes = [8, 1], strides = [1, 1]} : vector<16x16xf32> to vector<8x1xf32>
      %245 = vector.broadcast %241 : vector<1x32xf32> to vector<8x32xf32>
      %246 = arith.mulf %245, %16 : vector<8x32xf32>
      %247 = math.exp %246 : vector<8x32xf32>
      %248 = arith.mulf %247, %236 : vector<8x32xf32>
      %249 = vector.broadcast %243 : vector<8x1xf32> to vector<8x32xf32>
      %250 = vector.broadcast %242 : vector<1x32xf32> to vector<8x32xf32>
      %251 = arith.mulf %249, %250 : vector<8x32xf32>
      %252 = arith.addf %248, %251 : vector<8x32xf32>
      %253 = vector.broadcast %244 : vector<8x1xf32> to vector<8x32xf32>
      %254 = arith.mulf %252, %253 : vector<8x32xf32>
      %cst_41 = arith.constant dense<0.000000e+00> : vector<32xf32>
      %255 = vector.multi_reduction <add>, %254, %cst_41 [0] : vector<8x32xf32> to vector<32xf32>
      %256 = vector.shape_cast %255 : vector<32xf32> to vector<1x32xf32>
      %257 = vector.extract_strided_slice %30 {offsets = [14, 0], sizes = [1, 32], strides = [1, 1]} : vector<16x32xf32> to vector<1x32xf32>
      %258 = vector.extract_strided_slice %31 {offsets = [14, 0], sizes = [1, 32], strides = [1, 1]} : vector<16x32xf32> to vector<1x32xf32>
      %259 = vector.extract_strided_slice %32 {offsets = [0, 14], sizes = [8, 1], strides = [1, 1]} : vector<16x16xf32> to vector<8x1xf32>
      %260 = vector.extract_strided_slice %32 {offsets = [8, 14], sizes = [8, 1], strides = [1, 1]} : vector<16x16xf32> to vector<8x1xf32>
      %261 = vector.broadcast %257 : vector<1x32xf32> to vector<8x32xf32>
      %262 = arith.mulf %261, %16 : vector<8x32xf32>
      %263 = math.exp %262 : vector<8x32xf32>
      %264 = arith.mulf %263, %252 : vector<8x32xf32>
      %265 = vector.broadcast %259 : vector<8x1xf32> to vector<8x32xf32>
      %266 = vector.broadcast %258 : vector<1x32xf32> to vector<8x32xf32>
      %267 = arith.mulf %265, %266 : vector<8x32xf32>
      %268 = arith.addf %264, %267 : vector<8x32xf32>
      %269 = vector.broadcast %260 : vector<8x1xf32> to vector<8x32xf32>
      %270 = arith.mulf %268, %269 : vector<8x32xf32>
      %cst_42 = arith.constant dense<0.000000e+00> : vector<32xf32>
      %271 = vector.multi_reduction <add>, %270, %cst_42 [0] : vector<8x32xf32> to vector<32xf32>
      %272 = vector.shape_cast %271 : vector<32xf32> to vector<1x32xf32>
      %273 = vector.extract_strided_slice %30 {offsets = [15, 0], sizes = [1, 32], strides = [1, 1]} : vector<16x32xf32> to vector<1x32xf32>
      %274 = vector.extract_strided_slice %31 {offsets = [15, 0], sizes = [1, 32], strides = [1, 1]} : vector<16x32xf32> to vector<1x32xf32>
      %275 = vector.extract_strided_slice %32 {offsets = [0, 15], sizes = [8, 1], strides = [1, 1]} : vector<16x16xf32> to vector<8x1xf32>
      %276 = vector.extract_strided_slice %32 {offsets = [8, 15], sizes = [8, 1], strides = [1, 1]} : vector<16x16xf32> to vector<8x1xf32>
      %277 = vector.broadcast %273 : vector<1x32xf32> to vector<8x32xf32>
      %278 = arith.mulf %277, %16 : vector<8x32xf32>
      %279 = math.exp %278 : vector<8x32xf32>
      %280 = arith.mulf %279, %268 : vector<8x32xf32>
      %281 = vector.broadcast %275 : vector<8x1xf32> to vector<8x32xf32>
      %282 = vector.broadcast %274 : vector<1x32xf32> to vector<8x32xf32>
      %283 = arith.mulf %281, %282 : vector<8x32xf32>
      %284 = arith.addf %280, %283 : vector<8x32xf32>
      %285 = vector.broadcast %276 : vector<8x1xf32> to vector<8x32xf32>
      %286 = arith.mulf %284, %285 : vector<8x32xf32>
      %cst_43 = arith.constant dense<0.000000e+00> : vector<32xf32>
      %287 = vector.multi_reduction <add>, %286, %cst_43 [0] : vector<8x32xf32> to vector<32xf32>
      %288 = vector.shape_cast %287 : vector<32xf32> to vector<1x32xf32>
      %289 = tpu.concatenate %48, %64, %80, %96, %112, %128, %144, %160, %176, %192, %208, %224, %240, %256, %272, %288 in 0 : vector<1x32xf32>, vector<1x32xf32>, vector<1x32xf32>, vector<1x32xf32>, vector<1x32xf32>, vector<1x32xf32>, vector<1x32xf32>, vector<1x32xf32>, vector<1x32xf32>, vector<1x32xf32>, vector<1x32xf32>, vector<1x32xf32>, vector<1x32xf32>, vector<1x32xf32>, vector<1x32xf32>, vector<1x32xf32> -> vector<16x32xf32>
      %290 = vector.broadcast %20 : vector<1x32xf32> to vector<16x32xf32>
      %291 = arith.mulf %28, %290 : vector<16x32xf32>
      %292 = arith.addf %289, %291 : vector<16x32xf32>
      %c0_44 = arith.constant 0 : index
      %c0_45 = arith.constant 0 : index
      %293 = arith.index_cast %25 : i32 to index
      %c0_46 = arith.constant 0 : index
      %294 = vector.load %arg8[%c0_44, %c0_45, %293, %c0_46] : memref<1x1x64x32xf32, #tpu.memory_space<vmem>>, vector<1x1x16x32xf32>
      %295 = vector.shape_cast %294 : vector<1x1x16x32xf32> to vector<16x32xf32>
      %296 = vector.shape_cast %292 : vector<16x32xf32> to vector<1x1x16x32xf32>
      tpu.vector_store %arg8[%c0_44, %c0_45, %293, %c0_46], %296 {strides = array<i32>} : memref<1x1x64x32xf32, #tpu.memory_space<vmem>>, vector<1x1x16x32xf32>,
      scf.yield %284 : vector<8x32xf32>
    }
    %c4_i32_22 = arith.constant 4 : i32
    return
  }
  func.func @transform_0(%arg0: i32, %arg1: i32) -> (i32, i32, i32, i32) {
    %c0_i32 = arith.constant 0 : i32
    %c0_i32_0 = arith.constant 0 : i32
    %c0_i32_1 = arith.constant 0 : i32
    return %arg1, %arg0, %c0_i32, %c0_i32_0 : i32, i32, i32, i32
  }
  func.func @transform_1(%arg0: i32, %arg1: i32) -> (i32, i32, i32) {
    %c0_i32 = arith.constant 0 : i32
    %c0_i32_0 = arith.constant 0 : i32
    %c0_i32_1 = arith.constant 0 : i32
    return %arg0, %c0_i32, %c0_i32_0 : i32, i32, i32
  }
  func.func @transform_2(%arg0: i32, %arg1: i32) -> (i32, i32, i32) {
    %c0_i32 = arith.constant 0 : i32
    %c0_i32_0 = arith.constant 0 : i32
    %c0_i32_1 = arith.constant 0 : i32
    return %arg0, %c0_i32, %c0_i32_0 : i32, i32, i32
  }
  func.func @transform_3(%arg0: i32, %arg1: i32) -> (i32, i32, i32) {
    %c0_i32 = arith.constant 0 : i32
    %c0_i32_0 = arith.constant 0 : i32
    %c0_i32_1 = arith.constant 0 : i32
    return %arg0, %c0_i32, %c0_i32_0 : i32, i32, i32
  }
  func.func @transform_4(%arg0: i32, %arg1: i32) -> (i32, i32, i32) {
    %c0_i32 = arith.constant 0 : i32
    %c0_i32_0 = arith.constant 0 : i32
    %c0_i32_1 = arith.constant 0 : i32
    return %arg0, %c0_i32, %c0_i32_0 : i32, i32, i32
  }
  func.func @transform_5(%arg0: i32, %arg1: i32) -> (i32, i32, i32) {
    %c0_i32 = arith.constant 0 : i32
    %c0_i32_0 = arith.constant 0 : i32
    %c0_i32_1 = arith.constant 0 : i32
    return %arg0, %c0_i32, %c0_i32_0 : i32, i32, i32
  }
  func.func @transform_6(%arg0: i32, %arg1: i32) -> (i32, i32, i32, i32) {
    %c0_i32 = arith.constant 0 : i32
    %c0_i32_0 = arith.constant 0 : i32
    %c0_i32_1 = arith.constant 0 : i32
    return %arg1, %arg0, %c0_i32, %c0_i32_0 : i32, i32, i32, i32
  }
}

module attributes {stable_mosaic.version = 11 : i64} {
  func.func @ss2d_scan_kernel(%arg0: i32, %arg1: i32, %arg2: memref<1x1x64x32xf32, #tpu.memory_space<vmem>>, %arg3: memref<1x32x32xf32, #tpu.memory_space<vmem>>, %arg4: memref<1x16x32xf32, #tpu.memory_space<vmem>>, %arg5: memref<1x1x32xf32, #tpu.memory_space<vmem>>, %arg6: memref<1x8x32xf32, #tpu.memory_space<vmem>>, %arg7: memref<1x1x32xf32, #tpu.memory_space<vmem>>, %arg8: memref<1x1x64x32xf32, #tpu.memory_space<vmem>>, %arg9: memref<64x32xf32, #tpu.memory_space<vmem>>) attributes {dimension_semantics = [#tpu.dimension_semantics<parallel>, #tpu.dimension_semantics<parallel>], iteration_bounds = array<i64: 2, 2>, scalar_prefetch = 0 : i64, scratch_operands = 1 : i64, tpu.core_type = #tpu.core_type<tc>, window_params = [{transform_indices = @transform_0, window_bounds = array<i64: 1, 1, 64, 32>}, {transform_indices = @transform_1, window_bounds = array<i64: 1, 32, 32>}, {transform_indices = @transform_2, window_bounds = array<i64: 1, 16, 32>}, {transform_indices = @transform_3, window_bounds = array<i64: 1, 1, 32>}, {transform_indices = @transform_4, window_bounds = array<i64: 1, 8, 32>}, {transform_indices = @transform_5, window_bounds = array<i64: 1, 1, 32>}, {transform_indices = @transform_6, window_bounds = array<i64: 1, 1, 64, 32>}]} {
    %c0 = arith.constant 0 : index
    %c0_0 = arith.constant 0 : index
    %c0_1 = arith.constant 0 : index
    %c0_2 = arith.constant 0 : index
    %0 = vector.load %arg2[%c0, %c0_0, %c0_1, %c0_2] : memref<1x1x64x32xf32, #tpu.memory_space<vmem>>, vector<1x1x64x32xf32>
    %1 = vector.shape_cast %0 : vector<1x1x64x32xf32> to vector<64x32xf32>
    %c0_3 = arith.constant 0 : index
    %c0_4 = arith.constant 0 : index
    %c0_5 = arith.constant 0 : index
    %2 = vector.load %arg3[%c0_3, %c0_4, %c0_5] : memref<1x32x32xf32, #tpu.memory_space<vmem>>, vector<1x32x32xf32>
    %3 = vector.shape_cast %2 : vector<1x32x32xf32> to vector<32x32xf32>
    "tpu.trace_start"() <{level = 10 : i32, message = "lc,dc->ld"}> : () -> ()
    %cst = arith.constant dense<0.000000e+00> : vector<64x32xf32>
    %4 = tpu.matmul %1, %3, %cst {dimension_numbers = #tpu.dot_dimension_numbers<[1], [1], [0], [0], [0, 0, 1, 0], [], []>} : vector<64x32xf32>, vector<32x32xf32>, vector<64x32xf32> -> vector<64x32xf32>
    "tpu.trace_stop"() : () -> ()
    %c0_6 = arith.constant 0 : index
    %c0_7 = arith.constant 0 : index
    %c0_8 = arith.constant 0 : index
    %5 = vector.load %arg5[%c0_6, %c0_7, %c0_8] : memref<1x1x32xf32, #tpu.memory_space<vmem>>, vector<1x1x32xf32>
    %6 = vector.shape_cast %5 : vector<1x1x32xf32> to vector<1x32xf32>
    %7 = vector.broadcast %6 : vector<1x32xf32> to vector<64x32xf32>
    %8 = arith.addf %4, %7 : vector<64x32xf32>
    %cst_9 = arith.constant 2.000000e+01 : f32
    %9 = vector.broadcast %cst_9 : f32 to vector<64x32xf32>
    %10 = arith.cmpf ogt, %8, %9 : vector<64x32xf32>
    %11 = math.exp %8 : vector<64x32xf32>
    %12 = math.log1p %11 : vector<64x32xf32>
    %13 = arith.select %10, %8, %12 : vector<64x32xi1>, vector<64x32xf32>
    %c0_10 = arith.constant 0 : index
    %c0_11 = arith.constant 0 : index
    %14 = vector.load %arg9[%c0_10, %c0_11] : memref<64x32xf32, #tpu.memory_space<vmem>>, vector<64x32xf32>
    tpu.vector_store %arg9[%c0_10, %c0_11], %13 {strides = array<i32>} : memref<64x32xf32, #tpu.memory_space<vmem>>, vector<64x32xf32>,
    %c0_12 = arith.constant 0 : index
    %c0_13 = arith.constant 0 : index
    %c0_14 = arith.constant 0 : index
    %15 = vector.load %arg6[%c0_12, %c0_13, %c0_14] : memref<1x8x32xf32, #tpu.memory_space<vmem>>, vector<1x8x32xf32>
    %16 = vector.shape_cast %15 : vector<1x8x32xf32> to vector<8x32xf32>
    %c0_15 = arith.constant 0 : index
    %c0_16 = arith.constant 0 : index
    %c0_17 = arith.constant 0 : index
    %17 = vector.load %arg4[%c0_15, %c0_16, %c0_17] : memref<1x16x32xf32, #tpu.memory_space<vmem>>, vector<1x16x32xf32>
    %18 = vector.shape_cast %17 : vector<1x16x32xf32> to vector<16x32xf32>
    %c0_18 = arith.constant 0 : index
    %c0_19 = arith.constant 0 : index
    %c0_20 = arith.constant 0 : index
    %19 = vector.load %arg7[%c0_18, %c0_19, %c0_20] : memref<1x1x32xf32, #tpu.memory_space<vmem>>, vector<1x1x32xf32>
    %20 = vector.shape_cast %19 : vector<1x1x32xf32> to vector<1x32xf32>
    %cst_21 = arith.constant 0.000000e+00 : f32
    %21 = vector.broadcast %cst_21 : f32 to vector<8x32xf32>
    %c0_i32 = arith.constant 0 : i32
    %c4_i32 = arith.constant 4 : i32
    %22 = arith.addi %c0_i32, %c4_i32 : i32
    %c1_i32 = arith.constant 1 : i32
    %23 = scf.for %arg10 = %c0_i32 to %22 step %c1_i32 iter_args(%arg11 = %21) -> (vector<8x32xf32>)  : i32 {
      %c3_i32 = arith.constant 3 : i32
      %24 = arith.subi %c3_i32, %arg10 : i32
      %c16_i32 = arith.constant 16 : i32
      %25 = arith.muli %24, %c16_i32 : i32
      %26 = tpu.assume_multiple %25, 16 : i32
      %c0_23 = arith.constant 0 : index
      %c0_24 = arith.constant 0 : index
      %27 = arith.index_cast %26 : i32 to index
      %c0_25 = arith.constant 0 : index
      %28 = vector.load %arg2[%c0_23, %c0_24, %27, %c0_25] : memref<1x1x64x32xf32, #tpu.memory_space<vmem>>, vector<1x1x16x32xf32>
      %29 = vector.shape_cast %28 : vector<1x1x16x32xf32> to vector<16x32xf32>
      %30 = arith.index_cast %26 : i32 to index
      %c0_26 = arith.constant 0 : index
      %31 = vector.load %arg9[%30, %c0_26] : memref<64x32xf32, #tpu.memory_space<vmem>>, vector<16x32xf32>
      %32 = arith.mulf %31, %29 : vector<16x32xf32>
      "tpu.trace_start"() <{level = 10 : i32, message = "nd,td->nt"}> : () -> ()
      %cst_27 = arith.constant dense<0.000000e+00> : vector<16x16xf32>
      %33 = tpu.matmul %18, %29, %cst_27 {dimension_numbers = #tpu.dot_dimension_numbers<[1], [1], [0], [0], [0, 0, 1, 0], [], []>} : vector<16x32xf32>, vector<16x32xf32>, vector<16x16xf32> -> vector<16x16xf32>
      "tpu.trace_stop"() : () -> ()
      %34 = vector.extract_strided_slice %31 {offsets = [15, 0], sizes = [1, 32], strides = [1, 1]} : vector<16x32xf32> to vector<1x32xf32>
      %35 = vector.extract_strided_slice %32 {offsets = [15, 0], sizes = [1, 32], strides = [1, 1]} : vector<16x32xf32> to vector<1x32xf32>
      %36 = vector.extract_strided_slice %33 {offsets = [0, 15], sizes = [8, 1], strides = [1, 1]} : vector<16x16xf32> to vector<8x1xf32>
      %37 = vector.extract_strided_slice %33 {offsets = [8, 15], sizes = [8, 1], strides = [1, 1]} : vector<16x16xf32> to vector<8x1xf32>
      %38 = vector.broadcast %34 : vector<1x32xf32> to vector<8x32xf32>
      %39 = arith.mulf %38, %16 : vector<8x32xf32>
      %40 = math.exp %39 : vector<8x32xf32>
      %41 = arith.mulf %40, %arg11 : vector<8x32xf32>
      %42 = vector.broadcast %36 : vector<8x1xf32> to vector<8x32xf32>
      %43 = vector.broadcast %35 : vector<1x32xf32> to vector<8x32xf32>
      %44 = arith.mulf %42, %43 : vector<8x32xf32>
      %45 = arith.addf %41, %44 : vector<8x32xf32>
      %46 = vector.broadcast %37 : vector<8x1xf32> to vector<8x32xf32>
      %47 = arith.mulf %45, %46 : vector<8x32xf32>
      %cst_28 = arith.constant dense<0.000000e+00> : vector<32xf32>
      %48 = vector.multi_reduction <add>, %47, %cst_28 [0] : vector<8x32xf32> to vector<32xf32>
      %49 = vector.shape_cast %48 : vector<32xf32> to vector<1x32xf32>
      %50 = vector.extract_strided_slice %31 {offsets = [14, 0], sizes = [1, 32], strides = [1, 1]} : vector<16x32xf32> to vector<1x32xf32>
      %51 = vector.extract_strided_slice %32 {offsets = [14, 0], sizes = [1, 32], strides = [1, 1]} : vector<16x32xf32> to vector<1x32xf32>
      %52 = vector.extract_strided_slice %33 {offsets = [0, 14], sizes = [8, 1], strides = [1, 1]} : vector<16x16xf32> to vector<8x1xf32>
      %53 = vector.extract_strided_slice %33 {offsets = [8, 14], sizes = [8, 1], strides = [1, 1]} : vector<16x16xf32> to vector<8x1xf32>
      %54 = vector.broadcast %50 : vector<1x32xf32> to vector<8x32xf32>
      %55 = arith.mulf %54, %16 : vector<8x32xf32>
      %56 = math.exp %55 : vector<8x32xf32>
      %57 = arith.mulf %56, %45 : vector<8x32xf32>
      %58 = vector.broadcast %52 : vector<8x1xf32> to vector<8x32xf32>
      %59 = vector.broadcast %51 : vector<1x32xf32> to vector<8x32xf32>
      %60 = arith.mulf %58, %59 : vector<8x32xf32>
      %61 = arith.addf %57, %60 : vector<8x32xf32>
      %62 = vector.broadcast %53 : vector<8x1xf32> to vector<8x32xf32>
      %63 = arith.mulf %61, %62 : vector<8x32xf32>
      %cst_29 = arith.constant dense<0.000000e+00> : vector<32xf32>
      %64 = vector.multi_reduction <add>, %63, %cst_29 [0] : vector<8x32xf32> to vector<32xf32>
      %65 = vector.shape_cast %64 : vector<32xf32> to vector<1x32xf32>
      %66 = vector.extract_strided_slice %31 {offsets = [13, 0], sizes = [1, 32], strides = [1, 1]} : vector<16x32xf32> to vector<1x32xf32>
      %67 = vector.extract_strided_slice %32 {offsets = [13, 0], sizes = [1, 32], strides = [1, 1]} : vector<16x32xf32> to vector<1x32xf32>
      %68 = vector.extract_strided_slice %33 {offsets = [0, 13], sizes = [8, 1], strides = [1, 1]} : vector<16x16xf32> to vector<8x1xf32>
      %69 = vector.extract_strided_slice %33 {offsets = [8, 13], sizes = [8, 1], strides = [1, 1]} : vector<16x16xf32> to vector<8x1xf32>
      %70 = vector.broadcast %66 : vector<1x32xf32> to vector<8x32xf32>
      %71 = arith.mulf %70, %16 : vector<8x32xf32>
      %72 = math.exp %71 : vector<8x32xf32>
      %73 = arith.mulf %72, %61 : vector<8x32xf32>
      %74 = vector.broadcast %68 : vector<8x1xf32> to vector<8x32xf32>
      %75 = vector.broadcast %67 : vector<1x32xf32> to vector<8x32xf32>
      %76 = arith.mulf %74, %75 : vector<8x32xf32>
      %77 = arith.addf %73, %76 : vector<8x32xf32>
      %78 = vector.broadcast %69 : vector<8x1xf32> to vector<8x32xf32>
      %79 = arith.mulf %77, %78 : vector<8x32xf32>
      %cst_30 = arith.constant dense<0.000000e+00> : vector<32xf32>
      %80 = vector.multi_reduction <add>, %79, %cst_30 [0] : vector<8x32xf32> to vector<32xf32>
      %81 = vector.shape_cast %80 : vector<32xf32> to vector<1x32xf32>
      %82 = vector.extract_strided_slice %31 {offsets = [12, 0], sizes = [1, 32], strides = [1, 1]} : vector<16x32xf32> to vector<1x32xf32>
      %83 = vector.extract_strided_slice %32 {offsets = [12, 0], sizes = [1, 32], strides = [1, 1]} : vector<16x32xf32> to vector<1x32xf32>
      %84 = vector.extract_strided_slice %33 {offsets = [0, 12], sizes = [8, 1], strides = [1, 1]} : vector<16x16xf32> to vector<8x1xf32>
      %85 = vector.extract_strided_slice %33 {offsets = [8, 12], sizes = [8, 1], strides = [1, 1]} : vector<16x16xf32> to vector<8x1xf32>
      %86 = vector.broadcast %82 : vector<1x32xf32> to vector<8x32xf32>
      %87 = arith.mulf %86, %16 : vector<8x32xf32>
      %88 = math.exp %87 : vector<8x32xf32>
      %89 = arith.mulf %88, %77 : vector<8x32xf32>
      %90 = vector.broadcast %84 : vector<8x1xf32> to vector<8x32xf32>
      %91 = vector.broadcast %83 : vector<1x32xf32> to vector<8x32xf32>
      %92 = arith.mulf %90, %91 : vector<8x32xf32>
      %93 = arith.addf %89, %92 : vector<8x32xf32>
      %94 = vector.broadcast %85 : vector<8x1xf32> to vector<8x32xf32>
      %95 = arith.mulf %93, %94 : vector<8x32xf32>
      %cst_31 = arith.constant dense<0.000000e+00> : vector<32xf32>
      %96 = vector.multi_reduction <add>, %95, %cst_31 [0] : vector<8x32xf32> to vector<32xf32>
      %97 = vector.shape_cast %96 : vector<32xf32> to vector<1x32xf32>
      %98 = vector.extract_strided_slice %31 {offsets = [11, 0], sizes = [1, 32], strides = [1, 1]} : vector<16x32xf32> to vector<1x32xf32>
      %99 = vector.extract_strided_slice %32 {offsets = [11, 0], sizes = [1, 32], strides = [1, 1]} : vector<16x32xf32> to vector<1x32xf32>
      %100 = vector.extract_strided_slice %33 {offsets = [0, 11], sizes = [8, 1], strides = [1, 1]} : vector<16x16xf32> to vector<8x1xf32>
      %101 = vector.extract_strided_slice %33 {offsets = [8, 11], sizes = [8, 1], strides = [1, 1]} : vector<16x16xf32> to vector<8x1xf32>
      %102 = vector.broadcast %98 : vector<1x32xf32> to vector<8x32xf32>
      %103 = arith.mulf %102, %16 : vector<8x32xf32>
      %104 = math.exp %103 : vector<8x32xf32>
      %105 = arith.mulf %104, %93 : vector<8x32xf32>
      %106 = vector.broadcast %100 : vector<8x1xf32> to vector<8x32xf32>
      %107 = vector.broadcast %99 : vector<1x32xf32> to vector<8x32xf32>
      %108 = arith.mulf %106, %107 : vector<8x32xf32>
      %109 = arith.addf %105, %108 : vector<8x32xf32>
      %110 = vector.broadcast %101 : vector<8x1xf32> to vector<8x32xf32>
      %111 = arith.mulf %109, %110 : vector<8x32xf32>
      %cst_32 = arith.constant dense<0.000000e+00> : vector<32xf32>
      %112 = vector.multi_reduction <add>, %111, %cst_32 [0] : vector<8x32xf32> to vector<32xf32>
      %113 = vector.shape_cast %112 : vector<32xf32> to vector<1x32xf32>
      %114 = vector.extract_strided_slice %31 {offsets = [10, 0], sizes = [1, 32], strides = [1, 1]} : vector<16x32xf32> to vector<1x32xf32>
      %115 = vector.extract_strided_slice %32 {offsets = [10, 0], sizes = [1, 32], strides = [1, 1]} : vector<16x32xf32> to vector<1x32xf32>
      %116 = vector.extract_strided_slice %33 {offsets = [0, 10], sizes = [8, 1], strides = [1, 1]} : vector<16x16xf32> to vector<8x1xf32>
      %117 = vector.extract_strided_slice %33 {offsets = [8, 10], sizes = [8, 1], strides = [1, 1]} : vector<16x16xf32> to vector<8x1xf32>
      %118 = vector.broadcast %114 : vector<1x32xf32> to vector<8x32xf32>
      %119 = arith.mulf %118, %16 : vector<8x32xf32>
      %120 = math.exp %119 : vector<8x32xf32>
      %121 = arith.mulf %120, %109 : vector<8x32xf32>
      %122 = vector.broadcast %116 : vector<8x1xf32> to vector<8x32xf32>
      %123 = vector.broadcast %115 : vector<1x32xf32> to vector<8x32xf32>
      %124 = arith.mulf %122, %123 : vector<8x32xf32>
      %125 = arith.addf %121, %124 : vector<8x32xf32>
      %126 = vector.broadcast %117 : vector<8x1xf32> to vector<8x32xf32>
      %127 = arith.mulf %125, %126 : vector<8x32xf32>
      %cst_33 = arith.constant dense<0.000000e+00> : vector<32xf32>
      %128 = vector.multi_reduction <add>, %127, %cst_33 [0] : vector<8x32xf32> to vector<32xf32>
      %129 = vector.shape_cast %128 : vector<32xf32> to vector<1x32xf32>
      %130 = vector.extract_strided_slice %31 {offsets = [9, 0], sizes = [1, 32], strides = [1, 1]} : vector<16x32xf32> to vector<1x32xf32>
      %131 = vector.extract_strided_slice %32 {offsets = [9, 0], sizes = [1, 32], strides = [1, 1]} : vector<16x32xf32> to vector<1x32xf32>
      %132 = vector.extract_strided_slice %33 {offsets = [0, 9], sizes = [8, 1], strides = [1, 1]} : vector<16x16xf32> to vector<8x1xf32>
      %133 = vector.extract_strided_slice %33 {offsets = [8, 9], sizes = [8, 1], strides = [1, 1]} : vector<16x16xf32> to vector<8x1xf32>
      %134 = vector.broadcast %130 : vector<1x32xf32> to vector<8x32xf32>
      %135 = arith.mulf %134, %16 : vector<8x32xf32>
      %136 = math.exp %135 : vector<8x32xf32>
      %137 = arith.mulf %136, %125 : vector<8x32xf32>
      %138 = vector.broadcast %132 : vector<8x1xf32> to vector<8x32xf32>
      %139 = vector.broadcast %131 : vector<1x32xf32> to vector<8x32xf32>
      %140 = arith.mulf %138, %139 : vector<8x32xf32>
      %141 = arith.addf %137, %140 : vector<8x32xf32>
      %142 = vector.broadcast %133 : vector<8x1xf32> to vector<8x32xf32>
      %143 = arith.mulf %141, %142 : vector<8x32xf32>
      %cst_34 = arith.constant dense<0.000000e+00> : vector<32xf32>
      %144 = vector.multi_reduction <add>, %143, %cst_34 [0] : vector<8x32xf32> to vector<32xf32>
      %145 = vector.shape_cast %144 : vector<32xf32> to vector<1x32xf32>
      %146 = vector.extract_strided_slice %31 {offsets = [8, 0], sizes = [1, 32], strides = [1, 1]} : vector<16x32xf32> to vector<1x32xf32>
      %147 = vector.extract_strided_slice %32 {offsets = [8, 0], sizes = [1, 32], strides = [1, 1]} : vector<16x32xf32> to vector<1x32xf32>
      %148 = vector.extract_strided_slice %33 {offsets = [0, 8], sizes = [8, 1], strides = [1, 1]} : vector<16x16xf32> to vector<8x1xf32>
      %149 = vector.extract_strided_slice %33 {offsets = [8, 8], sizes = [8, 1], strides = [1, 1]} : vector<16x16xf32> to vector<8x1xf32>
      %150 = vector.broadcast %146 : vector<1x32xf32> to vector<8x32xf32>
      %151 = arith.mulf %150, %16 : vector<8x32xf32>
      %152 = math.exp %151 : vector<8x32xf32>
      %153 = arith.mulf %152, %141 : vector<8x32xf32>
      %154 = vector.broadcast %148 : vector<8x1xf32> to vector<8x32xf32>
      %155 = vector.broadcast %147 : vector<1x32xf32> to vector<8x32xf32>
      %156 = arith.mulf %154, %155 : vector<8x32xf32>
      %157 = arith.addf %153, %156 : vector<8x32xf32>
      %158 = vector.broadcast %149 : vector<8x1xf32> to vector<8x32xf32>
      %159 = arith.mulf %157, %158 : vector<8x32xf32>
      %cst_35 = arith.constant dense<0.000000e+00> : vector<32xf32>
      %160 = vector.multi_reduction <add>, %159, %cst_35 [0] : vector<8x32xf32> to vector<32xf32>
      %161 = vector.shape_cast %160 : vector<32xf32> to vector<1x32xf32>
      %162 = vector.extract_strided_slice %31 {offsets = [7, 0], sizes = [1, 32], strides = [1, 1]} : vector<16x32xf32> to vector<1x32xf32>
      %163 = vector.extract_strided_slice %32 {offsets = [7, 0], sizes = [1, 32], strides = [1, 1]} : vector<16x32xf32> to vector<1x32xf32>
      %164 = vector.extract_strided_slice %33 {offsets = [0, 7], sizes = [8, 1], strides = [1, 1]} : vector<16x16xf32> to vector<8x1xf32>
      %165 = vector.extract_strided_slice %33 {offsets = [8, 7], sizes = [8, 1], strides = [1, 1]} : vector<16x16xf32> to vector<8x1xf32>
      %166 = vector.broadcast %162 : vector<1x32xf32> to vector<8x32xf32>
      %167 = arith.mulf %166, %16 : vector<8x32xf32>
      %168 = math.exp %167 : vector<8x32xf32>
      %169 = arith.mulf %168, %157 : vector<8x32xf32>
      %170 = vector.broadcast %164 : vector<8x1xf32> to vector<8x32xf32>
      %171 = vector.broadcast %163 : vector<1x32xf32> to vector<8x32xf32>
      %172 = arith.mulf %170, %171 : vector<8x32xf32>
      %173 = arith.addf %169, %172 : vector<8x32xf32>
      %174 = vector.broadcast %165 : vector<8x1xf32> to vector<8x32xf32>
      %175 = arith.mulf %173, %174 : vector<8x32xf32>
      %cst_36 = arith.constant dense<0.000000e+00> : vector<32xf32>
      %176 = vector.multi_reduction <add>, %175, %cst_36 [0] : vector<8x32xf32> to vector<32xf32>
      %177 = vector.shape_cast %176 : vector<32xf32> to vector<1x32xf32>
      %178 = vector.extract_strided_slice %31 {offsets = [6, 0], sizes = [1, 32], strides = [1, 1]} : vector<16x32xf32> to vector<1x32xf32>
      %179 = vector.extract_strided_slice %32 {offsets = [6, 0], sizes = [1, 32], strides = [1, 1]} : vector<16x32xf32> to vector<1x32xf32>
      %180 = vector.extract_strided_slice %33 {offsets = [0, 6], sizes = [8, 1], strides = [1, 1]} : vector<16x16xf32> to vector<8x1xf32>
      %181 = vector.extract_strided_slice %33 {offsets = [8, 6], sizes = [8, 1], strides = [1, 1]} : vector<16x16xf32> to vector<8x1xf32>
      %182 = vector.broadcast %178 : vector<1x32xf32> to vector<8x32xf32>
      %183 = arith.mulf %182, %16 : vector<8x32xf32>
      %184 = math.exp %183 : vector<8x32xf32>
      %185 = arith.mulf %184, %173 : vector<8x32xf32>
      %186 = vector.broadcast %180 : vector<8x1xf32> to vector<8x32xf32>
      %187 = vector.broadcast %179 : vector<1x32xf32> to vector<8x32xf32>
      %188 = arith.mulf %186, %187 : vector<8x32xf32>
      %189 = arith.addf %185, %188 : vector<8x32xf32>
      %190 = vector.broadcast %181 : vector<8x1xf32> to vector<8x32xf32>
      %191 = arith.mulf %189, %190 : vector<8x32xf32>
      %cst_37 = arith.constant dense<0.000000e+00> : vector<32xf32>
      %192 = vector.multi_reduction <add>, %191, %cst_37 [0] : vector<8x32xf32> to vector<32xf32>
      %193 = vector.shape_cast %192 : vector<32xf32> to vector<1x32xf32>
      %194 = vector.extract_strided_slice %31 {offsets = [5, 0], sizes = [1, 32], strides = [1, 1]} : vector<16x32xf32> to vector<1x32xf32>
      %195 = vector.extract_strided_slice %32 {offsets = [5, 0], sizes = [1, 32], strides = [1, 1]} : vector<16x32xf32> to vector<1x32xf32>
      %196 = vector.extract_strided_slice %33 {offsets = [0, 5], sizes = [8, 1], strides = [1, 1]} : vector<16x16xf32> to vector<8x1xf32>
      %197 = vector.extract_strided_slice %33 {offsets = [8, 5], sizes = [8, 1], strides = [1, 1]} : vector<16x16xf32> to vector<8x1xf32>
      %198 = vector.broadcast %194 : vector<1x32xf32> to vector<8x32xf32>
      %199 = arith.mulf %198, %16 : vector<8x32xf32>
      %200 = math.exp %199 : vector<8x32xf32>
      %201 = arith.mulf %200, %189 : vector<8x32xf32>
      %202 = vector.broadcast %196 : vector<8x1xf32> to vector<8x32xf32>
      %203 = vector.broadcast %195 : vector<1x32xf32> to vector<8x32xf32>
      %204 = arith.mulf %202, %203 : vector<8x32xf32>
      %205 = arith.addf %201, %204 : vector<8x32xf32>
      %206 = vector.broadcast %197 : vector<8x1xf32> to vector<8x32xf32>
      %207 = arith.mulf %205, %206 : vector<8x32xf32>
      %cst_38 = arith.constant dense<0.000000e+00> : vector<32xf32>
      %208 = vector.multi_reduction <add>, %207, %cst_38 [0] : vector<8x32xf32> to vector<32xf32>
      %209 = vector.shape_cast %208 : vector<32xf32> to vector<1x32xf32>
      %210 = vector.extract_strided_slice %31 {offsets = [4, 0], sizes = [1, 32], strides = [1, 1]} : vector<16x32xf32> to vector<1x32xf32>
      %211 = vector.extract_strided_slice %32 {offsets = [4, 0], sizes = [1, 32], strides = [1, 1]} : vector<16x32xf32> to vector<1x32xf32>
      %212 = vector.extract_strided_slice %33 {offsets = [0, 4], sizes = [8, 1], strides = [1, 1]} : vector<16x16xf32> to vector<8x1xf32>
      %213 = vector.extract_strided_slice %33 {offsets = [8, 4], sizes = [8, 1], strides = [1, 1]} : vector<16x16xf32> to vector<8x1xf32>
      %214 = vector.broadcast %210 : vector<1x32xf32> to vector<8x32xf32>
      %215 = arith.mulf %214, %16 : vector<8x32xf32>
      %216 = math.exp %215 : vector<8x32xf32>
      %217 = arith.mulf %216, %205 : vector<8x32xf32>
      %218 = vector.broadcast %212 : vector<8x1xf32> to vector<8x32xf32>
      %219 = vector.broadcast %211 : vector<1x32xf32> to vector<8x32xf32>
      %220 = arith.mulf %218, %219 : vector<8x32xf32>
      %221 = arith.addf %217, %220 : vector<8x32xf32>
      %222 = vector.broadcast %213 : vector<8x1xf32> to vector<8x32xf32>
      %223 = arith.mulf %221, %222 : vector<8x32xf32>
      %cst_39 = arith.constant dense<0.000000e+00> : vector<32xf32>
      %224 = vector.multi_reduction <add>, %223, %cst_39 [0] : vector<8x32xf32> to vector<32xf32>
      %225 = vector.shape_cast %224 : vector<32xf32> to vector<1x32xf32>
      %226 = vector.extract_strided_slice %31 {offsets = [3, 0], sizes = [1, 32], strides = [1, 1]} : vector<16x32xf32> to vector<1x32xf32>
      %227 = vector.extract_strided_slice %32 {offsets = [3, 0], sizes = [1, 32], strides = [1, 1]} : vector<16x32xf32> to vector<1x32xf32>
      %228 = vector.extract_strided_slice %33 {offsets = [0, 3], sizes = [8, 1], strides = [1, 1]} : vector<16x16xf32> to vector<8x1xf32>
      %229 = vector.extract_strided_slice %33 {offsets = [8, 3], sizes = [8, 1], strides = [1, 1]} : vector<16x16xf32> to vector<8x1xf32>
      %230 = vector.broadcast %226 : vector<1x32xf32> to vector<8x32xf32>
      %231 = arith.mulf %230, %16 : vector<8x32xf32>
      %232 = math.exp %231 : vector<8x32xf32>
      %233 = arith.mulf %232, %221 : vector<8x32xf32>
      %234 = vector.broadcast %228 : vector<8x1xf32> to vector<8x32xf32>
      %235 = vector.broadcast %227 : vector<1x32xf32> to vector<8x32xf32>
      %236 = arith.mulf %234, %235 : vector<8x32xf32>
      %237 = arith.addf %233, %236 : vector<8x32xf32>
      %238 = vector.broadcast %229 : vector<8x1xf32> to vector<8x32xf32>
      %239 = arith.mulf %237, %238 : vector<8x32xf32>
      %cst_40 = arith.constant dense<0.000000e+00> : vector<32xf32>
      %240 = vector.multi_reduction <add>, %239, %cst_40 [0] : vector<8x32xf32> to vector<32xf32>
      %241 = vector.shape_cast %240 : vector<32xf32> to vector<1x32xf32>
      %242 = vector.extract_strided_slice %31 {offsets = [2, 0], sizes = [1, 32], strides = [1, 1]} : vector<16x32xf32> to vector<1x32xf32>
      %243 = vector.extract_strided_slice %32 {offsets = [2, 0], sizes = [1, 32], strides = [1, 1]} : vector<16x32xf32> to vector<1x32xf32>
      %244 = vector.extract_strided_slice %33 {offsets = [0, 2], sizes = [8, 1], strides = [1, 1]} : vector<16x16xf32> to vector<8x1xf32>
      %245 = vector.extract_strided_slice %33 {offsets = [8, 2], sizes = [8, 1], strides = [1, 1]} : vector<16x16xf32> to vector<8x1xf32>
      %246 = vector.broadcast %242 : vector<1x32xf32> to vector<8x32xf32>
      %247 = arith.mulf %246, %16 : vector<8x32xf32>
      %248 = math.exp %247 : vector<8x32xf32>
      %249 = arith.mulf %248, %237 : vector<8x32xf32>
      %250 = vector.broadcast %244 : vector<8x1xf32> to vector<8x32xf32>
      %251 = vector.broadcast %243 : vector<1x32xf32> to vector<8x32xf32>
      %252 = arith.mulf %250, %251 : vector<8x32xf32>
      %253 = arith.addf %249, %252 : vector<8x32xf32>
      %254 = vector.broadcast %245 : vector<8x1xf32> to vector<8x32xf32>
      %255 = arith.mulf %253, %254 : vector<8x32xf32>
      %cst_41 = arith.constant dense<0.000000e+00> : vector<32xf32>
      %256 = vector.multi_reduction <add>, %255, %cst_41 [0] : vector<8x32xf32> to vector<32xf32>
      %257 = vector.shape_cast %256 : vector<32xf32> to vector<1x32xf32>
      %258 = vector.extract_strided_slice %31 {offsets = [1, 0], sizes = [1, 32], strides = [1, 1]} : vector<16x32xf32> to vector<1x32xf32>
      %259 = vector.extract_strided_slice %32 {offsets = [1, 0], sizes = [1, 32], strides = [1, 1]} : vector<16x32xf32> to vector<1x32xf32>
      %260 = vector.extract_strided_slice %33 {offsets = [0, 1], sizes = [8, 1], strides = [1, 1]} : vector<16x16xf32> to vector<8x1xf32>
      %261 = vector.extract_strided_slice %33 {offsets = [8, 1], sizes = [8, 1], strides = [1, 1]} : vector<16x16xf32> to vector<8x1xf32>
      %262 = vector.broadcast %258 : vector<1x32xf32> to vector<8x32xf32>
      %263 = arith.mulf %262, %16 : vector<8x32xf32>
      %264 = math.exp %263 : vector<8x32xf32>
      %265 = arith.mulf %264, %253 : vector<8x32xf32>
      %266 = vector.broadcast %260 : vector<8x1xf32> to vector<8x32xf32>
      %267 = vector.broadcast %259 : vector<1x32xf32> to vector<8x32xf32>
      %268 = arith.mulf %266, %267 : vector<8x32xf32>
      %269 = arith.addf %265, %268 : vector<8x32xf32>
      %270 = vector.broadcast %261 : vector<8x1xf32> to vector<8x32xf32>
      %271 = arith.mulf %269, %270 : vector<8x32xf32>
      %cst_42 = arith.constant dense<0.000000e+00> : vector<32xf32>
      %272 = vector.multi_reduction <add>, %271, %cst_42 [0] : vector<8x32xf32> to vector<32xf32>
      %273 = vector.shape_cast %272 : vector<32xf32> to vector<1x32xf32>
      %274 = vector.extract_strided_slice %31 {offsets = [0, 0], sizes = [1, 32], strides = [1, 1]} : vector<16x32xf32> to vector<1x32xf32>
      %275 = vector.extract_strided_slice %32 {offsets = [0, 0], sizes = [1, 32], strides = [1, 1]} : vector<16x32xf32> to vector<1x32xf32>
      %276 = vector.extract_strided_slice %33 {offsets = [0, 0], sizes = [8, 1], strides = [1, 1]} : vector<16x16xf32> to vector<8x1xf32>
      %277 = vector.extract_strided_slice %33 {offsets = [8, 0], sizes = [8, 1], strides = [1, 1]} : vector<16x16xf32> to vector<8x1xf32>
      %278 = vector.broadcast %274 : vector<1x32xf32> to vector<8x32xf32>
      %279 = arith.mulf %278, %16 : vector<8x32xf32>
      %280 = math.exp %279 : vector<8x32xf32>
      %281 = arith.mulf %280, %269 : vector<8x32xf32>
      %282 = vector.broadcast %276 : vector<8x1xf32> to vector<8x32xf32>
      %283 = vector.broadcast %275 : vector<1x32xf32> to vector<8x32xf32>
      %284 = arith.mulf %282, %283 : vector<8x32xf32>
      %285 = arith.addf %281, %284 : vector<8x32xf32>
      %286 = vector.broadcast %277 : vector<8x1xf32> to vector<8x32xf32>
      %287 = arith.mulf %285, %286 : vector<8x32xf32>
      %cst_43 = arith.constant dense<0.000000e+00> : vector<32xf32>
      %288 = vector.multi_reduction <add>, %287, %cst_43 [0] : vector<8x32xf32> to vector<32xf32>
      %289 = vector.shape_cast %288 : vector<32xf32> to vector<1x32xf32>
      %290 = tpu.concatenate %289, %273, %257, %241, %225, %209, %193, %177, %161, %145, %129, %113, %97, %81, %65, %49 in 0 : vector<1x32xf32>, vector<1x32xf32>, vector<1x32xf32>, vector<1x32xf32>, vector<1x32xf32>, vector<1x32xf32>, vector<1x32xf32>, vector<1x32xf32>, vector<1x32xf32>, vector<1x32xf32>, vector<1x32xf32>, vector<1x32xf32>, vector<1x32xf32>, vector<1x32xf32>, vector<1x32xf32>, vector<1x32xf32> -> vector<16x32xf32>
      %291 = vector.broadcast %20 : vector<1x32xf32> to vector<16x32xf32>
      %292 = arith.mulf %29, %291 : vector<16x32xf32>
      %293 = arith.addf %290, %292 : vector<16x32xf32>
      %c0_44 = arith.constant 0 : index
      %c0_45 = arith.constant 0 : index
      %294 = arith.index_cast %26 : i32 to index
      %c0_46 = arith.constant 0 : index
      %295 = vector.load %arg8[%c0_44, %c0_45, %294, %c0_46] : memref<1x1x64x32xf32, #tpu.memory_space<vmem>>, vector<1x1x16x32xf32>
      %296 = vector.shape_cast %295 : vector<1x1x16x32xf32> to vector<16x32xf32>
      %297 = vector.shape_cast %293 : vector<16x32xf32> to vector<1x1x16x32xf32>
      tpu.vector_store %arg8[%c0_44, %c0_45, %294, %c0_46], %297 {strides = array<i32>} : memref<1x1x64x32xf32, #tpu.memory_space<vmem>>, vector<1x1x16x32xf32>,
      scf.yield %285 : vector<8x32xf32>
    }
    %c4_i32_22 = arith.constant 4 : i32
    return
  }
  func.func @transform_0(%arg0: i32, %arg1: i32) -> (i32, i32, i32, i32) {
    %c0_i32 = arith.constant 0 : i32
    %c0_i32_0 = arith.constant 0 : i32
    %c0_i32_1 = arith.constant 0 : i32
    return %arg1, %arg0, %c0_i32, %c0_i32_0 : i32, i32, i32, i32
  }
  func.func @transform_1(%arg0: i32, %arg1: i32) -> (i32, i32, i32) {
    %c0_i32 = arith.constant 0 : i32
    %c0_i32_0 = arith.constant 0 : i32
    %c0_i32_1 = arith.constant 0 : i32
    return %arg0, %c0_i32, %c0_i32_0 : i32, i32, i32
  }
  func.func @transform_2(%arg0: i32, %arg1: i32) -> (i32, i32, i32) {
    %c0_i32 = arith.constant 0 : i32
    %c0_i32_0 = arith.constant 0 : i32
    %c0_i32_1 = arith.constant 0 : i32
    return %arg0, %c0_i32, %c0_i32_0 : i32, i32, i32
  }
  func.func @transform_3(%arg0: i32, %arg1: i32) -> (i32, i32, i32) {
    %c0_i32 = arith.constant 0 : i32
    %c0_i32_0 = arith.constant 0 : i32
    %c0_i32_1 = arith.constant 0 : i32
    return %arg0, %c0_i32, %c0_i32_0 : i32, i32, i32
  }
  func.func @transform_4(%arg0: i32, %arg1: i32) -> (i32, i32, i32) {
    %c0_i32 = arith.constant 0 : i32
    %c0_i32_0 = arith.constant 0 : i32
    %c0_i32_1 = arith.constant 0 : i32
    return %arg0, %c0_i32, %c0_i32_0 : i32, i32, i32
  }
  func.func @transform_5(%arg0: i32, %arg1: i32) -> (i32, i32, i32) {
    %c0_i32 = arith.constant 0 : i32
    %c0_i32_0 = arith.constant 0 : i32
    %c0_i32_1 = arith.constant 0 : i32
    return %arg0, %c0_i32, %c0_i32_0 : i32, i32, i32
  }
  func.func @transform_6(%arg0: i32, %arg1: i32) -> (i32, i32, i32, i32) {
    %c0_i32 = arith.constant 0 : i32
    %c0_i32_0 = arith.constant 0 : i32
    %c0_i32_1 = arith.constant 0 : i32
    return %arg1, %arg0, %c0_i32, %c0_i32_0 : i32, i32, i32, i32
  }
}

</mosaic_0001>

<bundles_post_ra>
// kernel: ss2d_forward.5
= control target key start
LH: loop header
LB: loop body
LE: loop exit
PB: predicated region body
PF: predicated region fallthrough
CT: control target
= control target key end

     0   :  { %s892_s0 = inlined_call_operand.vmem [shape: f32[1,4], index: 0, kind: input, shape index: {}]   ;;  %s893_s1 = inlined_call_operand.<no memory space> [shape: f32[1,1], index: 1, kind: input, shape index: {}]   ;;  %s894_s2 = inlined_call_operand.vmem [shape: f32[2,4,64,32], index: 2, kind: input, shape index: {}]   ;;  %s895_s3 = inlined_call_operand.hbm [shape: f32[2,64,32], index: 3, kind: output, shape index: {}]  }
   0x1   :  { %8 = sst [smem:[#allocation2]] %s893_s1 }
   0x2   :  { %9 = vsyncpa [#allocation5], 0 }
   0x3   :  { %10 = vsyncpa [#allocation4], 0 }
   0x4   :  { %12 = vsyncpa [#allocation4 + $0x1], 0  ;;  %s679_s14 = smov 0   ;;  %s681_s15 = smov 0  }
   0x5   :  { %s683_s16 = smov 0   ;;  %s685_s17 = smov 0  }
   0x6   :  { %s687_s18 = smov 0   ;;  %s689_s19 = smov 0  }
   0x7 LB: > { %s442_s1 = sadd.s32 4294967295, %s651_s19   ;;  %s443_s20 = sadd.s32 4294967294, %s651_s19   ;;  %s651_s19 = sphi %s689_s19, %s18_s19   ;;  %s647_s18 = sphi %s687_s18, %s902_s18   ;;  %s643_s17 = sphi %s685_s17, %s901_s17   ;;  %s639_s16 = sphi %s683_s16, %s900_s16   ;;  %s635_s15 = sphi %s681_s15, %s899_s15   ;;  %s631_s14 = sphi %s679_s14, %s898_s14  }
   0x8   : > { %s30_s21 = sadd.s32 1, %s647_s18  ;;  %s109_s22 = sadd.s32 1, %s639_s16 }
   0x9   : > { %p32_p0 = scmp.ge.s32.totalorder %s30_s21, 2  ;;  %p119_p1 = scmp.ne.s32.totalorder %s639_s16, %s635_s15 }
   0xa   : > { %p120_p2 = scmp.eq.s32.totalorder %s442_s1, 1  ;;  %p125_p3 = scmp.ne.s32.totalorder %s635_s15, %s631_s14 }
   0xb   : > { %s904_s21 = smov (%p32_p0, %s30_s21), 0  ;;  %p126_p5 = scmp.eq.s32.totalorder %s443_s20, 1 }
   0xc   : > { %p719_p4 = por %p120_p2, %p119_p1  ;;  %s104_s24 = ssub.s32 %s647_s18, %s904_s21 }
   0xd   : > { %p444_p6 = scmp.ge.s32.totalorder %s651_s19, 1  ;;  %p107_p7 = scmp.eq.s32.totalorder %s104_s24, 0 }
   0xe   : > { %p726_p8 = por %p126_p5, %p125_p3  ;;  %p133_p9 = scmp.lt.s32.totalorder %s651_s19, 3 }
   0xf   : > { %s732_s26 = scalar_select %p107_p7, %s639_s16, %s109_s22  }
  0x10   : > { %p134_p10 = pnand %p444_p6, %p133_p9  ;;  %p500_p11 = scmp.eq.s32.totalorder %s442_s1, 0 }
  0x11   : > { %s145_s29 = sshll.u32 %s892_s0, 4  ;;  %s653_s30 = smov [#allocation3]   ;;  %s146_s29 = int_to_ptr.vmem [resolvable:$true] %s145_s29 }
  0x12   : > { %p492_p12 = pneg %p134_p10  ;;  %174 = sbr.rel (%p134_p10) target bundleno = 61 (0x3d), region = 32 }
  0x14   : > { %p493_p13 = pnand %p500_p11, %p492_p12 }
  0x16   : > { %495 = dma.vmem_to_smem (!%p493_p13), %s146_s29, 16, %s653_s30, [#allocation5]  }
  0x17   : > { %622 = dma.done.wait (%p500_p11), [#allocation5], 16  }
  0x18   : > { %624 = vsyncadd (%p500_p11), [#allocation5], 4294967280 }
  0x19   : > { %181 = sfence }
  0x1a   : > { %p205_p0 = scmp.lt.s32.totalorder %s643_s17, 1  ;;  %s215_s4 = sld [smem:[#allocation3]]  ;;  %vm324_vm0 = vcmask 261120  }
  0x1b   : > { %s452_s5 = sld [smem:[#allocation3 + $0x1]]  ;;  %s201_s1 = sand.u32 1, %s635_s15  }
  0x1c   : > { %s206_s6 = scalar_select %p205_p0, %s643_s17, 1 }
  0x1d   : > { %s461_s7 = sld [smem:[#allocation3 + $0x2]]  ;;  %s786_s20 = sshll.u32 %s201_s1, 6 }
  0x1e   : > { %s484_s8 = sshll.u32 %s206_s6, 8  ;;  %s470_s9 = sld [smem:[#allocation3 + $0x3]] }
  0x1f   : > { %s742_s12 = scalar_lea.vmem %s894_s2, %s484_s8  ;;  %s744_s13 = sld [smem:[#allocation2]] }
  0x20   : > { %v216_v0 = vld [vmem:[%s742_s12] sm:$0xff]  ;;  %v747_v1 = vstv %s215_s4  ;;  %v217_v7 = vld [vmem:[%s742_s12 + $0x8] sm:$0xff]  ;;  %v218_v14 = vld [vmem:[%s742_s12 + $0x10] sm:$0xff]  ;;  %s816_s22 = scalar_lea.vmem [#allocation6], %s786_s20  ;;  %s485_s24 = sshll.u32 %s643_s17, 6 }
  0x21   : > { %v453_v2 = vld [vmem:[%s742_s12 + $0x40] sm:$0xff]  ;;  %v225_v4 = vmul.f32 %v747_v1, %v216_v0  ;;  %v752_v5 = vstv %s452_s5  ;;  %v454_v8 = vld [vmem:[%s742_s12 + $0x48] sm:$0xff]  ;;  %v226_v10 = vmul.f32 %v747_v1, %v217_v7  ;;  %v227_v16 = vmul.f32 %v747_v1, %v218_v14  ;;  %v455_v17 = vld [vmem:[%s742_s12 + $0x50] sm:$0xff]  ;;  %s347_s28 = scalar_lea.hbm %s895_s3, %s485_s24  ;;  %s348_s29 = sshll.u32 %s816_s22, 4  ;;  %s349_s29 = int_to_ptr.vmem [resolvable:$true] %s348_s29 }
  0x22   : > { %v462_v3 = vld [vmem:[%s742_s12 + $0x80] sm:$0xff]  ;;  %v244_v9 = vmul.f32 %v453_v2, %v752_v5  ;;  %v245_v11 = vmul.f32 %v454_v8, %v752_v5  ;;  %v463_v12 = vld [vmem:[%s742_s12 + $0x88] sm:$0xff]  ;;  %v464_v18 = vld [vmem:[%s742_s12 + $0x90] sm:$0xff]  ;;  %v246_v34 = vmul.f32 %v455_v17, %v752_v5  ;;  %s350_s30 = sshll.u32 %s347_s28, 4  ;;  %s334_s4 = scalar_lea.sflag [#allocation4], %s201_s1  ;;  %s351_s30 = int_to_ptr.hbm [resolvable:$true] %s350_s30 }
  0x23   : > { %v471_v6 = vld [vmem:[%s742_s12 + $0xc0] sm:$0xff]  ;;  %v472_v13 = vld [vmem:[%s742_s12 + $0xc8] sm:$0xff]  ;;  %v764_v15 = vstv %s461_s7  ;;  %v473_v19 = vld [vmem:[%s742_s12 + $0xd0] sm:$0xff]  ;;  %s583_s5 = sshra.s32 %s351_s30, 4  ;;  %s584_s5 = int_to_ptr.hbm [resolvable:$true] %s583_s5 }
  0x24   : > { %v252_v20 = vadd.f32 %v244_v9, %v225_v4  ;;  %v271_v21 = vmul.f32 %v462_v3, %v764_v15  ;;  %v771_v22 = vstv %s470_s9  ;;  %v253_v23 = vadd.f32 %v245_v11, %v226_v10  ;;  %v219_v24 = vld [vmem:[%s742_s12 + $0x18] sm:$0xff]  ;;  %v220_v32 = vld [vmem:[%s742_s12 + $0x20] sm:$0xff]  ;;  %v221_v44 = vld [vmem:[%s742_s12 + $0x28] sm:$0xff]  ;;  %s585_s6 = scalar_lea.hbm %s584_s5, 64  ;;  %s589_s9 = scalar_lea.hbm %s895_s3, 128 }
  0x25   : > { %v456_v25 = vld [vmem:[%s742_s12 + $0x58] sm:$0xff]  ;;  %v298_v27 = vmul.f32 %v471_v6, %v771_v22  ;;  %v778_v28 = vstv %s744_s13  ;;  %v272_v29 = vmul.f32 %v463_v12, %v764_v15  ;;  %v299_v30 = vmul.f32 %v472_v13, %v771_v22  ;;  %v457_v37 = vld [vmem:[%s742_s12 + $0x60] sm:$0xff]  ;;  %v458_v49 = vld [vmem:[%s742_s12 + $0x68] sm:$0xff]  ;;  %p586_p1 = scmp.ne.s32.totalorder %s584_s5, %s585_s6  ;;  %p590_p5 = scmp.lt.s32.totalorder %s584_s5, %s895_s3 }
  0x26   : > { %v465_v26 = vld [vmem:[%s742_s12 + $0x98] sm:$0xff]  ;;  %v279_v33 = vadd.f32 %v271_v21, %v252_v20  ;;  %v273_v35 = vmul.f32 %v464_v18, %v764_v15  ;;  %v300_v36 = vmul.f32 %v473_v19, %v771_v22  ;;  %v466_v38 = vld [vmem:[%s742_s12 + $0xa0] sm:$0xff]  ;;  %v228_v40 = vmul.f32 %v747_v1, %v219_v24  ;;  %v467_v54 = vld [vmem:[%s742_s12 + $0xa8] sm:$0xff]  ;;  %p591_p6 = scmp.lt.s32.totalorder %s589_s9, %s585_s6 }
  0x27   : > { %v474_v31 = vld [vmem:[%s742_s12 + $0xd8] sm:$0xff]  ;;  %v280_v39 = vadd.f32 %v272_v29, %v253_v23  ;;  %v247_v41 = vmul.f32 %v456_v25, %v752_v5  ;;  %v274_v42 = vmul.f32 %v465_v26, %v764_v15  ;;  %v475_v43 = vld [vmem:[%s742_s12 + $0xe0] sm:$0xff]  ;;  %v254_v46 = vadd.f32 %v246_v34, %v227_v16  ;;  %v476_v55 = vld [vmem:[%s742_s12 + $0xe8] sm:$0xff]  ;;  %p587_p2 = pnand %p586_p1, %p719_p4 }
  0x28   : > { %v306_v45 = vadd.f32 %v298_v27, %v279_v33  ;;  %v301_v47 = vmul.f32 %v474_v31, %v771_v22  ;;  %v229_v48 = vmul.f32 %v747_v1, %v220_v32  ;;  %v248_v52 = vmul.f32 %v457_v37, %v752_v5  ;;  %v222_v56 = vld [vmem:[%s742_s12 + $0x30] sm:$0xff]  ;;  %v223_v6 = vld [vmem:[%s742_s12 + $0x38] sm:$0xff]  ;;  %p592_p7 = por %p591_p6, %p590_p5 }
  0x29   : > { %v307_v50 = vadd.f32 %v299_v30, %v280_v39  ;;  %v255_v51 = vadd.f32 %v247_v41, %v228_v40  ;;  %v275_v53 = vmul.f32 %v466_v38, %v764_v15  ;;  %v281_v58 = vadd.f32 %v273_v35, %v254_v46  ;;  %v459_v61 = vld [vmem:[%s742_s12 + $0x70] sm:$0xff]  ;;  %v460_v16 = vld [vmem:[%s742_s12 + $0x78] sm:$0xff]  ;;  %p588_p3 = pneg %p587_p2 }
  0x2a   : > { %v316_v57 = vadd.f32 %v778_v28, %v306_v45  ;;  %v302_v59 = vmul.f32 %v475_v43, %v771_v22  ;;  %v230_v60 = vmul.f32 %v747_v1, %v221_v44  ;;  %v256_v0 = vadd.f32 %v248_v52, %v229_v48  ;;  %v468_v3 = vld [vmem:[%s742_s12 + $0xb0] sm:$0xff]  ;;  %v469_v17 = vld [vmem:[%s742_s12 + $0xb8] sm:$0xff] }
  0x2b   : > { %v317_v62 = vadd.f32 %v778_v28, %v307_v50  ;;  %v282_v63 = vadd.f32 %v274_v42, %v255_v51  ;;  %v249_v2 = vmul.f32 %v458_v49, %v752_v5  ;;  %v477_v4 = vld [vmem:[%s742_s12 + $0xf0] sm:$0xff]  ;;  %v308_v7 = vadd.f32 %v300_v36, %v281_v58  ;;  %v478_v27 = vld [vmem:[%s742_s12 + $0xf8] sm:$0xff]  ;;  %p593_p9 = pnand %p592_p7, %p588_p3 }
  0x2c   : > { %325 = vst.msk [vmem:[%s816_s22] sm:$0xff] %vm324_vm0, %v316_v57  ;;  %v276_v8 = vmul.f32 %v467_v54, %v764_v15  ;;  %v303_v9 = vmul.f32 %v476_v55, %v771_v22  ;;  %v231_v10 = vmul.f32 %v747_v1, %v222_v56  ;;  %v283_v12 = vadd.f32 %v275_v53, %v256_v0 }
  0x2d   : > { %326 = vst.msk [vmem:[%s816_s22 + $0x8] sm:$0xff] %vm324_vm0, %v317_v62  ;;  %v309_v11 = vadd.f32 %v301_v47, %v282_v63  ;;  %v257_v13 = vadd.f32 %v249_v2, %v230_v60  ;;  %v250_v14 = vmul.f32 %v459_v61, %v752_v5  ;;  %v318_v18 = vadd.f32 %v778_v28, %v308_v7 }
  0x2e   : > { %v277_v19 = vmul.f32 %v468_v3, %v764_v15  ;;  %v304_v20 = vmul.f32 %v477_v4, %v771_v22  ;;  %v232_v21 = vmul.f32 %v747_v1, %v223_v6  ;;  %v310_v24 = vadd.f32 %v302_v59, %v283_v12 }
  0x2f   : > { %v319_v23 = vadd.f32 %v778_v28, %v309_v11  ;;  %v284_v25 = vadd.f32 %v276_v8, %v257_v13  ;;  %v258_v26 = vadd.f32 %v250_v14, %v231_v10  ;;  %327 = vst.msk [vmem:[%s816_s22 + $0x10] sm:$0xff] %vm324_vm0, %v318_v18  ;;  %v251_v29 = vmul.f32 %v460_v16, %v752_v5 }
  0x30   : > { %v278_v30 = vmul.f32 %v469_v17, %v764_v15  ;;  %v320_v1 = vadd.f32 %v778_v28, %v310_v24  ;;  %v305_v34 = vmul.f32 %v478_v27, %v771_v22 }
  0x31   : > { %328 = vst.msk [vmem:[%s816_s22 + $0x18] sm:$0xff] %vm324_vm0, %v319_v23  ;;  %v311_v31 = vadd.f32 %v303_v9, %v284_v25  ;;  %v285_v32 = vadd.f32 %v277_v19, %v258_v26  ;;  %v259_v33 = vadd.f32 %v251_v29, %v232_v21 }
  0x32   : > { %329 = vst.msk [vmem:[%s816_s22 + $0x20] sm:$0xff] %vm324_vm0, %v320_v1 }
  0x33   : > { %v321_v5 = vadd.f32 %v778_v28, %v311_v31  ;;  %v312_v15 = vadd.f32 %v304_v20, %v285_v32  ;;  %v286_v35 = vadd.f32 %v278_v30, %v259_v33 }
  0x35   : > { %330 = vst.msk [vmem:[%s816_s22 + $0x28] sm:$0xff] %vm324_vm0, %v321_v5  ;;  %v322_v36 = vadd.f32 %v778_v28, %v312_v15  ;;  %v313_v37 = vadd.f32 %v305_v34, %v286_v35 }
  0x37   : > { %331 = vst.msk [vmem:[%s816_s22 + $0x30] sm:$0xff] %vm324_vm0, %v322_v36  ;;  %v323_v22 = vadd.f32 %v778_v28, %v313_v37 }
  0x39   : > { %332 = vst.msk [vmem:[%s816_s22 + $0x38] sm:$0xff] %vm324_vm0, %v323_v22 }
  0x3a   : > { %596 = shalt.err (!%p593_p9)
}
  0x3b   : > { %s654_s12 = smov 128   ;;  %s655_s13 = smov 8  }
  0x3c   : > { %490 = dma.vmem_to_hbm [thread:$0]  (%p719_p4), %s349_s29, 1024, %s351_s30, %s334_s4, %s654_s12, %s654_s12, %s655_s13  }
  0x3d PF: > { %p502_p10 = scmp.ge.s32.totalorder %s651_s19, 2  ;;  %s365_s1 = sand.u32 1, %s631_s14  }
  0x3e   : > { %s366_s20 = scalar_lea.sflag [#allocation4], %s365_s1 }
  0x3f   : > { %p497_p11 = pnand %p502_p10, %p726_p8 }
  0x41   : > { %p498_p12 = pneg %p497_p11 }
  0x43   : > { %626 = dma.done.wait (%p498_p12), %s366_s20, 1024  }
  0x44   : > { %628 = vsyncadd (%p498_p12), %s366_s20, 4294966272  ;;  %s18_s19 = sadd.s32 1, %s651_s19   ;;  %s898_s14 = smov %s635_s15 }
  0x45   : > { %p15_p13 = scmp.ge.s32.totalorder %s18_s19, 4   ;;  %s899_s15 = smov %s639_s16 }
  0x46   : > { %s900_s16 = smov %s732_s26  ;;  %s901_s17 = smov %s647_s18 }
  0x47   : > { %s902_s18 = smov %s904_s21  ;;  %17 = sbr.rel (!%p15_p13) target bundleno = 7 (0x7), region = 75 }
  0x4c   :  { %372 = vsyncpa [#allocation4], 1 }
  0x4d   :  { %374 = vsyncpa [#allocation4 + $0x1], 1 }
  0x4e   :  { %375 = vsyncpa [#allocation5], 1 }
  0x4f   :  { %377 = vsyncpa [#allocation5 + $0x1], 1 }

// kernel: ss2d_forward.3
= control target key start
LH: loop header
LB: loop body
LE: loop exit
PB: predicated region body
PF: predicated region fallthrough
CT: control target
= control target key end

     0   :  { %s1538_s21 = smov 0   ;;  %s1540_s22 = smov 0   ;;  %s1929_s0 = inlined_call_operand.vmem [shape: f32[2,2,64,32], index: 0, kind: input, shape index: {}]   ;;  %s1930_s1 = inlined_call_operand.vmem [shape: f32[2,32,32], index: 1, kind: input, shape index: {}]   ;;  %s1931_s2 = inlined_call_operand.vmem [shape: f32[2,16,32], index: 2, kind: input, shape index: {}]   ;;  %s1932_s3 = inlined_call_operand.vmem [shape: f32[2,1,32], index: 3, kind: input, shape index: {}]   ;;  %s1933_s4 = inlined_call_operand.vmem [shape: f32[2,8,32], index: 4, kind: input, shape index: {}]   ;;  %s1934_s5 = inlined_call_operand.vmem [shape: f32[2,1,32], index: 5, kind: input, shape index: {}]   ;;  %s1935_s6 = inlined_call_operand.vmem [shape: f32[2,2,64,32], index: 6, kind: output, shape index: {}]  }
   0x1   :  { %s1542_s23 = smov 0   ;;  %s1544_s24 = smov 0  }
   0x2   :  { %s1546_s25 = smov 0  }
   0x3 LB: > { %s25_s26 = sadd.s32 1, %s1469_s23  ;;  %s28_s27 = sadd.s32 1, %s1473_s24  ;;  %s1477_s25 = sphi %s1546_s25, %s16_s25   ;;  %s1473_s24 = sphi %s1544_s24, %s1944_s24   ;;  %s1469_s23 = sphi %s1542_s23, %s1943_s23   ;;  %s1465_s22 = sphi %s1540_s22, %s1942_s22   ;;  %s1461_s21 = sphi %s1538_s21, %s1941_s21  }
   0x4   : > { %p26_p0 = scmp.ge.s32.totalorder %s25_s26, 2  ;;  %p1218_p1 = scmp.ge.s32.totalorder %s1477_s25, 1 }
   0x5   : > { %p277_p2 = scmp.lt.s32.totalorder %s1477_s25, 5 }
   0x6   : > { %s1946_s26 = smov (%p26_p0, %s25_s26), 0  ;;  %s1948_s27 = smov (!%p26_p0, %s28_s27), %s1473_s24 }
   0x7   : > { %p278_p3 = pnand %p1218_p1, %p277_p2  ;;  %p30_p4 = scmp.ge.s32.totalorder %s1948_s27, 2 }
   0x8   : > { %p337_p5 = scmp.lt.s32.totalorder (!%p278_p3), %s1465_s22, 1  ;;  %p335_p6 = scmp.lt.s32.totalorder (!%p278_p3), %s1461_s21, 1 }
   0x9   : > { %s1950_s27 = smov (%p30_p4, %s1948_s27), 0  ;;  %281 = sbr.rel (%p278_p3) target bundleno = 578 (0x242), region = 44 }
   0xe   : > { %s1952_s22 = smov (!%p337_p5, %s1465_s22), 1  ;;  %s1954_s21 = smov (!%p335_p6, %s1461_s21), 1  ;;  %vm389_vm0 = vcmask 261120  }
   0xf   : > { %s1249_s28 = sshll.u32 %s1952_s22, 5  ;;  %s1250_s29 = sshll.u32 %s1952_s22, 4 }
  0x10   : > { %s348_s8 = scalar_lea.vmem %s1930_s1, %s1249_s28  ;;  %s353_s11 = scalar_lea.vmem %s1931_s2, %s1250_s29 }
  0x11   : > { %s356_s14 = scalar_lea.vmem %s1932_s3, %s1952_s22  ;;  %s363_s17 = scalar_lea.vmem %s1934_s5, %s1952_s22  ;;  %v384_v0 = vld [vmem:[%s348_s8 + $0x18] sm:$0xff]  ;;  %v1586_v1 = vld [vmem:[%s353_s11] sm:$0xff]  ;;  %v1588_v2 = vld [vmem:[%s353_s11 + $0x8] sm:$0xff] }
  0x12   : > { %1230 = vmatpush.xpose.msk.msra.mxu0 %vm389_vm0, %v384_v0  ;;  %v1591_v3 = vld [vmem:[%s363_s17] sm:$0x1]  ;;  %1251 = vmatpush.xpose.msk.msra.mxu1 %vm389_vm0, %v384_v0  ;;  %s1219_s18 = sshll.u32 %s1952_s22, 3  ;;  %s1220_s19 = sshll.u32 %s1954_s21, 4  ;;  %v383_v4 = vld [vmem:[%s348_s8 + $0x10] sm:$0xff]  ;;  %v382_v6 = vld [vmem:[%s348_s8 + $0x8] sm:$0xff] }
  0x13   : > { %1252 = vmatpush.xpose.msk.msra.mxu2 %vm389_vm0, %v384_v0  ;;  %1253 = vmatpush.xpose.msk.msra.mxu3 %vm389_vm0, %v384_v0  ;;  %s341_s20 = sadd.s32 %s1220_s19, %s1219_s18  ;;  %s360_s30 = scalar_lea.vmem %s1933_s4, %s1219_s18  ;;  %v381_v7 = vld [vmem:[%s348_s8] sm:$0xff] }
  0x14   : > { %s1221_s7 = sshll.u32 %s341_s20, 3  ;;  %v1600_v5 = vld [vmem:[%s360_s30] sm:$0xff]  ;;  %s1715_s22 = smov 0  }
  0x15   : > { %s1605_s11 = scalar_lea.vmem %s1935_s6, %s1221_s7  ;;  %s1618_s13 = scalar_lea.vmem %s1929_s0, %s1221_s7  ;;  %v1337_v16 = vld [vmem:[%s356_s14] ss:$0 sm:$0xff] }
  0x16   : > { %1231 = vmatpush.xpose.msk.msra.mxu0 %vm389_vm0, %v383_v4  ;;  %1254 = vmatpush.xpose.msk.msra.mxu1 %vm389_vm0, %v383_v4  ;;  %v373_v8 = vld [vmem:[%s1618_s13] sm:$0xff]  ;;  %v375_v9 = vld [vmem:[%s1618_s13 + $0x10] sm:$0xff]  ;;  %v374_v12 = vld [vmem:[%s1618_s13 + $0x8] sm:$0xff] }
  0x17   : > { %1255 = vmatpush.xpose.msk.msra.mxu2 %vm389_vm0, %v383_v4  ;;  %1256 = vmatpush.xpose.msk.msra.mxu3 %vm389_vm0, %v383_v4  ;;  %v377_v10 = vld [vmem:[%s1618_s13 + $0x20] sm:$0xff]  ;;  %v379_v11 = vld [vmem:[%s1618_s13 + $0x30] sm:$0xff]  ;;  %v376_v13 = vld [vmem:[%s1618_s13 + $0x18] sm:$0xff] }
  0x18   : > { %v378_v14 = vld [vmem:[%s1618_s13 + $0x28] sm:$0xff]  ;;  %v380_v15 = vld [vmem:[%s1618_s13 + $0x38] sm:$0xff] }
  0x1a   : > { %1232 = vmatpush.xpose.msk.msra.mxu0 %vm389_vm0, %v382_v6  ;;  %1257 = vmatpush.xpose.msk.msra.mxu1 %vm389_vm0, %v382_v6 }
  0x1b   : > { %1258 = vmatpush.xpose.msk.msra.mxu2 %vm389_vm0, %v382_v6  ;;  %1259 = vmatpush.xpose.msk.msra.mxu3 %vm389_vm0, %v382_v6 }
  0x1e   : > { %1233 = vmatpush.xpose.msk.msra.mxu0 %vm389_vm0, %v381_v7  ;;  %1260 = vmatpush.xpose.msk.msra.mxu1 %vm389_vm0, %v381_v7 }
  0x1f   : > { %1261 = vmatpush.xpose.msk.msra.mxu2 %vm389_vm0, %v381_v7  ;;  %1262 = vmatpush.xpose.msk.msra.mxu3 %vm389_vm0, %v381_v7 }
  0x21   : > { %1234 = vmatmul.msk.f32.vlgmr.msra.gmra.mxu0 %vm389_vm0, %v373_v8  ;;  %1236 = vmatmul.msk.f32.vlgmr.msra.gmra.mxu1 %vm389_vm0, %v375_v9 }
  0x22   : > { %1238 = vmatmul.msk.f32.vlgmr.msra.gmra.mxu2 %vm389_vm0, %v377_v10  ;;  %1240 = vmatmul.msk.f32.vlgmr.msra.gmra.mxu3 %vm389_vm0, %v379_v11 }
  0x29   : > { %1235 = vmatmul.msk.f32.gmra.mxu0 %vm389_vm0, %v374_v12  ;;  %1237 = vmatmul.msk.f32.gmra.mxu1 %vm389_vm0, %v376_v13 }
  0x2a   : > { %1239 = vmatmul.msk.f32.gmra.mxu2 %vm389_vm0, %v378_v14  ;;  %1241 = vmatmul.msk.f32.gmra.mxu3 %vm389_vm0, %v380_v15 }
  0x9e   : > { %v443_v17 = vpop.f32.mrf.mxu0  ;;  %v449_v18 = vpop.f32.mrf.mxu1 }
  0x9f   : > { %v1645_v19 = vadd.f32 %v1337_v16, %v443_v17  ;;  %v1647_v20 = vadd.f32 %v1337_v16, %v449_v18 }
  0xa1   : > { %v475_v21 = vmul.f32 1.442695, %v1645_v19  ;;  %v479_v22 = vmul.f32 1.442695, %v1647_v20  ;;  %vm467_vm1 = vcmp.gt.f32.partialorder %v1645_v19, 20.0  ;;  %vm469_vm2 = vcmp.gt.f32.partialorder %v1647_v20, 20.0 }
  0xa3   : > { %1338 = vpow2.f32 %v475_v21 }
  0xa4   : > { %1340 = vpow2.f32 %v479_v22 }
  0xa5   : > { %v455_v23 = vpop.f32.mrf.mxu2  ;;  %v461_v24 = vpop.f32.mrf.mxu3 }
  0xa6   : > { %v1651_v25 = vadd.f32 %v1337_v16, %v455_v23  ;;  %v1653_v26 = vadd.f32 %v1337_v16, %v461_v24  ;;  %v446_v27 = vpop.f32.mrf.mxu0  ;;  %v452_v28 = vpop.f32.mrf.mxu1 }
  0xa7   : > { %v1655_v29 = vadd.f32 %v1337_v16, %v446_v27  ;;  %v1657_v30 = vadd.f32 %v1337_v16, %v452_v28 }
  0xa8   : > { %v483_v31 = vmul.f32 1.442695, %v1651_v25  ;;  %v487_v32 = vmul.f32 1.442695, %v1653_v26  ;;  %vm471_vm5 = vcmp.gt.f32.partialorder %v1651_v25, 20.0  ;;  %vm473_vm7 = vcmp.gt.f32.partialorder %v1653_v26, 20.0 }
  0xa9   : > { %v1339_v33 = vpop.eup %1338  ;;  %v477_v36 = vmul.f32 1.442695, %v1655_v29  ;;  %v481_v39 = vmul.f32 1.442695, %v1657_v30  ;;  %vm468_vm9 = vcmp.gt.f32.partialorder %v1655_v29, 20.0  ;;  %vm470_vm12 = vcmp.gt.f32.partialorder %v1657_v30, 20.0 }
  0xaa   : > { %v1341_v34 = vpop.eup %1340  ;;  %v491_v35 = vadd.f32 1.0, %v1339_v33  ;;  %1342 = vpow2.f32 %v483_v31  ;;  %v494_v37 = vmul.f32 -0.5, %v1339_v33  ;;  %v497_v43 = vand.u32 2147483647, %v1339_v33 }
  0xab   : > { %v509_v38 = vadd.f32 1.0, %v1341_v34  ;;  %1344 = vpow2.f32 %v487_v32  ;;  %v512_v40 = vmul.f32 -0.5, %v1341_v34  ;;  %v515_v51 = vand.u32 2147483647, %v1341_v34 }
  0xac   : > { %1346 = vlog2.f32 %v491_v35  ;;  %v495_v45 = vadd.f32 1.0, %v494_v37  ;;  %vm1670_vm3 = vcmp.lt.f32.partialorder %v497_v43, 0.0004427343 }
  0xad   : > { %1348 = vlog2.f32 %v509_v38  ;;  %v458_v41 = vpop.f32.mrf.mxu2  ;;  %v464_v42 = vpop.f32.mrf.mxu3  ;;  %v513_v47 = vadd.f32 1.0, %v512_v40  ;;  %vm516_vm4 = vcmp.lt.f32.partialorder %v515_v51, 0.0004427343 }
  0xae   : > { %1350 = vpow2.f32 %v477_v36  ;;  %v1663_v44 = vadd.f32 %v1337_v16, %v458_v41  ;;  %v1666_v49 = vadd.f32 %v1337_v16, %v464_v42  ;;  %v496_v59 = vmul.f32 %v1339_v33, %v495_v45 }
  0xaf   : > { %1352 = vpow2.f32 %v481_v39  ;;  %v514_v63 = vmul.f32 %v1341_v34, %v513_v47 }
  0xb0   : > { %v1343_v46 = vpop.eup %1342  ;;  %v485_v48 = vmul.f32 1.442695, %v1663_v44  ;;  %v489_v0 = vmul.f32 1.442695, %v1666_v49  ;;  %vm472_vm14 = vcmp.gt.f32.partialorder %v1663_v44, 20.0 }
  0xb1   : > { %v1345_v50 = vpop.eup %1344  ;;  %v527_v52 = vadd.f32 1.0, %v1343_v46  ;;  %v530_v55 = vmul.f32 -0.5, %v1343_v46  ;;  %v533_v7 = vand.u32 2147483647, %v1343_v46 }
  0xb2   : > { %v1347_v53 = vpop.eup %1346  ;;  %v545_v56 = vadd.f32 1.0, %v1345_v50  ;;  %1354 = vpow2.f32 %v485_v48  ;;  %v548_v60 = vmul.f32 -0.5, %v1345_v50  ;;  %v551_v17 = vand.u32 2147483647, %v1345_v50 }
  0xb3   : > { %v1349_v57 = vpop.eup %1348  ;;  %v493_v58 = vmul.f32 0.6931472, %v1347_v53  ;;  %1356 = vlog2.f32 %v527_v52  ;;  %v531_v11 = vadd.f32 1.0, %v530_v55  ;;  %vm1686_vm6 = vcmp.lt.f32.partialorder %v533_v7, 0.0004427343 }
  0xb4   : > { %v1351_v61 = vpop.eup %1350  ;;  %v511_v62 = vmul.f32 0.6931472, %v1349_v57  ;;  %1358 = vlog2.f32 %v545_v56  ;;  %v549_v14 = vadd.f32 1.0, %v548_v60  ;;  %vm552_vm8 = vcmp.lt.f32.partialorder %v551_v17, 0.0004427343 }
  0xb5   : > { %v1353_v4 = vpop.eup %1352  ;;  %v499_v6 = vsel %vm1670_vm3, %v496_v59, %v493_v58  ;;  %v500_v8 = vadd.f32 1.0, %v1351_v61  ;;  %v503_v12 = vmul.f32 -0.5, %v1351_v61  ;;  %v532_v24 = vmul.f32 %v1343_v46, %v531_v11 }
  0xb6   : > { %v563_v9 = vsel %vm467_vm1, %v1645_v19, %v499_v6  ;;  %v517_v10 = vsel %vm516_vm4, %v514_v63, %v511_v62  ;;  %v518_v15 = vadd.f32 1.0, %v1353_v4  ;;  %v521_v18 = vmul.f32 -0.5, %v1353_v4 }
  0xb7   : > { %571 = vst.msk [vmem:[#allocation2] sm:$0xff] %vm389_vm0, %v563_v9  ;;  %v565_v13 = vsel %vm469_vm2, %v1647_v20, %v517_v10  ;;  %1360 = vlog2.f32 %v500_v8  ;;  %v504_v27 = vadd.f32 1.0, %v503_v12  ;;  %v550_v32 = vmul.f32 %v1345_v50, %v549_v14 }
  0xb8   : > { %v1355_v16 = vpop.eup %1354  ;;  %573 = vst.msk [vmem:[#allocation2 + $0x10] sm:$0xff] %vm389_vm0, %v565_v13  ;;  %1362 = vpow2.f32 %v489_v0  ;;  %v506_v33 = vand.u32 2147483647, %v1351_v61  ;;  %v522_v35 = vadd.f32 1.0, %v521_v18  ;;  %v524_v39 = vand.u32 2147483647, %v1353_v4 }
  0xb9   : > { %v1357_v21 = vpop.eup %1356  ;;  %1364 = vlog2.f32 %v518_v15  ;;  %v536_v22 = vadd.f32 1.0, %v1355_v16  ;;  %v539_v28 = vmul.f32 -0.5, %v1355_v16  ;;  %v505_v43 = vmul.f32 %v1351_v61, %v504_v27 }
  0xba   : > { %v1359_v23 = vpop.eup %1358  ;;  %v529_v20 = vmul.f32 0.6931472, %v1357_v21  ;;  %vm507_vm10 = vcmp.lt.f32.partialorder %v506_v33, 0.0004427343  ;;  %v542_v47 = vand.u32 2147483647, %v1355_v16  ;;  %v523_v51 = vmul.f32 %v1353_v4, %v522_v35 }
  0xbb   : > { %v547_v31 = vmul.f32 0.6931472, %v1359_v23  ;;  %1366 = vlog2.f32 %v536_v22  ;;  %v540_v45 = vadd.f32 1.0, %v539_v28  ;;  %vm525_vm11 = vcmp.lt.f32.partialorder %v524_v39, 0.0004427343 }
  0xbc   : > { %v535_v34 = vsel %vm1686_vm6, %v532_v24, %v529_v20  ;;  %vm543_vm13 = vcmp.lt.f32.partialorder %v542_v47, 0.0004427343  ;;  %vm474_vm1 = vcmp.gt.f32.partialorder %v1666_v49, 20.0  ;;  %v1713_v4 = vmov 0.0  }
  0xbd   : > { %v1361_v36 = vpop.eup %1360  ;;  %v567_v37 = vsel %vm471_vm5, %v1651_v25, %v535_v34  ;;  %v553_v38 = vsel %vm552_vm8, %v550_v32, %v547_v31  ;;  %v541_v56 = vmul.f32 %v1355_v16, %v540_v45 }
  0xbe   : > { %v1363_v40 = vpop.eup %1362  ;;  %575 = vst.msk [vmem:[#allocation2 + $0x20] sm:$0xff] %vm389_vm0, %v567_v37  ;;  %v569_v41 = vsel %vm473_vm7, %v1653_v26, %v553_v38  ;;  %v502_v42 = vmul.f32 0.6931472, %v1361_v36 }
  0xbf   : > { %v1365_v46 = vpop.eup %1364  ;;  %577 = vst.msk [vmem:[#allocation2 + $0x30] sm:$0xff] %vm389_vm0, %v569_v41  ;;  %v554_v48 = vadd.f32 1.0, %v1363_v40  ;;  %v557_v52 = vmul.f32 -0.5, %v1363_v40  ;;  %v560_v60 = vand.u32 2147483647, %v1363_v40 }
  0xc0   : > { %v508_v50 = vsel %vm507_vm10, %v505_v43, %v502_v42  ;;  %v520_v25 = vmul.f32 0.6931472, %v1365_v46 }
  0xc1   : > { %v1367_v53 = vpop.eup %1366  ;;  %v564_v54 = vsel %vm468_vm9, %v1655_v29, %v508_v50  ;;  %1368 = vlog2.f32 %v554_v48  ;;  %v558_v59 = vadd.f32 1.0, %v557_v52  ;;  %vm561_vm15 = vcmp.lt.f32.partialorder %v560_v60, 0.0004427343 }
  0xc2   : > { %572 = vst.msk [vmem:[#allocation2 + $0x8] sm:$0xff] %vm389_vm0, %v564_v54  ;;  %v526_v26 = vsel %vm525_vm11, %v523_v51, %v520_v25  ;;  %v538_v55 = vmul.f32 0.6931472, %v1367_v53 }
  0xc3   : > { %v566_v57 = vsel %vm470_vm12, %v1657_v30, %v526_v26  ;;  %v559_v63 = vmul.f32 %v1363_v40, %v558_v59 }
  0xc4   : > { %574 = vst.msk [vmem:[#allocation2 + $0x18] sm:$0xff] %vm389_vm0, %v566_v57  ;;  %v544_v58 = vsel %vm543_vm13, %v541_v56, %v538_v55 }
  0xc5   : > { %v568_v29 = vsel %vm472_vm14, %v1663_v44, %v544_v58 }
  0xc6   : > { %576 = vst.msk [vmem:[#allocation2 + $0x28] sm:$0xff] %vm389_vm0, %v568_v29 }
  0xc7   : > { %v1369_v61 = vpop.eup %1368 }
  0xc8   : > { %v556_v62 = vmul.f32 0.6931472, %v1369_v61 }
  0xca   : > { %v562_v0 = vsel %vm561_vm15, %v559_v63, %v556_v62 }
  0xcb   : > { %v570_v30 = vsel %vm474_vm1, %v1666_v49, %v562_v0 }
  0xcc   : > { %578 = vst.msk [vmem:[#allocation2 + $0x38] sm:$0xff] %vm389_vm0, %v570_v30 }
  0xcd LB: >> { %v1487_v44 = vmov 2   ;;  %v1488_v6 = vmov 1   ;;  %s1724_s14 = sshll.u32 %s1485_s22, 4  ;;  %v1489_v49 = vmov 0   ;;  %v1490_v15 = vmov 4   ;;  %s588_s22 = sadd.s32 1, %s1485_s22   ;;  %s1485_s22 = sphi %s1715_s22, %s588_s22   ;;  %v1481_v4 = vphi %v1713_v4, %v1940_v4  }
  0xce   : >> { %1372 = vset.pattern.permute.xlu2 %v1487_v44  ;;  %1371 = vset.pattern.permute.xlu1 %v1488_v6  ;;  %s591_s16 = scalar_lea.vmem %s1618_s13, %s1724_s14  ;;  %s594_s17 = scalar_lea.vmem [#allocation2], %s1724_s14  ;;  %v1491_v16 = vmov 3   ;;  %v1492_v17 = vmov 5   ;;  %v1493_v18 = vmov 6   ;;  %v1494_v21 = vmov 8  }
  0xcf   : >> { %1370 = vset.pattern.permute.xlu0 %v1489_v49  ;;  %v1728_v7 = vld [vmem:[%s591_s16 + $0x8] sm:$0xff]  ;;  %v1741_v11 = vld [vmem:[%s591_s16] sm:$0xff]  ;;  %v1495_v19 = vmov 7   ;;  %v1496_v22 = vmov 12   ;;  %v1497_v23 = vmov 9   ;;  %v1498_v20 = vmov 11   ;;  %s1875_s18 = scalar_lea.vmem %s1605_s11, %s1724_s14 }
  0xd0   : >> { %1243 = vmatpush.xpose.msk.msra.mxu0 %vm389_vm0, %v1728_v7  ;;  %1263 = vmatpush.xpose.msk.msra.mxu1 %vm389_vm0, %v1728_v7  ;;  %v1499_v24 = vmov 10   ;;  %v1500_v27 = vmov 15   ;;  %v1501_v28 = vmov 14   ;;  %v1502_v31 = vmov 13   ;;  %p585_p7 = scmp.ge.s32.totalorder %s588_s22, 4  }
  0xd1   : >> { %vm1020_vm2 = vcmask 1040384   ;;  %vm1022_vm3 = vcmask 1041408   ;;  %vm1024_vm4 = vcmask 1042432   ;;  %vm1026_vm5 = vcmask 1043456  }
  0xd2   : >> { %vm1028_vm6 = vcmask 1044480   ;;  %vm1030_vm7 = vcmask 1045504   ;;  %vm1032_vm8 = vcmask 1046528  }
  0xd3   : >> { %v1731_v8 = vld [vmem:[%s594_s17] sm:$0xff]  ;;  %v1733_v9 = vld [vmem:[%s594_s17 + $0x8] sm:$0xff] }
  0xd4   : >> { %v1737_v10 = vmul.f32 %v1733_v9, %v1728_v7  ;;  %v1747_v12 = vmul.f32 %v1731_v8, %v1741_v11  ;;  %1244 = vmatpush.xpose.msk.msra.mxu0 %vm389_vm0, %v1741_v11  ;;  %1264 = vmatpush.xpose.msk.msra.mxu1 %vm389_vm0, %v1741_v11  ;;  %v634_v33 = vperm.slane %v1731_v8, 0  ;;  %v660_v35 = vperm.slane %v1731_v8, 1 }
  0xd5   : >> { %v684_v39 = vperm.slane %v1731_v8, 2  ;;  %v708_v42 = vperm.slane %v1731_v8, 3  ;;  %v732_v55 = vperm.slane %v1731_v8, 4  ;;  %v756_v58 = vperm.slane %v1731_v8, 5 }
  0xd6   : >> { %v635_v34 = vmul.f32 %v634_v33, %v1600_v5  ;;  %v661_v38 = vmul.f32 %v660_v35, %v1600_v5  ;;  %v644_v48 = vperm.slane %v1747_v12, 0  ;;  %v669_v53 = vperm.slane %v1747_v12, 1 }
  0xd7   : >> { %1245 = vmatmul.msk.f32.vlgmr.msra.gmra.mxu0 %vm389_vm0, %v1586_v1  ;;  %1246 = vmatmul.msk.f32.vlgmr.msra.gmra.mxu1 %vm389_vm0, %v1588_v2  ;;  %v685_v41 = vmul.f32 %v684_v39, %v1600_v5  ;;  %v709_v47 = vmul.f32 %v708_v42, %v1600_v5  ;;  %v693_v57 = vperm.slane %v1747_v12, 2  ;;  %v733_v62 = vmul.f32 %v732_v55, %v1600_v5 }
  0xd8   : >> { %v636_v37 = vmul.f32 1.442695, %v635_v34  ;;  %v662_v40 = vmul.f32 1.442695, %v661_v38  ;;  %v757_v44 = vmul.f32 %v756_v58, %v1600_v5 }
  0xd9   : >> { %v686_v46 = vmul.f32 1.442695, %v685_v41  ;;  %v710_v52 = vmul.f32 1.442695, %v709_v47  ;;  %v741_v47 = vperm.slane %v1747_v12, 4 }
  0xda   : >> { %1399 = vpow2.f32 %v636_v37 }
  0xdb   : >> { %1401 = vpow2.f32 %v662_v40 }
  0xdc   : >> { %1403 = vpow2.f32 %v686_v46 }
  0xdd   : >> { %1405 = vpow2.f32 %v710_v52 }
  0xe0   : >> { %v1400_v43 = vpop.eup %1399 }
  0xe1   : >> { %v638_v25 = vmul.f32 %v1481_v4, %v1400_v43  ;;  %v1402_v26 = vpop.eup %1401 }
  0xe2   : >> { %v1404_v60 = vpop.eup %1403 }
 0x154   : >> { %v1757_v13 = vpop.f32.mrf.mxu0  ;;  %v1762_v14 = vpop.f32.mrf.mxu1 }
 0x155   : >> { %690 = vperm.xlu2 %1372, %v1757_v13   ;;  %666 = vperm.xlu1 %1371, %v1757_v13  }
 0x156   : >> { %641 = vperm.xlu0 %1370, %v1757_v13  }
 0x15d   : >> { %697 = vperm.xlu2 %1372, %v1762_v14   ;;  %673 = vperm.xlu1 %1371, %v1762_v14  }
 0x15e   : >> { %649 = vperm.xlu0 %1370, %v1762_v14  }
 0x165   : >> { %1375 = vset.pattern.permute.xlu2 %v1490_v15  ;;  %1374 = vset.pattern.permute.xlu1 %v1491_v16 }
 0x166   : >> { %1373 = vset.pattern.permute.xlu0 %v1491_v16  ;;  %738 = vperm.xlu2 %1375, %v1757_v13   ;;  %v734_v16 = vmul.f32 1.442695, %v733_v62 }
 0x167   : >> { %721 = vperm.xlu1 %1374, %v1762_v14   ;;  %714 = vperm.xlu0 %1373, %v1757_v13  }
 0x168   : >> { %1407 = vpow2.f32 %v734_v16 }
 0x16e   : >> { %1377 = vset.pattern.permute.xlu2 %v1492_v17 }
 0x16f   : >> { %1376 = vset.pattern.permute.xlu1 %v1490_v15  ;;  %1378 = vset.pattern.permute.xlu0 %v1492_v17  ;;  %v1406_v15 = vpop.eup %1405 }
 0x170   : >> { %762 = vperm.xlu2 %1377, %v1757_v13   ;;  %745 = vperm.xlu1 %1376, %v1762_v14  }
 0x171   : >> { %769 = vperm.xlu0 %1378, %v1762_v14  }
 0x178   : >> { %1380 = vset.pattern.permute.xlu2 %v1493_v18  ;;  %1379 = vset.pattern.permute.xlu1 %v1493_v18 }
 0x179   : >> { %1383 = vset.pattern.permute.xlu0 %v1494_v21  ;;  %793 = vperm.xlu2 %1380, %v1762_v14  }
 0x17a   : >> { %786 = vperm.xlu1 %1379, %v1757_v13   ;;  %834 = vperm.xlu0 %1383, %v1757_v13  }
 0x181   : >> { %1382 = vset.pattern.permute.xlu2 %v1495_v19 }
 0x182   : >> { %1381 = vset.pattern.permute.xlu1 %v1495_v19  ;;  %1388 = vset.pattern.permute.xlu0 %v1496_v22 }
 0x183   : >> { %817 = vperm.xlu2 %1382, %v1762_v14   ;;  %810 = vperm.xlu1 %1381, %v1757_v13  }
 0x184   : >> { %930 = vperm.xlu0 %1388, %v1757_v13  }
 0x18b   : >> { %1385 = vset.pattern.permute.xlu2 %v1497_v23  ;;  %1384 = vset.pattern.permute.xlu1 %v1494_v21 }
 0x18c   : >> { %1393 = vset.pattern.permute.xlu0 %v1498_v20  ;;  %858 = vperm.xlu2 %1385, %v1757_v13  }
 0x18d   : >> { %841 = vperm.xlu1 %1384, %v1762_v14   ;;  %913 = vperm.xlu0 %1393, %v1762_v14  }
 0x194   : >> { %1387 = vset.pattern.permute.xlu2 %v1498_v20 }
 0x195   : >> { %1386 = vset.pattern.permute.xlu1 %v1499_v24  ;;  %1398 = vset.pattern.permute.xlu0 %v1500_v27 }
 0x196   : >> { %906 = vperm.xlu2 %1387, %v1757_v13   ;;  %882 = vperm.xlu1 %1386, %v1757_v13  }
 0x197   : >> { %1009 = vperm.xlu0 %1398, %v1762_v14  }
 0x19e   : >> { %1390 = vset.pattern.permute.xlu2 %v1501_v28  ;;  %1389 = vset.pattern.permute.xlu1 %v1502_v31 }
 0x19f   : >> { %978 = vperm.xlu2 %1390, %v1757_v13   ;;  %954 = vperm.xlu1 %1389, %v1757_v13  }
 0x1a7   : >> { %1392 = vset.pattern.permute.xlu2 %v1499_v24  ;;  %1391 = vset.pattern.permute.xlu1 %v1497_v23  ;;  %v758_v24 = vmul.f32 1.442695, %v757_v44 }
 0x1a8   : >> { %889 = vperm.xlu2 %1392, %v1762_v14   ;;  %865 = vperm.xlu1 %1391, %v1762_v14  }
 0x1a9   : >> { %1409 = vpow2.f32 %v758_v24 }
 0x1af   : >> { %v691_v32 = vpop.permute.xlu2 %690 }
 0x1b0   : >> { %1395 = vset.pattern.permute.xlu2 %v1496_v22  ;;  %1394 = vset.pattern.permute.xlu1 %v1500_v27  ;;  %v694_v30 = vmul.f32 %v693_v57, %v691_v32  ;;  %v717_v32 = vperm.slane %v1747_v12, 3 }
 0x1b1   : >> { %937 = vperm.xlu2 %1395, %v1762_v14   ;;  %1002 = vperm.xlu1 %1394, %v1757_v13  }
 0x1b7   : >> { %v698_v36 = vpop.permute.xlu2 %697 }
 0x1b9   : >> { %1397 = vset.pattern.permute.xlu2 %v1501_v28  ;;  %1396 = vset.pattern.permute.xlu1 %v1502_v31 }
 0x1ba   : >> { %985 = vperm.xlu2 %1397, %v1762_v14   ;;  %961 = vperm.xlu1 %1396, %v1762_v14   ;;  %v780_v14 = vperm.slane %v1731_v8, 6 }
 0x1bc   : >> { %v781_v27 = vmul.f32 %v780_v14, %v1600_v5 }
 0x1c0   : >> { %v1800_v45 = vpop.permute.xlu2 %738 }
 0x1c1   : >> { %v742_v58 = vmul.f32 %v741_v47, %v1800_v45 }
 0x1c7   : >> { %v667_v50 = vpop.permute.xlu1 %666 }
 0x1c8   : >> { %v642_v51 = vpop.permute.xlu0 %641  ;;  %v670_v59 = vmul.f32 %v669_v53, %v667_v50  ;;  %v1408_v50 = vpop.eup %1407 }
 0x1c9   : >> { %v645_v54 = vmul.f32 %v644_v48, %v642_v51  ;;  %v804_v48 = vperm.slane %v1731_v8, 7  ;;  %v1410_v57 = vpop.eup %1409 }
 0x1ca   : >> { %v1809_v61 = vpop.permute.xlu2 %762 }
 0x1cb   : >> { %v646_v56 = vadd.f32 %v645_v54, %v638_v25 }
 0x1cd   : >> { %v664_v29 = vmul.f32 %v1402_v26, %v646_v56 }
 0x1cf   : >> { %v674_v63 = vpop.permute.xlu1 %673  ;;  %v671_v0 = vadd.f32 %v670_v59, %v664_v29  ;;  %v765_v59 = vperm.slane %v1747_v12, 5 }
 0x1d0   : >> { %v650_v4 = vpop.permute.xlu0 %649 }
 0x1d1   : >> { %v676_v6 = vmul.f32 %v674_v63, %v671_v0  ;;  %v688_v49 = vmul.f32 %v1404_v60, %v671_v0  ;;  %v652_v13 = vmul.f32 %v650_v4, %v646_v56  ;;  %v805_v63 = vmul.f32 %v804_v48, %v1600_v5 }
 0x1d2   : >> { %v766_v45 = vmul.f32 %v765_v59, %v1809_v61 }
 0x1d3   : >> { %v677_v17 = vsel %vm389_vm0, %v676_v6, 0.0  ;;  %v653_v18 = vsel %vm389_vm0, %v652_v13, 0.0  ;;  %v695_v21 = vadd.f32 %v694_v30, %v688_v49  ;;  %v1819_v37 = vpop.permute.xlu2 %793 }
 0x1d4   : >> { %v678_v19 = vrot.slane %v677_v17, 4  ;;  %v654_v22 = vrot.slane %v653_v18, 4 }
 0x1d5   : >> { %v700_v23 = vmul.f32 %v698_v36, %v695_v21  ;;  %v712_v20 = vmul.f32 %v1406_v15, %v695_v21  ;;  %v782_v36 = vmul.f32 1.442695, %v781_v27 }
 0x1d6   : >> { %v679_v28 = vadd.f32 %v678_v19, %v677_v17  ;;  %v655_v31 = vadd.f32 %v654_v22, %v653_v18  ;;  %v806_v17 = vmul.f32 1.442695, %v805_v63  ;;  %v828_v18 = vperm.slane %v1733_v9, 0 }
 0x1d7   : >> { %v701_v33 = vsel %vm389_vm0, %v700_v23, 0.0  ;;  %1411 = vpow2.f32 %v782_v36 }
 0x1d8   : >> { %v680_v34 = vrot.slane %v679_v28, 2  ;;  %v656_v35 = vrot.slane %v655_v31, 2  ;;  %v702_v38 = vrot.slane %v701_v33, 4  ;;  %1413 = vpow2.f32 %v806_v17 }
 0x1d9   : >> { %v722_v39 = vpop.permute.xlu1 %721  ;;  %v715_v40 = vpop.permute.xlu0 %714  ;;  %v829_v61 = vmul.f32 %v828_v18, %v1600_v5  ;;  %v861_v18 = vperm.slane %v1737_v10, 1 }
 0x1da   : >> { %v681_v41 = vadd.f32 %v680_v34, %v679_v28  ;;  %v657_v42 = vadd.f32 %v656_v35, %v655_v31  ;;  %v703_v43 = vadd.f32 %v702_v38, %v701_v33  ;;  %v718_v46 = vmul.f32 %v717_v32, %v715_v40 }
 0x1db   : >> { %v789_v34 = vperm.slane %v1747_v12, 6  ;;  %v852_v35 = vperm.slane %v1733_v9, 1 }
 0x1dc   : >> { %v682_v25 = vrot.slane %v681_v41, 1  ;;  %v658_v51 = vrot.slane %v657_v42, 1  ;;  %v704_v52 = vrot.slane %v703_v43, 2  ;;  %v719_v53 = vadd.f32 %v718_v46, %v712_v20 }
 0x1dd   : >> { %v1828_v44 = vpop.permute.xlu2 %817  ;;  %v1412_v49 = vpop.eup %1411  ;;  %v830_v46 = vmul.f32 1.442695, %v829_v61  ;;  %v924_v61 = vperm.slane %v1733_v9, 4 }
 0x1de   : >> { %v683_v54 = vadd.f32 %v682_v25, %v681_v41  ;;  %v659_v26 = vadd.f32 %v658_v51, %v657_v42  ;;  %v705_v55 = vadd.f32 %v704_v52, %v703_v43  ;;  %v724_v56 = vmul.f32 %v722_v39, %v719_v53  ;;  %v1414_v51 = vpop.eup %1413 }
 0x1df   : >> { %v736_v29 = vmul.f32 %v1408_v50, %v719_v53  ;;  %v853_v50 = vmul.f32 %v852_v35, %v1600_v5  ;;  %v876_v25 = vperm.slane %v1733_v9, 2  ;;  %1415 = vpow2.f32 %v830_v46 }
 0x1e0   : >> { %v1021_v60 = vsel %vm1020_vm2, %v659_v26, %v683_v54  ;;  %v706_v8 = vrot.slane %v705_v55, 1  ;;  %v725_v62 = vsel %vm389_vm0, %v724_v56, 0.0  ;;  %v925_v46 = vmul.f32 %v924_v61, %v1600_v5 }
 0x1e1   : >> { %v726_v0 = vrot.slane %v725_v62, 4  ;;  %v743_v30 = vadd.f32 %v742_v58, %v736_v29  ;;  %v854_v58 = vmul.f32 1.442695, %v853_v50  ;;  %v877_v59 = vmul.f32 %v876_v25, %v1600_v5 }
 0x1e2   : >> { %v707_v4 = vadd.f32 %v706_v8, %v705_v55  ;;  %v746_v6 = vpop.permute.xlu1 %745  ;;  %v813_v8 = vperm.slane %v1747_v12, 7  ;;  %v900_v12 = vperm.slane %v1733_v9, 3  ;;  %v1042_v50 = vperm.slane %v1591_v3, 0 }
 0x1e3   : >> { %v727_v13 = vadd.f32 %v726_v0, %v725_v62  ;;  %v748_v14 = vmul.f32 %v746_v6, %v743_v30  ;;  %v760_v15 = vmul.f32 %v1410_v57, %v743_v30  ;;  %v770_v20 = vpop.permute.xlu0 %769  ;;  %1417 = vpow2.f32 %v854_v58 }
 0x1e4   : >> { %v1023_v16 = vsel %vm1022_vm3, %v1021_v60, %v707_v4  ;;  %v878_v4 = vmul.f32 1.442695, %v877_v59  ;;  %v981_v61 = vperm.slane %v1737_v10, 6 }
 0x1e5   : >> { %v728_v21 = vrot.slane %v727_v13, 2  ;;  %v749_v19 = vsel %vm389_vm0, %v748_v14, 0.0  ;;  %v767_v22 = vadd.f32 %v766_v45, %v760_v15  ;;  %v1416_v6 = vpop.eup %1415  ;;  %v837_v45 = vperm.slane %v1737_v10, 0 }
 0x1e6   : >> { %v750_v23 = vrot.slane %v749_v19, 4  ;;  %v859_v42 = vpop.permute.xlu2 %858  ;;  %1419 = vpow2.f32 %v878_v4 }
 0x1e7   : >> { %v729_v24 = vadd.f32 %v728_v21, %v727_v13  ;;  %v772_v27 = vmul.f32 %v770_v20, %v767_v22  ;;  %v784_v28 = vmul.f32 %v1412_v49, %v767_v22 }
 0x1e8   : >> { %v751_v31 = vadd.f32 %v750_v23, %v749_v19 }
 0x1e9   : >> { %v730_v32 = vrot.slane %v729_v24, 1  ;;  %v773_v33 = vsel %vm389_vm0, %v772_v27, 0.0  ;;  %v1418_v20 = vpop.eup %1417 }
 0x1ea   : >> { %v752_v38 = vrot.slane %v751_v31, 2  ;;  %v774_v39 = vrot.slane %v773_v33, 4 }
 0x1eb   : >> { %v731_v40 = vadd.f32 %v730_v32, %v729_v24  ;;  %v901_v24 = vmul.f32 %v900_v12, %v1600_v5 }
 0x1ec   : >> { %v753_v36 = vadd.f32 %v752_v38, %v751_v31  ;;  %v775_v41 = vadd.f32 %v774_v39, %v773_v33  ;;  %v787_v43 = vpop.permute.xlu1 %786  ;;  %v835_v15 = vpop.permute.xlu0 %834  ;;  %v862_v33 = vmul.f32 %v861_v18, %v859_v42  ;;  %v957_v18 = vperm.slane %v1737_v10, 5 }
 0x1ed   : >> { %v1025_v47 = vsel %vm1024_vm4, %v1023_v16, %v731_v40  ;;  %v790_v48 = vmul.f32 %v789_v34, %v787_v43  ;;  %v838_v19 = vmul.f32 %v837_v45, %v835_v15  ;;  %v1420_v38 = vpop.eup %1419 }
 0x1ee   : >> { %v754_v52 = vrot.slane %v753_v36, 1  ;;  %v776_v53 = vrot.slane %v775_v41, 2 }
 0x1ef   : >> { %v791_v54 = vadd.f32 %v790_v48, %v784_v28 }
 0x1f0   : >> { %v755_v26 = vadd.f32 %v754_v52, %v753_v36  ;;  %v777_v55 = vadd.f32 %v776_v53, %v775_v41  ;;  %v1848_v13 = vpop.permute.xlu2 %906  ;;  %v902_v36 = vmul.f32 1.442695, %v901_v24  ;;  %v972_v53 = vperm.slane %v1733_v9, 6 }
 0x1f1   : >> { %v796_v56 = vmul.f32 %v1819_v37, %v791_v54  ;;  %v808_v57 = vmul.f32 %v1414_v51, %v791_v54  ;;  %v926_v51 = vmul.f32 1.442695, %v925_v46 }
 0x1f2   : >> { %v1027_v29 = vsel %vm1026_vm5, %v1025_v47, %v755_v26  ;;  %v778_v60 = vrot.slane %v777_v55, 1  ;;  %v948_v47 = vperm.slane %v1733_v9, 5  ;;  %1421 = vpow2.f32 %v902_v36 }
 0x1f3   : >> { %v797_v62 = vsel %vm389_vm0, %v796_v56, 0.0  ;;  %v885_v26 = vperm.slane %v1737_v10, 2  ;;  %1423 = vpow2.f32 %v926_v51 }
 0x1f4   : >> { %v779_v63 = vadd.f32 %v778_v60, %v777_v55  ;;  %v798_v0 = vrot.slane %v797_v62, 4  ;;  %v949_v52 = vmul.f32 %v948_v47, %v1600_v5  ;;  %v1044_v55 = vmul.f32 %v1042_v50, %v1741_v11 }
 0x1f5   : >> { %v811_v30 = vpop.permute.xlu1 %810  ;;  %v996_v60 = vperm.slane %v1733_v9, 7 }
 0x1f6   : >> { %v1029_v37 = vsel %vm1028_vm6, %v1027_v29, %v779_v63  ;;  %v799_v49 = vadd.f32 %v798_v0, %v797_v62  ;;  %v814_v14 = vmul.f32 %v813_v8, %v811_v30  ;;  %v931_v56 = vpop.permute.xlu0 %930  ;;  %v950_v59 = vmul.f32 1.442695, %v949_v52 }
 0x1f7   : >> { %v973_v29 = vmul.f32 %v972_v53, %v1600_v5  ;;  %v909_v8 = vperm.slane %v1737_v10, 3 }
 0x1f8   : >> { %v800_v16 = vrot.slane %v799_v49, 2  ;;  %v815_v17 = vadd.f32 %v814_v14, %v808_v57  ;;  %v1422_v0 = vpop.eup %1421  ;;  %1425 = vpow2.f32 %v950_v59 }
 0x1f9   : >> { %v1857_v41 = vpop.permute.xlu2 %978  ;;  %v910_v9 = vmul.f32 %v909_v8, %v1848_v13  ;;  %v1424_v15 = vpop.eup %1423 }
 0x1fa   : >> { %v801_v21 = vadd.f32 %v800_v16, %v799_v49  ;;  %v820_v22 = vmul.f32 %v1828_v44, %v815_v17  ;;  %v832_v23 = vmul.f32 %v1416_v6, %v815_v17  ;;  %v974_v6 = vmul.f32 1.442695, %v973_v29 }
 0x1fb   : >> { %v933_v49 = vperm.slane %v1737_v10, 4 }
 0x1fc   : >> { %v802_v27 = vrot.slane %v801_v21, 1  ;;  %v821_v28 = vsel %vm389_vm0, %v820_v22, 0.0  ;;  %v839_v31 = vadd.f32 %v838_v19, %v832_v23  ;;  %1427 = vpow2.f32 %v974_v6 }
 0x1fd   : >> { %v822_v32 = vrot.slane %v821_v28, 4  ;;  %v934_v19 = vmul.f32 %v933_v49, %v931_v56 }
 0x1fe   : >> { %v803_v34 = vadd.f32 %v802_v27, %v801_v21  ;;  %v856_v35 = vmul.f32 %v1418_v20, %v839_v31  ;;  %v1426_v27 = vpop.eup %1425 }
 0x1ff   : >> { %v823_v39 = vadd.f32 %v822_v32, %v821_v28  ;;  %v842_v40 = vpop.permute.xlu1 %841  ;;  %v914_v17 = vpop.permute.xlu0 %913 }
 0x200   : >> { %v1031_v44 = vsel %vm1030_vm7, %v1029_v37, %v803_v34  ;;  %v1859_v43 = vadd.f32 %v862_v33, %v856_v35  ;;  %v997_v37 = vmul.f32 %v996_v60, %v1600_v5  ;;  %v844_v45 = vmul.f32 %v842_v40, %v839_v31 }
 0x201   : >> { %v824_v48 = vrot.slane %v823_v39, 2 }
 0x202   : >> { %v880_v42 = vmul.f32 %v1420_v38, %v1859_v43  ;;  %v890_v30 = vpop.permute.xlu2 %889  ;;  %v998_v21 = vmul.f32 1.442695, %v997_v37  ;;  %v845_v22 = vsel %vm389_vm0, %v844_v45, 0.0  ;;  %v1428_v40 = vpop.eup %1427 }
 0x203   : >> { %v825_v25 = vadd.f32 %v824_v48, %v823_v39  ;;  %v846_v32 = vrot.slane %v845_v22, 4 }
 0x204   : >> { %1429 = vpow2.f32 %v998_v21 }
 0x205   : >> { %v826_v54 = vrot.slane %v825_v25, 1  ;;  %v847_v47 = vadd.f32 %v846_v32, %v845_v22 }
 0x207   : >> { %v827_v57 = vadd.f32 %v826_v54, %v825_v25 }
 0x208   : >> { %v883_v58 = vpop.permute.xlu1 %882 }
 0x209   : >> { %v1033_v62 = vsel %vm1032_vm8, %v1031_v44, %v827_v57  ;;  %v886_v63 = vmul.f32 %v885_v26, %v883_v58  ;;  %v848_v57 = vrot.slane %v847_v47, 2  ;;  %v1010_v21 = vpop.permute.xlu0 %1009 }
 0x20a   : >> { %v1046_v11 = vadd.f32 %v1044_v55, %v1033_v62  ;;  %v1430_v52 = vpop.eup %1429 }
 0x20b   : >> { %v887_v4 = vadd.f32 %v886_v63, %v880_v42  ;;  %v938_v33 = vpop.permute.xlu2 %937  ;;  %v982_v42 = vmul.f32 %v981_v61, %v1857_v41 }
 0x20c   : >> { %1049 = vst.msk [vmem:[%s1875_s18] sm:$0xff] %vm389_vm0, %v1046_v11 }
 0x20d   : >> { %v904_v14 = vmul.f32 %v1422_v0, %v887_v4  ;;  %v892_v12 = vmul.f32 %v890_v30, %v887_v4  ;;  %v849_v0 = vadd.f32 %v848_v57, %v847_v47  ;;  %v1005_v30 = vperm.slane %v1737_v10, 7 }
 0x20f   : >> { %v911_v16 = vadd.f32 %v910_v9, %v904_v14  ;;  %v893_v13 = vsel %vm389_vm0, %v892_v12, 0.0 }
 0x210   : >> { %v894_v34 = vrot.slane %v893_v13, 4 }
 0x211   : >> { %v916_v23 = vmul.f32 %v914_v17, %v911_v16  ;;  %v928_v20 = vmul.f32 %v1424_v15, %v911_v16  ;;  %v955_v24 = vpop.permute.xlu1 %954 }
 0x212   : >> { %v958_v39 = vmul.f32 %v957_v18, %v955_v24  ;;  %v895_v25 = vadd.f32 %v894_v34, %v893_v13 }
 0x213   : >> { %v917_v28 = vsel %vm389_vm0, %v916_v23, 0.0  ;;  %v935_v31 = vadd.f32 %v934_v19, %v928_v20 }
 0x214   : >> { %v918_v36 = vrot.slane %v917_v28, 4  ;;  %v896_v58 = vrot.slane %v895_v25, 2  ;;  %v986_v63 = vpop.permute.xlu2 %985 }
 0x215   : >> { %v940_v35 = vmul.f32 %v938_v33, %v935_v31  ;;  %v952_v38 = vmul.f32 %v1426_v27, %v935_v31 }
 0x216   : >> { %v919_v53 = vadd.f32 %v918_v36, %v917_v28  ;;  %v897_v4 = vadd.f32 %v896_v58, %v895_v25 }
 0x217   : >> { %v941_v44 = vsel %vm389_vm0, %v940_v35, 0.0  ;;  %v959_v46 = vadd.f32 %v958_v39, %v952_v38 }
 0x218   : >> { %v942_v48 = vrot.slane %v941_v44, 4  ;;  %v920_v60 = vrot.slane %v919_v53, 2  ;;  %v898_v12 = vrot.slane %v897_v4, 1 }
 0x219   : >> { %v976_v51 = vmul.f32 %v1428_v40, %v959_v46 }
 0x21a   : >> { %v866_v54 = vpop.permute.xlu1 %865  ;;  %v943_v26 = vadd.f32 %v942_v48, %v941_v44  ;;  %v921_v6 = vadd.f32 %v920_v60, %v919_v53  ;;  %v899_v24 = vadd.f32 %v898_v12, %v897_v4 }
 0x21b   : >> { %v983_v55 = vadd.f32 %v982_v42, %v976_v51  ;;  %v868_v56 = vmul.f32 %v866_v54, %v1859_v43  ;;  %v850_v43 = vrot.slane %v849_v0, 1 }
 0x21c   : >> { %v944_v62 = vrot.slane %v943_v26, 2  ;;  %v922_v16 = vrot.slane %v921_v6, 1 }
 0x21d   : >> { %v869_v59 = vsel %vm389_vm0, %v868_v56, 0.0  ;;  %v1000_v29 = vmul.f32 %v1430_v52, %v983_v55  ;;  %v988_v41 = vmul.f32 %v986_v63, %v983_v55  ;;  %v851_v23 = vadd.f32 %v850_v43, %v849_v0 }
 0x21e   : >> { %v870_v8 = vrot.slane %v869_v59, 4  ;;  %v945_v9 = vadd.f32 %v944_v62, %v943_v26  ;;  %v923_v27 = vadd.f32 %v922_v16, %v921_v6 }
 0x21f   : >> { %v989_v45 = vsel %vm389_vm0, %v988_v41, 0.0 }
 0x220   : >> { %v871_v11 = vadd.f32 %v870_v8, %v869_v59  ;;  %v946_v19 = vrot.slane %v945_v9, 1  ;;  %v990_v22 = vrot.slane %v989_v45, 4 }
 0x222   : >> { %v872_v37 = vrot.slane %v871_v11, 2  ;;  %v947_v31 = vadd.f32 %v946_v19, %v945_v9  ;;  %v991_v61 = vadd.f32 %v990_v22, %v989_v45 }
 0x223   : >> { %v1003_v49 = vpop.permute.xlu1 %1002 }
 0x224   : >> { %v873_v14 = vadd.f32 %v872_v37, %v871_v11  ;;  %v1006_v15 = vmul.f32 %v1005_v30, %v1003_v49  ;;  %v992_v36 = vrot.slane %v991_v61, 2 }
 0x226   : >> { %v874_v17 = vrot.slane %v873_v14, 1  ;;  %v1007_v18 = vadd.f32 %v1006_v15, %v1000_v29   ;;  %v993_v25 = vadd.f32 %v992_v36, %v991_v61 }
 0x228   : >> { %v875_v20 = vadd.f32 %v874_v17, %v873_v14  ;;  %v1012_v10 = vmul.f32 %v1010_v21, %v1007_v18  ;;  %v994_v54 = vrot.slane %v993_v25, 1  ;;  %v1940_v4 = vmov %v1007_v18 }
 0x22a   : >> { %v1034_v13 = vsel %vm1020_vm2, %v851_v23, %v875_v20  ;;  %v1013_v28 = vsel %vm389_vm0, %v1012_v10, 0.0  ;;  %v995_v57 = vadd.f32 %v994_v54, %v993_v25 }
 0x22b   : >> { %v1035_v32 = vsel %vm1022_vm3, %v1034_v13, %v899_v24  ;;  %v1014_v33 = vrot.slane %v1013_v28, 4 }
 0x22c   : >> { %v962_v34 = vpop.permute.xlu1 %961  ;;  %v1036_v35 = vsel %vm1024_vm4, %v1035_v32, %v923_v27 }
 0x22d   : >> { %v1015_v38 = vadd.f32 %v1014_v33, %v1013_v28  ;;  %v964_v39 = vmul.f32 %v962_v34, %v959_v46  ;;  %v1037_v40 = vsel %vm1026_vm5, %v1036_v35, %v947_v31  ;;  %v1045_v46 = vmul.f32 %v1042_v50, %v1728_v7 }
 0x22f   : >> { %v965_v44 = vsel %vm389_vm0, %v964_v39, 0.0  ;;  %v1016_v47 = vrot.slane %v1015_v38, 2 }
 0x230   : >> { %v966_v48 = vrot.slane %v965_v44, 4 }
 0x231   : >> { %v1017_v51 = vadd.f32 %v1016_v47, %v1015_v38 }
 0x232   : >> { %v967_v42 = vadd.f32 %v966_v48, %v965_v44 }
 0x233   : >> { %v1018_v26 = vrot.slane %v1017_v51, 1 }
 0x234   : >> { %v968_v52 = vrot.slane %v967_v42, 2 }
 0x235   : >> { %v1019_v58 = vadd.f32 %v1018_v26, %v1017_v51 }
 0x236   : >> { %v969_v53 = vadd.f32 %v968_v52, %v967_v42 }
 0x238   : >> { %v970_v55 = vrot.slane %v969_v53, 1 }
 0x23a   : >> { %v971_v56 = vadd.f32 %v970_v55, %v969_v53 }
 0x23c   : >> { %v1038_v59 = vsel %vm1028_vm6, %v1037_v40, %v971_v56 }
 0x23d   : >> { %v1039_v29 = vsel %vm1030_vm7, %v1038_v59, %v995_v57  ;;  %587 = sbr.rel (!%p585_p7) target bundleno = 205 (0xcd), region = 99 }
 0x23e   : >> { %v1040_v60 = vsel %vm1032_vm8, %v1039_v29, %v1019_v58 }
 0x23f   : >> { %v1047_v8 = vadd.f32 %v1045_v46, %v1040_v60 }
 0x241   : >> { %1050 = vst.msk [vmem:[%s1875_s18 + $0x8] sm:$0xff] %vm389_vm0, %v1047_v8 }
 0x242 PF: > { %s16_s25 = sadd.s32 1, %s1477_s25   ;;  %s1941_s21 = smov %s1469_s23 }
 0x243   : > { %p13_p8 = scmp.ge.s32.totalorder %s16_s25, 6   ;;  %s1942_s22 = smov %s1473_s24 }
 0x244   : > { %s1943_s23 = smov %s1946_s26  ;;  %s1944_s24 = smov %s1950_s27 }
 0x245   :  { %15 = sbr.rel (!%p13_p8) target bundleno = 3 (0x3), region = 110 }

// kernel: ss2d_forward.4
= control target key start
LH: loop header
LB: loop body
LE: loop exit
PB: predicated region body
PF: predicated region fallthrough
CT: control target
= control target key end

     0   :  { %s1537_s21 = smov 0   ;;  %s1539_s22 = smov 0   ;;  %s1932_s0 = inlined_call_operand.vmem [shape: f32[2,2,64,32], index: 0, kind: input, shape index: {}]   ;;  %s1933_s1 = inlined_call_operand.vmem [shape: f32[2,32,32], index: 1, kind: input, shape index: {}]   ;;  %s1934_s2 = inlined_call_operand.vmem [shape: f32[2,16,32], index: 2, kind: input, shape index: {}]   ;;  %s1935_s3 = inlined_call_operand.vmem [shape: f32[2,1,32], index: 3, kind: input, shape index: {}]   ;;  %s1936_s4 = inlined_call_operand.vmem [shape: f32[2,8,32], index: 4, kind: input, shape index: {}]   ;;  %s1937_s5 = inlined_call_operand.vmem [shape: f32[2,1,32], index: 5, kind: input, shape index: {}]   ;;  %s1938_s6 = inlined_call_operand.vmem [shape: f32[2,2,64,32], index: 6, kind: output, shape index: {}]  }
   0x1   :  { %s1541_s23 = smov 0   ;;  %s1543_s24 = smov 0  }
   0x2   :  { %s1545_s25 = smov 0  }
   0x3 LB: > { %s25_s26 = sadd.s32 1, %s1468_s23  ;;  %s28_s27 = sadd.s32 1, %s1472_s24  ;;  %s1476_s25 = sphi %s1545_s25, %s16_s25   ;;  %s1472_s24 = sphi %s1543_s24, %s1946_s24   ;;  %s1468_s23 = sphi %s1541_s23, %s1945_s23   ;;  %s1464_s22 = sphi %s1539_s22, %s1944_s22   ;;  %s1460_s21 = sphi %s1537_s21, %s1943_s21  }
   0x4   : > { %p26_p0 = scmp.ge.s32.totalorder %s25_s26, 2  ;;  %p1219_p1 = scmp.ge.s32.totalorder %s1476_s25, 1 }
   0x5   : > { %p277_p2 = scmp.lt.s32.totalorder %s1476_s25, 5 }
   0x6   : > { %s1948_s26 = smov (%p26_p0, %s25_s26), 0  ;;  %s1950_s27 = smov (!%p26_p0, %s28_s27), %s1472_s24 }
   0x7   : > { %p278_p3 = pnand %p1219_p1, %p277_p2  ;;  %p30_p4 = scmp.ge.s32.totalorder %s1950_s27, 2 }
   0x8   : > { %p337_p5 = scmp.lt.s32.totalorder (!%p278_p3), %s1464_s22, 1  ;;  %p335_p6 = scmp.lt.s32.totalorder (!%p278_p3), %s1460_s21, 1 }
   0x9   : > { %s1952_s27 = smov (%p30_p4, %s1950_s27), 0  ;;  %281 = sbr.rel (%p278_p3) target bundleno = 577 (0x241), region = 44 }
   0xe   : > { %s1954_s22 = smov (!%p337_p5, %s1464_s22), 1  ;;  %s1956_s21 = smov (!%p335_p6, %s1460_s21), 1  ;;  %vm389_vm0 = vcmask 261120  }
   0xf   : > { %s1250_s28 = sshll.u32 %s1954_s22, 5  ;;  %s1251_s29 = sshll.u32 %s1954_s22, 4 }
  0x10   : > { %s348_s8 = scalar_lea.vmem %s1933_s1, %s1250_s28  ;;  %s353_s11 = scalar_lea.vmem %s1934_s2, %s1251_s29 }
  0x11   : > { %s356_s14 = scalar_lea.vmem %s1935_s3, %s1954_s22  ;;  %s363_s17 = scalar_lea.vmem %s1937_s5, %s1954_s22  ;;  %v384_v0 = vld [vmem:[%s348_s8 + $0x18] sm:$0xff]  ;;  %v1585_v1 = vld [vmem:[%s353_s11] sm:$0xff]  ;;  %v1587_v2 = vld [vmem:[%s353_s11 + $0x8] sm:$0xff] }
  0x12   : > { %1231 = vmatpush.xpose.msk.msra.mxu0 %vm389_vm0, %v384_v0  ;;  %v1590_v3 = vld [vmem:[%s363_s17] sm:$0x1]  ;;  %1252 = vmatpush.xpose.msk.msra.mxu1 %vm389_vm0, %v384_v0  ;;  %s1220_s18 = sshll.u32 %s1954_s22, 3  ;;  %s1221_s19 = sshll.u32 %s1956_s21, 4  ;;  %v383_v4 = vld [vmem:[%s348_s8 + $0x10] sm:$0xff]  ;;  %v382_v6 = vld [vmem:[%s348_s8 + $0x8] sm:$0xff] }
  0x13   : > { %1253 = vmatpush.xpose.msk.msra.mxu2 %vm389_vm0, %v384_v0  ;;  %1254 = vmatpush.xpose.msk.msra.mxu3 %vm389_vm0, %v384_v0  ;;  %s341_s20 = sadd.s32 %s1221_s19, %s1220_s18  ;;  %s360_s30 = scalar_lea.vmem %s1936_s4, %s1220_s18  ;;  %v381_v7 = vld [vmem:[%s348_s8] sm:$0xff] }
  0x14   : > { %s1222_s7 = sshll.u32 %s341_s20, 3  ;;  %v1599_v5 = vld [vmem:[%s360_s30] sm:$0xff]  ;;  %s1714_s22 = smov 0  }
  0x15   : > { %s1604_s11 = scalar_lea.vmem %s1938_s6, %s1222_s7  ;;  %s1617_s13 = scalar_lea.vmem %s1932_s0, %s1222_s7  ;;  %v1338_v16 = vld [vmem:[%s356_s14] ss:$0 sm:$0xff] }
  0x16   : > { %1232 = vmatpush.xpose.msk.msra.mxu0 %vm389_vm0, %v383_v4  ;;  %1255 = vmatpush.xpose.msk.msra.mxu1 %vm389_vm0, %v383_v4  ;;  %v373_v8 = vld [vmem:[%s1617_s13] sm:$0xff]  ;;  %v375_v9 = vld [vmem:[%s1617_s13 + $0x10] sm:$0xff]  ;;  %v374_v12 = vld [vmem:[%s1617_s13 + $0x8] sm:$0xff] }
  0x17   : > { %1256 = vmatpush.xpose.msk.msra.mxu2 %vm389_vm0, %v383_v4  ;;  %1257 = vmatpush.xpose.msk.msra.mxu3 %vm389_vm0, %v383_v4  ;;  %v377_v10 = vld [vmem:[%s1617_s13 + $0x20] sm:$0xff]  ;;  %v379_v11 = vld [vmem:[%s1617_s13 + $0x30] sm:$0xff]  ;;  %v376_v13 = vld [vmem:[%s1617_s13 + $0x18] sm:$0xff] }
  0x18   : > { %v378_v14 = vld [vmem:[%s1617_s13 + $0x28] sm:$0xff]  ;;  %v380_v15 = vld [vmem:[%s1617_s13 + $0x38] sm:$0xff] }
  0x1a   : > { %1233 = vmatpush.xpose.msk.msra.mxu0 %vm389_vm0, %v382_v6  ;;  %1258 = vmatpush.xpose.msk.msra.mxu1 %vm389_vm0, %v382_v6 }
  0x1b   : > { %1259 = vmatpush.xpose.msk.msra.mxu2 %vm389_vm0, %v382_v6  ;;  %1260 = vmatpush.xpose.msk.msra.mxu3 %vm389_vm0, %v382_v6 }
  0x1e   : > { %1234 = vmatpush.xpose.msk.msra.mxu0 %vm389_vm0, %v381_v7  ;;  %1261 = vmatpush.xpose.msk.msra.mxu1 %vm389_vm0, %v381_v7 }
  0x1f   : > { %1262 = vmatpush.xpose.msk.msra.mxu2 %vm389_vm0, %v381_v7  ;;  %1263 = vmatpush.xpose.msk.msra.mxu3 %vm389_vm0, %v381_v7 }
  0x21   : > { %1235 = vmatmul.msk.f32.vlgmr.msra.gmra.mxu0 %vm389_vm0, %v373_v8  ;;  %1237 = vmatmul.msk.f32.vlgmr.msra.gmra.mxu1 %vm389_vm0, %v375_v9 }
  0x22   : > { %1239 = vmatmul.msk.f32.vlgmr.msra.gmra.mxu2 %vm389_vm0, %v377_v10  ;;  %1241 = vmatmul.msk.f32.vlgmr.msra.gmra.mxu3 %vm389_vm0, %v379_v11 }
  0x29   : > { %1236 = vmatmul.msk.f32.gmra.mxu0 %vm389_vm0, %v374_v12  ;;  %1238 = vmatmul.msk.f32.gmra.mxu1 %vm389_vm0, %v376_v13 }
  0x2a   : > { %1240 = vmatmul.msk.f32.gmra.mxu2 %vm389_vm0, %v378_v14  ;;  %1242 = vmatmul.msk.f32.gmra.mxu3 %vm389_vm0, %v380_v15 }
  0x9e   : > { %v443_v17 = vpop.f32.mrf.mxu0  ;;  %v449_v18 = vpop.f32.mrf.mxu1 }
  0x9f   : > { %v1644_v19 = vadd.f32 %v1338_v16, %v443_v17  ;;  %v1646_v20 = vadd.f32 %v1338_v16, %v449_v18 }
  0xa1   : > { %v475_v21 = vmul.f32 1.442695, %v1644_v19  ;;  %v479_v22 = vmul.f32 1.442695, %v1646_v20  ;;  %vm467_vm1 = vcmp.gt.f32.partialorder %v1644_v19, 20.0  ;;  %vm469_vm2 = vcmp.gt.f32.partialorder %v1646_v20, 20.0 }
  0xa3   : > { %1339 = vpow2.f32 %v475_v21 }
  0xa4   : > { %1341 = vpow2.f32 %v479_v22 }
  0xa5   : > { %v455_v23 = vpop.f32.mrf.mxu2  ;;  %v461_v24 = vpop.f32.mrf.mxu3 }
  0xa6   : > { %v1650_v25 = vadd.f32 %v1338_v16, %v455_v23  ;;  %v1652_v26 = vadd.f32 %v1338_v16, %v461_v24  ;;  %v446_v27 = vpop.f32.mrf.mxu0  ;;  %v452_v28 = vpop.f32.mrf.mxu1 }
  0xa7   : > { %v1654_v29 = vadd.f32 %v1338_v16, %v446_v27  ;;  %v1656_v30 = vadd.f32 %v1338_v16, %v452_v28 }
  0xa8   : > { %v483_v31 = vmul.f32 1.442695, %v1650_v25  ;;  %v487_v32 = vmul.f32 1.442695, %v1652_v26  ;;  %vm471_vm5 = vcmp.gt.f32.partialorder %v1650_v25, 20.0  ;;  %vm473_vm7 = vcmp.gt.f32.partialorder %v1652_v26, 20.0 }
  0xa9   : > { %v1340_v33 = vpop.eup %1339  ;;  %v477_v36 = vmul.f32 1.442695, %v1654_v29  ;;  %v481_v39 = vmul.f32 1.442695, %v1656_v30  ;;  %vm468_vm9 = vcmp.gt.f32.partialorder %v1654_v29, 20.0  ;;  %vm470_vm12 = vcmp.gt.f32.partialorder %v1656_v30, 20.0 }
  0xaa   : > { %v1342_v34 = vpop.eup %1341  ;;  %v491_v35 = vadd.f32 1.0, %v1340_v33  ;;  %1343 = vpow2.f32 %v483_v31  ;;  %v494_v37 = vmul.f32 -0.5, %v1340_v33  ;;  %v497_v43 = vand.u32 2147483647, %v1340_v33 }
  0xab   : > { %v509_v38 = vadd.f32 1.0, %v1342_v34  ;;  %1345 = vpow2.f32 %v487_v32  ;;  %v512_v40 = vmul.f32 -0.5, %v1342_v34  ;;  %v515_v51 = vand.u32 2147483647, %v1342_v34 }
  0xac   : > { %1347 = vlog2.f32 %v491_v35  ;;  %v495_v45 = vadd.f32 1.0, %v494_v37  ;;  %vm1669_vm3 = vcmp.lt.f32.partialorder %v497_v43, 0.0004427343 }
  0xad   : > { %1349 = vlog2.f32 %v509_v38  ;;  %v458_v41 = vpop.f32.mrf.mxu2  ;;  %v464_v42 = vpop.f32.mrf.mxu3  ;;  %v513_v47 = vadd.f32 1.0, %v512_v40  ;;  %vm516_vm4 = vcmp.lt.f32.partialorder %v515_v51, 0.0004427343 }
  0xae   : > { %1351 = vpow2.f32 %v477_v36  ;;  %v1662_v44 = vadd.f32 %v1338_v16, %v458_v41  ;;  %v1665_v49 = vadd.f32 %v1338_v16, %v464_v42  ;;  %v496_v59 = vmul.f32 %v1340_v33, %v495_v45 }
  0xaf   : > { %1353 = vpow2.f32 %v481_v39  ;;  %v514_v63 = vmul.f32 %v1342_v34, %v513_v47 }
  0xb0   : > { %v1344_v46 = vpop.eup %1343  ;;  %v485_v48 = vmul.f32 1.442695, %v1662_v44  ;;  %v489_v0 = vmul.f32 1.442695, %v1665_v49  ;;  %vm472_vm14 = vcmp.gt.f32.partialorder %v1662_v44, 20.0 }
  0xb1   : > { %v1346_v50 = vpop.eup %1345  ;;  %v527_v52 = vadd.f32 1.0, %v1344_v46  ;;  %v530_v55 = vmul.f32 -0.5, %v1344_v46  ;;  %v533_v7 = vand.u32 2147483647, %v1344_v46 }
  0xb2   : > { %v1348_v53 = vpop.eup %1347  ;;  %v545_v56 = vadd.f32 1.0, %v1346_v50  ;;  %1355 = vpow2.f32 %v485_v48  ;;  %v548_v60 = vmul.f32 -0.5, %v1346_v50  ;;  %v551_v17 = vand.u32 2147483647, %v1346_v50 }
  0xb3   : > { %v1350_v57 = vpop.eup %1349  ;;  %v493_v58 = vmul.f32 0.6931472, %v1348_v53  ;;  %1357 = vlog2.f32 %v527_v52  ;;  %v531_v11 = vadd.f32 1.0, %v530_v55  ;;  %vm1685_vm6 = vcmp.lt.f32.partialorder %v533_v7, 0.0004427343 }
  0xb4   : > { %v1352_v61 = vpop.eup %1351  ;;  %v511_v62 = vmul.f32 0.6931472, %v1350_v57  ;;  %1359 = vlog2.f32 %v545_v56  ;;  %v549_v14 = vadd.f32 1.0, %v548_v60  ;;  %vm552_vm8 = vcmp.lt.f32.partialorder %v551_v17, 0.0004427343 }
  0xb5   : > { %v1354_v4 = vpop.eup %1353  ;;  %v499_v6 = vsel %vm1669_vm3, %v496_v59, %v493_v58  ;;  %v500_v8 = vadd.f32 1.0, %v1352_v61  ;;  %v503_v12 = vmul.f32 -0.5, %v1352_v61  ;;  %v532_v24 = vmul.f32 %v1344_v46, %v531_v11 }
  0xb6   : > { %v563_v9 = vsel %vm467_vm1, %v1644_v19, %v499_v6  ;;  %v517_v10 = vsel %vm516_vm4, %v514_v63, %v511_v62  ;;  %v518_v15 = vadd.f32 1.0, %v1354_v4  ;;  %v521_v18 = vmul.f32 -0.5, %v1354_v4 }
  0xb7   : > { %571 = vst.msk [vmem:[#allocation2] sm:$0xff] %vm389_vm0, %v563_v9  ;;  %v565_v13 = vsel %vm469_vm2, %v1646_v20, %v517_v10  ;;  %1361 = vlog2.f32 %v500_v8  ;;  %v504_v27 = vadd.f32 1.0, %v503_v12  ;;  %v550_v32 = vmul.f32 %v1346_v50, %v549_v14 }
  0xb8   : > { %v1356_v16 = vpop.eup %1355  ;;  %573 = vst.msk [vmem:[#allocation2 + $0x10] sm:$0xff] %vm389_vm0, %v565_v13  ;;  %1363 = vpow2.f32 %v489_v0  ;;  %v506_v33 = vand.u32 2147483647, %v1352_v61  ;;  %v522_v35 = vadd.f32 1.0, %v521_v18  ;;  %v524_v39 = vand.u32 2147483647, %v1354_v4 }
  0xb9   : > { %v1358_v21 = vpop.eup %1357  ;;  %1365 = vlog2.f32 %v518_v15  ;;  %v536_v22 = vadd.f32 1.0, %v1356_v16  ;;  %v539_v28 = vmul.f32 -0.5, %v1356_v16  ;;  %v505_v43 = vmul.f32 %v1352_v61, %v504_v27 }
  0xba   : > { %v1360_v23 = vpop.eup %1359  ;;  %v529_v20 = vmul.f32 0.6931472, %v1358_v21  ;;  %vm507_vm10 = vcmp.lt.f32.partialorder %v506_v33, 0.0004427343  ;;  %v542_v47 = vand.u32 2147483647, %v1356_v16  ;;  %v523_v51 = vmul.f32 %v1354_v4, %v522_v35 }
  0xbb   : > { %v547_v31 = vmul.f32 0.6931472, %v1360_v23  ;;  %1367 = vlog2.f32 %v536_v22  ;;  %v540_v45 = vadd.f32 1.0, %v539_v28  ;;  %vm525_vm11 = vcmp.lt.f32.partialorder %v524_v39, 0.0004427343 }
  0xbc   : > { %v535_v34 = vsel %vm1685_vm6, %v532_v24, %v529_v20  ;;  %vm543_vm13 = vcmp.lt.f32.partialorder %v542_v47, 0.0004427343  ;;  %vm474_vm1 = vcmp.gt.f32.partialorder %v1665_v49, 20.0  ;;  %v1712_v4 = vmov 0.0  }
  0xbd   : > { %v1362_v36 = vpop.eup %1361  ;;  %v567_v37 = vsel %vm471_vm5, %v1650_v25, %v535_v34  ;;  %v553_v38 = vsel %vm552_vm8, %v550_v32, %v547_v31  ;;  %v541_v56 = vmul.f32 %v1356_v16, %v540_v45 }
  0xbe   : > { %v1364_v40 = vpop.eup %1363  ;;  %575 = vst.msk [vmem:[#allocation2 + $0x20] sm:$0xff] %vm389_vm0, %v567_v37  ;;  %v569_v41 = vsel %vm473_vm7, %v1652_v26, %v553_v38  ;;  %v502_v42 = vmul.f32 0.6931472, %v1362_v36 }
  0xbf   : > { %v1366_v46 = vpop.eup %1365  ;;  %577 = vst.msk [vmem:[#allocation2 + $0x30] sm:$0xff] %vm389_vm0, %v569_v41  ;;  %v554_v48 = vadd.f32 1.0, %v1364_v40  ;;  %v557_v52 = vmul.f32 -0.5, %v1364_v40  ;;  %v560_v60 = vand.u32 2147483647, %v1364_v40 }
  0xc0   : > { %v508_v50 = vsel %vm507_vm10, %v505_v43, %v502_v42  ;;  %v520_v25 = vmul.f32 0.6931472, %v1366_v46 }
  0xc1   : > { %v1368_v53 = vpop.eup %1367  ;;  %v564_v54 = vsel %vm468_vm9, %v1654_v29, %v508_v50  ;;  %1369 = vlog2.f32 %v554_v48  ;;  %v558_v59 = vadd.f32 1.0, %v557_v52  ;;  %vm561_vm15 = vcmp.lt.f32.partialorder %v560_v60, 0.0004427343 }
  0xc2   : > { %572 = vst.msk [vmem:[#allocation2 + $0x8] sm:$0xff] %vm389_vm0, %v564_v54  ;;  %v526_v26 = vsel %vm525_vm11, %v523_v51, %v520_v25  ;;  %v538_v55 = vmul.f32 0.6931472, %v1368_v53 }
  0xc3   : > { %v566_v57 = vsel %vm470_vm12, %v1656_v30, %v526_v26  ;;  %v559_v63 = vmul.f32 %v1364_v40, %v558_v59 }
  0xc4   : > { %574 = vst.msk [vmem:[#allocation2 + $0x18] sm:$0xff] %vm389_vm0, %v566_v57  ;;  %v544_v58 = vsel %vm543_vm13, %v541_v56, %v538_v55 }
  0xc5   : > { %v568_v29 = vsel %vm472_vm14, %v1662_v44, %v544_v58 }
  0xc6   : > { %576 = vst.msk [vmem:[#allocation2 + $0x28] sm:$0xff] %vm389_vm0, %v568_v29 }
  0xc7   : > { %v1370_v61 = vpop.eup %1369 }
  0xc8   : > { %v556_v62 = vmul.f32 0.6931472, %v1370_v61 }
  0xca   : > { %v562_v0 = vsel %vm561_vm15, %v559_v63, %v556_v62 }
  0xcb   : > { %v570_v30 = vsel %vm474_vm1, %v1665_v49, %v562_v0 }
  0xcc   : > { %578 = vst.msk [vmem:[#allocation2 + $0x38] sm:$0xff] %vm389_vm0, %v570_v30 }
  0xcd LB: >> { %v1486_v44 = vmov 13   ;;  %v1487_v6 = vmov 14   ;;  %s590_s14 = ssub.s32 3, %s1484_s22  ;;  %v1488_v49 = vmov 15   ;;  %v1489_v15 = vmov 11   ;;  %s588_s22 = sadd.s32 1, %s1484_s22   ;;  %s1484_s22 = sphi %s1714_s22, %s588_s22   ;;  %v1480_v4 = vphi %v1712_v4, %v1888_v4  }
  0xce   : >> { %1373 = vset.pattern.permute.xlu2 %v1486_v44  ;;  %1372 = vset.pattern.permute.xlu1 %v1487_v6  ;;  %s1723_s16 = sshll.u32 %s590_s14, 4  ;;  %v1490_v16 = vmov 12   ;;  %v1491_v17 = vmov 10   ;;  %v1492_v18 = vmov 9   ;;  %v1493_v21 = vmov 7   ;;  %p585_p7 = scmp.ge.s32.totalorder %s588_s22, 4  }
  0xcf   : >> { %1371 = vset.pattern.permute.xlu0 %v1488_v49  ;;  %s592_s17 = scalar_lea.vmem %s1617_s13, %s1723_s16  ;;  %s595_s18 = scalar_lea.vmem [#allocation2], %s1723_s16  ;;  %v1494_v19 = vmov 8   ;;  %v1495_v22 = vmov 2   ;;  %v1496_v23 = vmov 5   ;;  %v1497_v20 = vmov 6  }
  0xd0   : >> { %v1727_v7 = vld [vmem:[%s592_s17 + $0x8] sm:$0xff]  ;;  %v1740_v11 = vld [vmem:[%s592_s17] sm:$0xff]  ;;  %v1498_v24 = vmov 3   ;;  %v1499_v27 = vmov 4   ;;  %v1500_v28 = vmov 0   ;;  %v1501_v31 = vmov 1   ;;  %s1873_s19 = scalar_lea.vmem %s1604_s11, %s1723_s16 }
  0xd1   : >> { %1244 = vmatpush.xpose.msk.msra.mxu0 %vm389_vm0, %v1727_v7  ;;  %1264 = vmatpush.xpose.msk.msra.mxu1 %vm389_vm0, %v1727_v7  ;;  %vm1021_vm2 = vcmask 1040384   ;;  %vm1023_vm3 = vcmask 1041408   ;;  %vm1025_vm4 = vcmask 1042432   ;;  %vm1027_vm5 = vcmask 1043456  }
  0xd2   : >> { %vm1029_vm6 = vcmask 1044480   ;;  %vm1031_vm7 = vcmask 1045504   ;;  %vm1033_vm8 = vcmask 1046528  }
  0xd3   : >> { %v1730_v8 = vld [vmem:[%s595_s18] sm:$0xff]  ;;  %v1732_v9 = vld [vmem:[%s595_s18 + $0x8] sm:$0xff] }
  0xd4   : >> { %v1736_v10 = vmul.f32 %v1732_v9, %v1727_v7  ;;  %v1746_v12 = vmul.f32 %v1730_v8, %v1740_v11  ;;  %v635_v33 = vperm.slane %v1732_v9, 7  ;;  %v661_v36 = vperm.slane %v1732_v9, 6 }
  0xd5   : >> { %1245 = vmatpush.xpose.msk.msra.mxu0 %vm389_vm0, %v1740_v11  ;;  %1265 = vmatpush.xpose.msk.msra.mxu1 %vm389_vm0, %v1740_v11  ;;  %v685_v39 = vperm.slane %v1732_v9, 5  ;;  %v709_v42 = vperm.slane %v1732_v9, 4  ;;  %v733_v55 = vperm.slane %v1732_v9, 3  ;;  %v757_v62 = vperm.slane %v1732_v9, 2 }
  0xd6   : >> { %v636_v34 = vmul.f32 %v635_v33, %v1599_v5  ;;  %v662_v38 = vmul.f32 %v661_v36, %v1599_v5  ;;  %v645_v48 = vperm.slane %v1736_v10, 7  ;;  %v670_v53 = vperm.slane %v1736_v10, 6 }
  0xd7   : >> { %v686_v41 = vmul.f32 %v685_v39, %v1599_v5  ;;  %v710_v47 = vmul.f32 %v709_v42, %v1599_v5  ;;  %v694_v58 = vperm.slane %v1736_v10, 5  ;;  %v734_v61 = vmul.f32 %v733_v55, %v1599_v5 }
  0xd8   : >> { %1246 = vmatmul.msk.f32.vlgmr.msra.gmra.mxu0 %vm389_vm0, %v1585_v1  ;;  %1247 = vmatmul.msk.f32.vlgmr.msra.gmra.mxu1 %vm389_vm0, %v1587_v2  ;;  %v637_v37 = vmul.f32 1.442695, %v636_v34  ;;  %v663_v40 = vmul.f32 1.442695, %v662_v38  ;;  %v766_v34 = vperm.slane %v1736_v10, 2 }
  0xd9   : >> { %v687_v46 = vmul.f32 1.442695, %v686_v41  ;;  %v711_v52 = vmul.f32 1.442695, %v710_v47  ;;  %v735_v49 = vmul.f32 1.442695, %v734_v61 }
  0xda   : >> { %1398 = vpow2.f32 %v637_v37 }
  0xdb   : >> { %1400 = vpow2.f32 %v663_v40 }
  0xdc   : >> { %1402 = vpow2.f32 %v687_v46 }
  0xdd   : >> { %1404 = vpow2.f32 %v711_v52  ;;  %v790_v52 = vperm.slane %v1736_v10, 1 }
  0xde   : >> { %1406 = vpow2.f32 %v735_v49 }
  0xe0   : >> { %v1399_v45 = vpop.eup %1398 }
  0xe1   : >> { %v639_v25 = vmul.f32 %v1480_v4, %v1399_v45  ;;  %v1401_v26 = vpop.eup %1400 }
  0xe2   : >> { %v1403_v60 = vpop.eup %1402 }
  0xe3   : >> { %v1405_v6 = vpop.eup %1404 }
 0x155   : >> { %v629_v13 = vpop.f32.mrf.mxu0  ;;  %v1756_v14 = vpop.f32.mrf.mxu1 }
 0x156   : >> { %691 = vperm.xlu2 %1373, %v629_v13   ;;  %667 = vperm.xlu1 %1372, %v629_v13  }
 0x157   : >> { %642 = vperm.xlu0 %1371, %v629_v13  }
 0x15e   : >> { %698 = vperm.xlu2 %1373, %v1756_v14   ;;  %674 = vperm.xlu1 %1372, %v1756_v14  }
 0x15f   : >> { %650 = vperm.xlu0 %1371, %v1756_v14  }
 0x166   : >> { %1376 = vset.pattern.permute.xlu2 %v1489_v15  ;;  %1375 = vset.pattern.permute.xlu1 %v1490_v16 }
 0x167   : >> { %1374 = vset.pattern.permute.xlu0 %v1490_v16  ;;  %739 = vperm.xlu2 %1376, %v629_v13  }
 0x168   : >> { %722 = vperm.xlu1 %1375, %v1756_v14   ;;  %715 = vperm.xlu0 %1374, %v629_v13  }
 0x16f   : >> { %1378 = vset.pattern.permute.xlu2 %v1491_v17 }
 0x170   : >> { %1377 = vset.pattern.permute.xlu1 %v1489_v15  ;;  %1379 = vset.pattern.permute.xlu0 %v1491_v17 }
 0x171   : >> { %763 = vperm.xlu2 %1378, %v629_v13   ;;  %746 = vperm.xlu1 %1377, %v1756_v14  }
 0x172   : >> { %770 = vperm.xlu0 %1379, %v1756_v14  }
 0x179   : >> { %1381 = vset.pattern.permute.xlu2 %v1492_v18  ;;  %1380 = vset.pattern.permute.xlu1 %v1492_v18  ;;  %v718_v18 = vperm.slane %v1736_v10, 4 }
 0x17a   : >> { %1384 = vset.pattern.permute.xlu0 %v1493_v21  ;;  %794 = vperm.xlu2 %1381, %v1756_v14  }
 0x17b   : >> { %787 = vperm.xlu1 %1380, %v629_v13   ;;  %835 = vperm.xlu0 %1384, %v629_v13  }
 0x182   : >> { %1383 = vset.pattern.permute.xlu2 %v1494_v19 }
 0x183   : >> { %1382 = vset.pattern.permute.xlu1 %v1494_v19  ;;  %1389 = vset.pattern.permute.xlu0 %v1495_v22 }
 0x184   : >> { %818 = vperm.xlu2 %1383, %v1756_v14   ;;  %811 = vperm.xlu1 %1382, %v629_v13  }
 0x185   : >> { %955 = vperm.xlu0 %1389, %v629_v13  }
 0x18c   : >> { %1386 = vset.pattern.permute.xlu2 %v1496_v23  ;;  %1385 = vset.pattern.permute.xlu1 %v1497_v20 }
 0x18d   : >> { %962 = vperm.xlu0 %1389, %v1756_v14   ;;  %883 = vperm.xlu2 %1386, %v629_v13  }
 0x18e   : >> { %859 = vperm.xlu1 %1385, %v629_v13  }
 0x195   : >> { %1394 = vset.pattern.permute.xlu0 %v1496_v23  ;;  %1388 = vset.pattern.permute.xlu2 %v1498_v24 }
 0x196   : >> { %1387 = vset.pattern.permute.xlu1 %v1499_v27  ;;  %890 = vperm.xlu0 %1394, %v1756_v14  }
 0x197   : >> { %931 = vperm.xlu2 %1388, %v629_v13   ;;  %907 = vperm.xlu1 %1387, %v629_v13  }
 0x19e   : >> { %1397 = vset.pattern.permute.xlu0 %v1500_v28 }
 0x19f   : >> { %1391 = vset.pattern.permute.xlu2 %v1500_v28  ;;  %1390 = vset.pattern.permute.xlu1 %v1501_v31  ;;  %v1407_v28 = vpop.eup %1406 }
 0x1a0   : >> { %1003 = vperm.xlu2 %1391, %v629_v13   ;;  %979 = vperm.xlu1 %1390, %v629_v13   ;;  %v758_v13 = vmul.f32 %v757_v62, %v1599_v5 }
 0x1a8   : >> { %1010 = vperm.xlu2 %1391, %v1756_v14   ;;  %986 = vperm.xlu1 %1390, %v1756_v14  }
 0x1b0   : >> { %1393 = vset.pattern.permute.xlu2 %v1499_v27  ;;  %1392 = vset.pattern.permute.xlu1 %v1498_v24  ;;  %v692_v32 = vpop.permute.xlu2 %691  ;;  %v742_v27 = vperm.slane %v1736_v10, 3 }
 0x1b1   : >> { %914 = vperm.xlu2 %1393, %v1756_v14   ;;  %938 = vperm.xlu1 %1392, %v1756_v14   ;;  %v695_v4 = vmul.f32 %v694_v58, %v692_v32  ;;  %v805_v32 = vperm.slane %v1732_v9, 0 }
 0x1b3   : >> { %v806_v39 = vmul.f32 %v805_v32, %v1599_v5 }
 0x1b5   : >> { %v807_v47 = vmul.f32 1.442695, %v806_v39 }
 0x1b8   : >> { %v1774_v35 = vpop.permute.xlu2 %698 }
 0x1b9   : >> { %1396 = vset.pattern.permute.xlu2 %v1493_v21  ;;  %1395 = vset.pattern.permute.xlu1 %v1497_v20  ;;  %v759_v21 = vmul.f32 1.442695, %v758_v13 }
 0x1ba   : >> { %842 = vperm.xlu2 %1396, %v1756_v14   ;;  %866 = vperm.xlu1 %1395, %v1756_v14   ;;  %v781_v14 = vperm.slane %v1732_v9, 1 }
 0x1bb   : >> { %1408 = vpow2.f32 %v759_v21 }
 0x1bc   : >> { %v782_v19 = vmul.f32 %v781_v14, %v1599_v5 }
 0x1be   : >> { %v783_v24 = vmul.f32 1.442695, %v782_v19 }
 0x1c0   : >> { %1410 = vpow2.f32 %v783_v24 }
 0x1c1   : >> { %v740_v43 = vpop.permute.xlu2 %739  ;;  %v1409_v37 = vpop.eup %1408  ;;  %1412 = vpow2.f32 %v807_v47 }
 0x1c2   : >> { %v743_v33 = vmul.f32 %v742_v27, %v740_v43 }
 0x1c6   : >> { %v1411_v46 = vpop.eup %1410 }
 0x1c7   : >> { %v1413_v62 = vpop.eup %1412 }
 0x1c8   : >> { %v668_v50 = vpop.permute.xlu1 %667 }
 0x1c9   : >> { %v643_v51 = vpop.permute.xlu0 %642  ;;  %v671_v59 = vmul.f32 %v670_v53, %v668_v50  ;;  %v853_v53 = vperm.slane %v1730_v8, 6 }
 0x1ca   : >> { %v646_v54 = vmul.f32 %v645_v48, %v643_v51  ;;  %v829_v48 = vperm.slane %v1730_v8, 7 }
 0x1cb   : >> { %v764_v57 = vpop.permute.xlu2 %763  ;;  %v854_v61 = vmul.f32 %v853_v53, %v1599_v5 }
 0x1cc   : >> { %v647_v56 = vadd.f32 %v646_v54, %v639_v25  ;;  %v767_v42 = vmul.f32 %v766_v34, %v764_v57  ;;  %v830_v43 = vmul.f32 %v829_v48, %v1599_v5  ;;  %v925_v48 = vperm.slane %v1730_v8, 3 }
 0x1ce   : >> { %v665_v29 = vmul.f32 %v1401_v26, %v647_v56  ;;  %v831_v58 = vmul.f32 1.442695, %v830_v43 }
 0x1d0   : >> { %v675_v63 = vpop.permute.xlu1 %674  ;;  %v672_v0 = vadd.f32 %v671_v59, %v665_v29  ;;  %1414 = vpow2.f32 %v831_v58  ;;  %v949_v58 = vperm.slane %v1730_v8, 2 }
 0x1d1   : >> { %v651_v30 = vpop.permute.xlu0 %650 }
 0x1d2   : >> { %v689_v44 = vmul.f32 %v1403_v60, %v672_v0  ;;  %v677_v25 = vmul.f32 %v675_v63, %v672_v0  ;;  %v653_v51 = vmul.f32 %v651_v30, %v647_v56 }
 0x1d4   : >> { %v696_v15 = vadd.f32 %v695_v4, %v689_v44  ;;  %v795_v17 = vpop.permute.xlu2 %794  ;;  %v678_v55 = vsel %vm389_vm0, %v677_v25, 0.0  ;;  %v654_v59 = vsel %vm389_vm0, %v653_v51, 0.0  ;;  %v877_v4 = vperm.slane %v1730_v8, 5 }
 0x1d5   : >> { %v1043_v44 = vperm.slane %v1590_v3, 0  ;;  %v655_v49 = vrot.slane %v654_v59, 4  ;;  %v934_v25 = vperm.slane %v1746_v12, 3 }
 0x1d6   : >> { %v713_v16 = vmul.f32 %v1405_v6, %v696_v15  ;;  %v701_v56 = vmul.f32 %v1774_v35, %v696_v15  ;;  %v679_v6 = vrot.slane %v678_v55, 4  ;;  %v814_v15 = vperm.slane %v1736_v10, 0  ;;  %v1415_v39 = vpop.eup %1414 }
 0x1d7   : >> { %v656_v27 = vadd.f32 %v655_v49, %v654_v59  ;;  %v1826_v10 = vmul.f32 %v1043_v44, %v1727_v7 }
 0x1d8   : >> { %v702_v21 = vsel %vm389_vm0, %v701_v56, 0.0  ;;  %v680_v24 = vadd.f32 %v679_v6, %v678_v55 }
 0x1d9   : >> { %v703_v32 = vrot.slane %v702_v21, 4  ;;  %v657_v51 = vrot.slane %v656_v27, 2 }
 0x1da   : >> { %v723_v22 = vpop.permute.xlu1 %722  ;;  %v716_v23 = vpop.permute.xlu0 %715 }
 0x1db   : >> { %v719_v20 = vmul.f32 %v718_v18, %v716_v23  ;;  %v855_v18 = vmul.f32 1.442695, %v854_v61  ;;  %v878_v23 = vmul.f32 %v877_v4, %v1599_v5  ;;  %v926_v61 = vmul.f32 %v925_v48, %v1599_v5 }
 0x1dc   : >> { %v1840_v49 = vadd.f32 %v657_v51, %v656_v27  ;;  %v973_v27 = vperm.slane %v1730_v8, 1 }
 0x1dd   : >> { %v720_v31 = vadd.f32 %v719_v20, %v713_v16  ;;  %v901_v20 = vperm.slane %v1730_v8, 4  ;;  %1416 = vpow2.f32 %v855_v18  ;;  %v950_v18 = vmul.f32 %v949_v58, %v1599_v5 }
 0x1de   : >> { %v1798_v38 = vpop.permute.xlu2 %818 }
 0x1df   : >> { %v737_v36 = vmul.f32 %v1407_v28, %v720_v31  ;;  %v725_v63 = vmul.f32 %v723_v22, %v720_v31  ;;  %v902_v47 = vmul.f32 %v901_v20, %v1599_v5  ;;  %v958_v20 = vperm.slane %v1746_v12, 2 }
 0x1e1   : >> { %v744_v40 = vadd.f32 %v743_v33, %v737_v36  ;;  %v726_v19 = vsel %vm389_vm0, %v725_v63, 0.0 }
 0x1e2   : >> { %v727_v33 = vrot.slane %v726_v19, 4 }
 0x1e3   : >> { %v747_v41 = vpop.permute.xlu1 %746  ;;  %v761_v45 = vmul.f32 %v1409_v37, %v744_v40  ;;  %v1417_v59 = vpop.eup %1416 }
 0x1e4   : >> { %v771_v26 = vpop.permute.xlu0 %770  ;;  %v749_v0 = vmul.f32 %v747_v41, %v744_v40  ;;  %v886_v40 = vperm.slane %v1746_v12, 5  ;;  %v838_v41 = vperm.slane %v1746_v12, 7  ;;  %v728_v7 = vadd.f32 %v727_v33, %v726_v19 }
 0x1e5   : >> { %v768_v50 = vadd.f32 %v767_v42, %v761_v45 }
 0x1e6   : >> { %v750_v35 = vsel %vm389_vm0, %v749_v0, 0.0  ;;  %v862_v0 = vperm.slane %v1746_v12, 6 }
 0x1e7   : >> { %v785_v9 = vmul.f32 %v1411_v46, %v768_v50  ;;  %v1805_v54 = vpop.permute.xlu2 %883  ;;  %v773_v29 = vmul.f32 %v771_v26, %v768_v50  ;;  %v751_v34 = vrot.slane %v750_v35, 4  ;;  %v879_v46 = vmul.f32 1.442695, %v878_v23 }
 0x1e8   : >> { %v681_v50 = vrot.slane %v680_v24, 2 }
 0x1e9   : >> { %v774_v13 = vsel %vm389_vm0, %v773_v29, 0.0  ;;  %v752_v53 = vadd.f32 %v751_v34, %v750_v35  ;;  %1418 = vpow2.f32 %v879_v46 }
 0x1ea   : >> { %v775_v28 = vrot.slane %v774_v13, 4 }
 0x1eb   : >> { %v753_v6 = vrot.slane %v752_v53, 2 }
 0x1ed   : >> { %v788_v57 = vpop.permute.xlu1 %787  ;;  %v836_v36 = vpop.permute.xlu0 %835  ;;  %v754_v33 = vadd.f32 %v753_v6, %v752_v53 }
 0x1ee   : >> { %v791_v60 = vmul.f32 %v790_v52, %v788_v57  ;;  %v704_v52 = vadd.f32 %v703_v32, %v702_v21  ;;  %v839_v26 = vmul.f32 %v838_v41, %v836_v36  ;;  %v659_v36 = vrot.slane %v1840_v49, 1 }
 0x1ef   : >> { %v951_v41 = vmul.f32 1.442695, %v950_v18 }
 0x1f0   : >> { %v792_v30 = vadd.f32 %v791_v60, %v785_v9  ;;  %v776_v9 = vadd.f32 %v775_v28, %v774_v13  ;;  %v903_v60 = vmul.f32 1.442695, %v902_v47  ;;  %v705_v4 = vrot.slane %v704_v52, 2  ;;  %v1419_v28 = vpop.eup %1418 }
 0x1f1   : >> { %v1821_v31 = vpop.permute.xlu2 %931  ;;  %v729_v13 = vrot.slane %v728_v7, 2 }
 0x1f2   : >> { %v797_v14 = vmul.f32 %v795_v17, %v792_v30  ;;  %v809_v16 = vmul.f32 %v1413_v62, %v792_v30  ;;  %v777_v62 = vrot.slane %v776_v9, 2  ;;  %v682_v30 = vadd.f32 %v681_v50, %v680_v24 }
 0x1f3   : >> { %1420 = vpow2.f32 %v903_v60  ;;  %v706_v32 = vadd.f32 %v705_v4, %v704_v52  ;;  %v974_v50 = vmul.f32 %v973_v27, %v1599_v5  ;;  %v755_v52 = vrot.slane %v754_v33, 1 }
 0x1f4   : >> { %v798_v22 = vsel %vm389_vm0, %v797_v14, 0.0  ;;  %v778_v23 = vadd.f32 %v777_v62, %v776_v9  ;;  %v997_v9 = vperm.slane %v1730_v8, 0 }
 0x1f5   : >> { %v799_v17 = vrot.slane %v798_v22, 4  ;;  %v707_v51 = vrot.slane %v706_v32, 1  ;;  %v975_v8 = vmul.f32 1.442695, %v974_v50  ;;  %v756_v62 = vadd.f32 %v755_v52, %v754_v33 }
 0x1f6   : >> { %v812_v37 = vpop.permute.xlu1 %811  ;;  %v779_v47 = vrot.slane %v778_v23, 1  ;;  %v998_v60 = vmul.f32 %v997_v9, %v1599_v5 }
 0x1f7   : >> { %v815_v42 = vmul.f32 %v814_v15, %v812_v37  ;;  %v800_v45 = vadd.f32 %v799_v17, %v798_v22  ;;  %v1846_v35 = vpop.permute.xlu0 %955  ;;  %v927_v22 = vmul.f32 1.442695, %v926_v61  ;;  %v683_v17 = vrot.slane %v682_v30, 1 }
 0x1f8   : >> { %v730_v37 = vadd.f32 %v729_v13, %v728_v7  ;;  %v910_v7 = vperm.slane %v1746_v12, 4 }
 0x1f9   : >> { %v816_v43 = vadd.f32 %v815_v42, %v809_v16  ;;  %v801_v29 = vrot.slane %v800_v45, 2  ;;  %v887_v42 = vmul.f32 %v886_v40, %v1805_v54  ;;  %1422 = vpow2.f32 %v927_v22 }
 0x1fa   : >> { %v1842_v14 = vpop.permute.xlu2 %1003  ;;  %1424 = vpow2.f32 %v951_v41  ;;  %v684_v6 = vadd.f32 %v683_v17, %v682_v30  ;;  %v935_v30 = vmul.f32 %v934_v25, %v1821_v31  ;;  %v982_v31 = vperm.slane %v1746_v12, 1 }
 0x1fb   : >> { %v821_v55 = vmul.f32 %v1798_v38, %v816_v43  ;;  %v833_v57 = vmul.f32 %v1415_v39, %v816_v43  ;;  %v802_v21 = vadd.f32 %v801_v29, %v800_v45  ;;  %v1421_v43 = vpop.eup %1420  ;;  %1426 = vpow2.f32 %v975_v8 }
 0x1fd   : >> { %v822_v56 = vsel %vm389_vm0, %v821_v55, 0.0  ;;  %v1837_v63 = vadd.f32 %v839_v26, %v833_v57  ;;  %v803_v45 = vrot.slane %v802_v21, 1  ;;  %v731_v26 = vrot.slane %v730_v37, 1 }
 0x1fe   : >> { %v823_v38 = vrot.slane %v822_v56, 4  ;;  %v780_v57 = vadd.f32 %v779_v47, %v778_v23  ;;  %v660_v23 = vadd.f32 %v659_v36, %v1840_v49  ;;  %v959_v49 = vmul.f32 %v958_v20, %v1846_v35 }
 0x1ff   : >> { %v857_v16 = vmul.f32 %v1417_v59, %v1837_v63  ;;  %v804_v54 = vadd.f32 %v803_v45, %v802_v21  ;;  %v1423_v61 = vpop.eup %1422  ;;  %v1006_v45 = vperm.slane %v1746_v12, 0 }
 0x200   : >> { %v824_v19 = vadd.f32 %v823_v38, %v822_v56  ;;  %v860_v15 = vpop.permute.xlu1 %859  ;;  %v963_v56 = vpop.permute.xlu0 %962  ;;  %v732_v38 = vadd.f32 %v731_v26, %v730_v37 }
 0x201   : >> { %v863_v24 = vmul.f32 %v862_v0, %v860_v15  ;;  %v999_v15 = vmul.f32 1.442695, %v998_v60 }
 0x202   : >> { %v825_v34 = vrot.slane %v824_v19, 2  ;;  %v1858_v58 = vpop.permute.xlu2 %1010 }
 0x203   : >> { %v1851_v39 = vadd.f32 %v863_v24, %v857_v16  ;;  %v708_v16 = vadd.f32 %v707_v51, %v706_v32  ;;  %1428 = vpow2.f32 %v999_v15  ;;  %v1007_v51 = vmul.f32 %v1006_v45, %v1842_v14 }
 0x204   : >> { %v826_v46 = vadd.f32 %v825_v34, %v824_v19  ;;  %v1425_v19 = vpop.eup %1424 }
 0x205   : >> { %v881_v48 = vmul.f32 %v1419_v28, %v1851_v39  ;;  %v1427_v36 = vpop.eup %1426 }
 0x206   : >> { %v827_v53 = vrot.slane %v826_v46, 1 }
 0x207   : >> { %v888_v55 = vadd.f32 %v887_v42, %v881_v48 }
 0x208   : >> { %v828_v40 = vadd.f32 %v827_v53, %v826_v46  ;;  %v891_v41 = vpop.permute.xlu0 %890 }
 0x209   : >> { %v908_v59 = vpop.permute.xlu1 %907  ;;  %v905_v29 = vmul.f32 %v1421_v43, %v888_v55  ;;  %v893_v50 = vmul.f32 %v891_v41, %v888_v55 }
 0x20a   : >> { %v911_v0 = vmul.f32 %v910_v7, %v908_v59  ;;  %v1035_v4 = vsel %vm1021_vm2, %v828_v40, %v804_v54 }
 0x20b   : >> { %v1036_v13 = vsel %vm1023_vm3, %v1035_v4, %v780_v57  ;;  %v915_v37 = vpop.permute.xlu2 %914  ;;  %v894_v7 = vsel %vm389_vm0, %v893_v50, 0.0 }
 0x20c   : >> { %v912_v18 = vadd.f32 %v911_v0, %v905_v29  ;;  %v1037_v21 = vsel %vm1025_vm4, %v1036_v13, %v756_v62  ;;  %v895_v57 = vrot.slane %v894_v7, 4 }
 0x20d   : >> { %v1038_v22 = vsel %vm1027_vm5, %v1037_v21, %v732_v38 }
 0x20e   : >> { %v929_v24 = vmul.f32 %v1423_v61, %v912_v18  ;;  %v1039_v27 = vsel %vm1029_vm6, %v1038_v22, %v708_v16  ;;  %v917_v9 = vmul.f32 %v915_v37, %v912_v18  ;;  %v896_v0 = vadd.f32 %v895_v57, %v894_v7 }
 0x20f   : >> { %v1040_v28 = vsel %vm1031_vm7, %v1039_v27, %v684_v6 }
 0x210   : >> { %v936_v17 = vadd.f32 %v935_v30, %v929_v24  ;;  %v1041_v32 = vsel %vm1033_vm8, %v1040_v28, %v660_v23  ;;  %v918_v26 = vsel %vm389_vm0, %v917_v9, 0.0  ;;  %v897_v23 = vrot.slane %v896_v0, 2 }
 0x211   : >> { %v1048_v33 = vadd.f32 %v1826_v10, %v1041_v32  ;;  %v1429_v10 = vpop.eup %1428  ;;  %v919_v59 = vrot.slane %v918_v26, 4 }
 0x212   : >> { %v980_v34 = vpop.permute.xlu1 %979  ;;  %v953_v25 = vmul.f32 %v1425_v19, %v936_v17 }
 0x213   : >> { %1051 = vst.msk [vmem:[%s1873_s19 + $0x8] sm:$0xff] %vm389_vm0, %v1048_v33  ;;  %v983_v46 = vmul.f32 %v982_v31, %v980_v34  ;;  %v920_v6 = vadd.f32 %v919_v59, %v918_v26  ;;  %v898_v34 = vadd.f32 %v897_v23, %v896_v0 }
 0x214   : >> { %v960_v42 = vadd.f32 %v959_v49, %v953_v25  ;;  %v843_v40 = vpop.permute.xlu2 %842 }
 0x215   : >> { %v845_v14 = vmul.f32 %v843_v40, %v1837_v63  ;;  %v899_v50 = vrot.slane %v898_v34, 1 }
 0x216   : >> { %v965_v47 = vmul.f32 %v963_v56, %v960_v42  ;;  %v977_v48 = vmul.f32 %v1427_v36, %v960_v42 }
 0x217   : >> { %v846_v18 = vsel %vm389_vm0, %v845_v14, 0.0  ;;  %v900_v7 = vadd.f32 %v899_v50, %v898_v34 }
 0x218   : >> { %v966_v35 = vsel %vm389_vm0, %v965_v47, 0.0  ;;  %v984_v20 = vadd.f32 %v983_v46, %v977_v48  ;;  %v847_v30 = vrot.slane %v846_v18, 4 }
 0x219   : >> { %v967_v43 = vrot.slane %v966_v35, 4 }
 0x21a   : >> { %v987_v52 = vpop.permute.xlu1 %986  ;;  %v1001_v53 = vmul.f32 %v1429_v10, %v984_v20  ;;  %v848_v25 = vadd.f32 %v847_v30, %v846_v18 }
 0x21b   : >> { %v989_v54 = vmul.f32 %v987_v52, %v984_v20  ;;  %v968_v12 = vadd.f32 %v967_v43, %v966_v35 }
 0x21c   : >> { %v1888_v4 = vadd.f32 %v1007_v51, %v1001_v53   ;;  %v849_v9 = vrot.slane %v848_v25, 2 }
 0x21d   : >> { %v990_v55 = vsel %vm389_vm0, %v989_v54, 0.0  ;;  %v969_v60 = vrot.slane %v968_v12, 2 }
 0x21e   : >> { %v991_v29 = vrot.slane %v990_v55, 4  ;;  %v1013_v8 = vmul.f32 %v1858_v58, %v1888_v4  ;;  %v921_v58 = vrot.slane %v920_v6, 2  ;;  %v850_v26 = vadd.f32 %v849_v9, %v848_v25 }
 0x21f   : >> { %v970_v21 = vadd.f32 %v969_v60, %v968_v12 }
 0x220   : >> { %v992_v61 = vadd.f32 %v991_v29, %v990_v55  ;;  %v1014_v62 = vsel %vm389_vm0, %v1013_v8, 0.0  ;;  %v922_v31 = vadd.f32 %v921_v58, %v920_v6  ;;  %v851_v57 = vrot.slane %v850_v26, 1 }
 0x221   : >> { %v1015_v56 = vrot.slane %v1014_v62, 4  ;;  %v971_v32 = vrot.slane %v970_v21, 1  ;;  %v1045_v29 = vmul.f32 %v1043_v44, %v1740_v11 }
 0x222   : >> { %v993_v38 = vrot.slane %v992_v61, 2  ;;  %v923_v48 = vrot.slane %v922_v31, 1  ;;  %v852_v14 = vadd.f32 %v851_v57, %v850_v26 }
 0x223   : >> { %v1016_v13 = vadd.f32 %v1015_v56, %v1014_v62  ;;  %v939_v16 = vpop.permute.xlu1 %938  ;;  %v972_v42 = vadd.f32 %v971_v32, %v970_v21 }
 0x224   : >> { %v994_v19 = vadd.f32 %v993_v38, %v992_v61  ;;  %v941_v15 = vmul.f32 %v939_v16, %v936_v17  ;;  %v924_v52 = vadd.f32 %v923_v48, %v922_v31 }
 0x225   : >> { %v1017_v22 = vrot.slane %v1016_v13, 2 }
 0x226   : >> { %v942_v63 = vsel %vm389_vm0, %v941_v15, 0.0  ;;  %v995_v24 = vrot.slane %v994_v19, 1 }
 0x227   : >> { %v1018_v27 = vadd.f32 %v1017_v22, %v1016_v13  ;;  %v943_v28 = vrot.slane %v942_v63, 4 }
 0x228   : >> { %v996_v36 = vadd.f32 %v995_v24, %v994_v19 }
 0x229   : >> { %v1019_v33 = vrot.slane %v1018_v27, 1  ;;  %v944_v49 = vadd.f32 %v943_v28, %v942_v63 }
 0x22b   : >> { %v1020_v37 = vadd.f32 %v1019_v33, %v1018_v27  ;;  %v945_v41 = vrot.slane %v944_v49, 2 }
 0x22c   : >> { %v867_v17 = vpop.permute.xlu1 %866 }
 0x22d   : >> { %v1022_v45 = vsel %vm1021_vm2, %v1020_v37, %v996_v36  ;;  %v946_v46 = vadd.f32 %v945_v41, %v944_v49  ;;  %v869_v47 = vmul.f32 %v867_v17, %v1851_v39 }
 0x22e   : >> { %v1024_v10 = vsel %vm1023_vm3, %v1022_v45, %v972_v42 }
 0x22f   : >> { %v947_v35 = vrot.slane %v946_v46, 1  ;;  %v870_v20 = vsel %vm389_vm0, %v869_v47, 0.0 }
 0x230   : >> { %v871_v43 = vrot.slane %v870_v20, 4 }
 0x231   : >> { %v948_v51 = vadd.f32 %v947_v35, %v946_v46 }
 0x232   : >> { %v872_v53 = vadd.f32 %v871_v43, %v870_v20 }
 0x233   : >> { %v1026_v54 = vsel %vm1025_vm4, %v1024_v10, %v948_v51 }
 0x234   : >> { %v1028_v12 = vsel %vm1027_vm5, %v1026_v54, %v924_v52  ;;  %v873_v39 = vrot.slane %v872_v53, 2 }
 0x235   : >> { %v1030_v40 = vsel %vm1029_vm6, %v1028_v12, %v900_v7 }
 0x236   : >> { %v874_v55 = vadd.f32 %v873_v39, %v872_v53 }
 0x238   : >> { %v875_v59 = vrot.slane %v874_v55, 1 }
 0x23a   : >> { %v876_v8 = vadd.f32 %v875_v59, %v874_v55 }
 0x23c   : >> { %v1032_v60 = vsel %vm1031_vm7, %v1030_v40, %v876_v8  ;;  %587 = sbr.rel (!%p585_p7) target bundleno = 205 (0xcd), region = 99 }
 0x23d   : >> { %v1034_v61 = vsel %vm1033_vm8, %v1032_v60, %v852_v14 }
 0x23e   : >> { %v1047_v62 = vadd.f32 %v1045_v29, %v1034_v61 }
 0x240   : >> { %1050 = vst.msk [vmem:[%s1873_s19] sm:$0xff] %vm389_vm0, %v1047_v62 }
 0x241 PF: > { %s16_s25 = sadd.s32 1, %s1476_s25   ;;  %s1943_s21 = smov %s1468_s23 }
 0x242   : > { %p13_p8 = scmp.ge.s32.totalorder %s16_s25, 6   ;;  %s1944_s22 = smov %s1472_s24 }
 0x243   : > { %s1945_s23 = smov %s1948_s26  ;;  %s1946_s24 = smov %s1952_s27 }
 0x244   :  { %15 = sbr.rel (!%p13_p8) target bundleno = 3 (0x3), region = 110 }

</bundles_post_ra>
